<compile_context>
chip_gen: v5e
topology: v5e:2x2
jax: 0.10.0
libtpu: 0.0.40
codegen_flags: <defaults>
</compile_context>

<pallas_src>
import functools
import math

import jax
import jax.numpy as jnp
from jax import lax
from jax.experimental import pallas as pl
from jax.experimental.pallas import tpu as pltpu

ACT_DTYPE = jnp.bfloat16   # inter-layer activations / MXU operand dtype
# v7x has 64 MiB physical VMEM (32 MiB default scoped); worst-case usage here is
# well under 16 MiB, so 48 MiB is a safe explicit cap on all chips.
_VMEM_LIMIT = 48 * 1024 * 1024


# ----------------------------------------------------------------------------
# Kernel 1: fused matmul  ->  act( (A @ B) * scale + shift )
#   bf16 operands, f32 accumulate + epilogue.  Full-K blocks (K <= 2048 here), so
#   no reduction grid axis and no scratch accumulator; edge M/N blocks are masked.
# ----------------------------------------------------------------------------
def _matmul_kernel(a_ref, b_ref, s_ref, t_ref, o_ref, *, act):
    y = jnp.dot(a_ref[...], b_ref[...], preferred_element_type=jnp.float32)
    y = y * s_ref[...] + t_ref[...]
    if act == "relu":
        y = jnp.maximum(y, 0.0)
    elif act == "sigmoid":
        y = jax.nn.sigmoid(y)
    o_ref[...] = y.astype(o_ref.dtype)


@functools.partial(jax.jit, static_argnames=("act", "out_dtype"))
def fused_matmul(a, b, scale, shift, *, act="none", out_dtype=ACT_DTYPE):
    """a:(M,K) @ b:(K,N), per-column scale/shift:(1,N) f32, fused activation."""
    M, K = a.shape
    _, N = b.shape
    a = a.astype(ACT_DTYPE)
    b = b.astype(ACT_DTYPE)
    scale = scale.astype(jnp.float32)
    shift = shift.astype(jnp.float32)

    # Full-dim blocks are always layout-legal; otherwise 8/128-aligned caps.
    tm = M if M <= 256 else 256
    # Tiny-M, big-weight matmuls (classifier) stream B from HBM with no reuse:
    # use a wide, lane-dense N tile to amortize per-step overhead.
    n_cap = 1024 if M <= 64 else 512
    tn = N if N <= n_cap else n_cap
    grid = (pl.cdiv(M, tm), pl.cdiv(N, tn))

    return pl.pallas_call(
        functools.partial(_matmul_kernel, act=act),
        out_shape=jax.ShapeDtypeStruct((M, N), out_dtype),
        grid=grid,
        in_specs=[
            pl.BlockSpec((tm, K), lambda i, j: (i, 0)),
            pl.BlockSpec((K, tn), lambda i, j: (0, j)),
            pl.BlockSpec((1, tn), lambda i, j: (0, j)),
            pl.BlockSpec((1, tn), lambda i, j: (0, j)),
        ],
        out_specs=pl.BlockSpec((tm, tn), lambda i, j: (i, j)),
        compiler_params=pltpu.CompilerParams(
            dimension_semantics=("parallel", "parallel"),
            vmem_limit_bytes=_VMEM_LIMIT),
    )(a, b, scale, shift)


# ----------------------------------------------------------------------------
# Kernel 2: direct 3x3 stride-1 "same" conv + BN + act  (no im2col)
#   Input is spatially zero-padded and row-flattened to (B, (H+2)*(W+2), Cin);
#   each of the 9 taps is then just a constant row-offset into that flat array,
#   so the kernel does 9 shifted matmuls into an f32 VMEM accumulator.
# ----------------------------------------------------------------------------
def _conv3x3_kernel(x_ref, w_ref, s_ref, t_ref, o_ref, acc_ref, *, H, W, Wp, R, act):
    # x_ref: (1, (H+2)*Wp, Cin) bf16, w_ref: (9, Cin, Cout) bf16
    # s_ref/t_ref: (1, Cout) f32,     o_ref: (1, H, W, Cout), acc_ref: (L, Cout) f32
    scale = s_ref[...]
    shift = t_ref[...]
    L = acc_ref.shape[0]            # = (R - 1) * Wp + W  rows per chunk
    n_chunks = H // R

    def do_chunk(c, q0):
        first = True
        for dy in range(3):
            for dx in range(3):
                a = x_ref[0, pl.ds(q0 + dy * Wp + dx, L), :]
                contrib = jnp.dot(a, w_ref[dy * 3 + dx],
                                  preferred_element_type=jnp.float32)
                if first:
                    acc_ref[...] = contrib
                    first = False
                else:
                    acc_ref[...] += contrib
        for r in range(R):          # per-row epilogue: drop the 2 pad columns
            row = acc_ref[pl.ds(r * Wp, W), :]
            y = row * scale + shift
            if act == "relu":
                y = jnp.maximum(y, 0.0)
            o_ref[0, c * R + r] = y.astype(o_ref.dtype)

    if n_chunks <= 16:              # static offsets (cheapest lowering)
        for c in range(n_chunks):
            do_chunk(c, c * R * Wp)
    else:                           # large images: keep trace size bounded
        def body(c, carry):
            do_chunk(c, c * (R * Wp))
            return carry
        lax.fori_loop(0, n_chunks, body, 0)


@functools.partial(jax.jit, static_argnames=("act",))
def conv3x3_s1(x, w9, scale, shift, *, act="relu"):
    """3x3, stride-1, pad-1 conv + folded BN + act.  x:(B,H,W,Cin) -> (B,H,W,Cout)."""
    B, H, W, Cin = x.shape
    Cout = w9.shape[2]
    Wp = W + 2
    xp = jnp.pad(x.astype(ACT_DTYPE), ((0, 0), (1, 1), (1, 1), (0, 0)))
    xf = xp.reshape(B, (H + 2) * Wp, Cin)
    R = math.gcd(H, 8)                       # image rows per MXU call
    L = (R - 1) * Wp + W

    return pl.pallas_call(
        functools.partial(_conv3x3_kernel, H=H, W=W, Wp=Wp, R=R, act=act),
        out_shape=jax.ShapeDtypeStruct((B, H, W, Cout), ACT_DTYPE),
        grid=(B,),
        in_specs=[
            pl.BlockSpec((1, (H + 2) * Wp, Cin), lambda b: (b, 0, 0)),
            pl.BlockSpec((9, Cin, Cout), lambda b: (0, 0, 0)),
            pl.BlockSpec((1, Cout), lambda b: (0, 0)),
            pl.BlockSpec((1, Cout), lambda b: (0, 0)),
        ],
        out_specs=pl.BlockSpec((1, H, W, Cout), lambda b: (b, 0, 0, 0)),
        scratch_shapes=[pltpu.VMEM((L, Cout), jnp.float32)],
        compiler_params=pltpu.CompilerParams(
            dimension_semantics=("parallel",),
            vmem_limit_bytes=_VMEM_LIMIT),
    )(xf, w9, scale.astype(jnp.float32), shift.astype(jnp.float32))


# ----------------------------------------------------------------------------
# Kernel 3: global average pool over HW, tiled along HW with a resident accumulator
# ----------------------------------------------------------------------------
def _gap_kernel(x_ref, o_ref, *, inv_hw):
    @pl.when(pl.program_id(1) == 0)
    def _():
        o_ref[...] = jnp.zeros_like(o_ref)

    o_ref[...] += jnp.sum(x_ref[...].astype(jnp.float32), axis=1, keepdims=True)

    @pl.when(pl.program_id(1) == pl.num_programs(1) - 1)
    def _():
        o_ref[...] = o_ref[...] * inv_hw


def _hw_tile(hw, cap=512):
    for t in (cap, 256, 128, 64, 32, 16, 8):
        if t <= cap and t <= hw and hw % t == 0:
            return t
    return hw           # full-dim block (always layout-legal)


@jax.jit
def global_avg_pool(x):  # x: (B, HW, C) -> (B, C) f32
    B, HW, C = x.shape
    thw = _hw_tile(HW)
    out = pl.pallas_call(
        functools.partial(_gap_kernel, inv_hw=1.0 / HW),
        out_shape=jax.ShapeDtypeStruct((B, 1, C), jnp.float32),
        grid=(B, HW // thw),
        in_specs=[pl.BlockSpec((1, thw, C), lambda b, t: (b, t, 0))],
        out_specs=pl.BlockSpec((1, 1, C), lambda b, t: (b, 0, 0)),
        compiler_params=pltpu.CompilerParams(
            dimension_semantics=("parallel", "arbitrary"),
            vmem_limit_bytes=_VMEM_LIMIT),
    )(x)
    return out[:, 0, :]


# ----------------------------------------------------------------------------
# Kernel 4: SE scale + residual add + ReLU, tiled along HW
# ----------------------------------------------------------------------------
def _se_combine_kernel(x_ref, y_ref, r_ref, o_ref):
    x = x_ref[...].astype(jnp.float32)
    y = y_ref[...].astype(jnp.float32)
    r = r_ref[...].astype(jnp.float32)
    o_ref[...] = jnp.maximum(x * y + r, 0.0).astype(o_ref.dtype)


@jax.jit
def se_residual_relu(x, y, r):  # x,r: (B,HW,C)  y: (B,1,C)
    B, HW, C = x.shape
    thw = HW if HW <= 512 else 512
    return pl.pallas_call(
        _se_combine_kernel,
        out_shape=jax.ShapeDtypeStruct((B, HW, C), ACT_DTYPE),
        grid=(B, pl.cdiv(HW, thw)),
        in_specs=[
            pl.BlockSpec((1, thw, C), lambda b, t: (b, t, 0)),
            pl.BlockSpec((1, 1, C), lambda b, t: (b, 0, 0)),
            pl.BlockSpec((1, thw, C), lambda b, t: (b, t, 0)),
        ],
        out_specs=pl.BlockSpec((1, thw, C), lambda b, t: (b, t, 0)),
        compiler_params=pltpu.CompilerParams(
            dimension_semantics=("parallel", "parallel"),
            vmem_limit_bytes=_VMEM_LIMIT),
    )(x, y, r)


# ----------------------------------------------------------------------------
# Model glue (eval-mode BN folding, parameters, forward)
# ----------------------------------------------------------------------------
def _bn_scale_shift(bn, eps=1e-5):
    scale = bn["gamma"] * lax.rsqrt(bn["var"] + eps)
    shift = bn["beta"] - bn["mean"] * scale
    return scale.reshape(1, -1), shift.reshape(1, -1)


def conv1x1_bn_act(x, w_io, bn, stride, act):
    """1x1 conv (weights stored as (Cin, Cout)) + folded BN + act."""
    if stride > 1:
        x = x[:, ::stride, ::stride, :]
    B, H, W, Cin = x.shape
    scale, shift = _bn_scale_shift(bn)
    y = fused_matmul(x.reshape(B * H * W, Cin), w_io, scale, shift, act=act)
    return y.reshape(B, H, W, w_io.shape[1])


def conv3x3_bn_act(x, w9, bn, stride, act):
    scale, shift = _bn_scale_shift(bn)
    y = conv3x3_s1(x, w9, scale, shift, act=act)
    if stride > 1:
        # stride-2 conv == dense stride-1 conv subsampled (exact; much less HBM
        # traffic than an im2col lowering, and only 3 convs in the net use it).
        y = y[:, ::stride, ::stride, :]
    return y


def _kaiming_conv(key, cin, cout, k):
    fan_out = cout * k * k
    std = (2.0 / fan_out) ** 0.5
    w = jax.random.normal(key, (cout, cin, k, k), jnp.float32) * std   # PyTorch OIHW
    if k == 1:
        return w.reshape(cout, cin).T.astype(ACT_DTYPE)                # (Cin, Cout)
    # (O,I,kh,kw) -> (kh,kw,I,O) -> (9, Cin, Cout), tap index = dy*3 + dx
    return jnp.transpose(w, (2, 3, 1, 0)).reshape(k * k, cin, cout).astype(ACT_DTYPE)


def _make_bn(c):
    return dict(gamma=jnp.ones((c,), jnp.float32),
                beta=jnp.zeros((c,), jnp.float32),
                mean=jnp.zeros((c,), jnp.float32),
                var=jnp.ones((c,), jnp.float32))


def init_params(key, num_classes=8631):
    keys = iter(jax.random.split(key, 160))
    p = {}
    p["conv1"], p["bn1"] = _kaiming_conv(next(keys), 3, 32, 3), _make_bn(32)
    p["conv2"], p["bn2"] = _kaiming_conv(next(keys), 32, 32, 3), _make_bn(32)
    p["conv3"], p["bn3"] = _kaiming_conv(next(keys), 32, 64, 3), _make_bn(64)

    layers_cfg = [(64, 3, 1), (128, 4, 2), (256, 6, 2), (512, 3, 2)]
    inplanes = 64
    p["layers"] = []
    for planes, blocks, stride in layers_cfg:
        layer = []
        for bi in range(blocks):
            s = stride if bi == 0 else 1
            blk = {"stride": s}
            blk["conv1"], blk["bn1"] = _kaiming_conv(next(keys), inplanes, planes, 1), _make_bn(planes)
            blk["conv2"], blk["bn2"] = _kaiming_conv(next(keys), planes, planes, 3), _make_bn(planes)
            blk["conv3"], blk["bn3"] = _kaiming_conv(next(keys), planes, planes * 4, 1), _make_bn(planes * 4)
            if bi == 0 and (s != 1 or inplanes != planes * 4):
                blk["down_conv"] = _kaiming_conv(next(keys), inplanes, planes * 4, 1)
                blk["down_bn"] = _make_bn(planes * 4)
            c = planes * 4
            hid = c // 16
            blk["se_w1"] = (jax.random.normal(next(keys), (c, hid), jnp.float32)
                            / math.sqrt(c)).astype(ACT_DTYPE)
            blk["se_w2"] = (jax.random.normal(next(keys), (hid, c), jnp.float32)
                            / math.sqrt(hid)).astype(ACT_DTYPE)
            layer.append(blk)
            inplanes = planes * 4
        p["layers"].append(layer)

    p["fc_w"] = (jax.random.normal(next(keys), (2048, num_classes), jnp.float32)
                 / math.sqrt(2048.0)).astype(ACT_DTYPE)
    p["fc_b"] = jnp.zeros((num_classes,), jnp.float32)
    return p


def bottleneck_forward(x, blk):
    stride = blk["stride"]
    out = conv1x1_bn_act(x, blk["conv1"], blk["bn1"], 1, "relu")
    out = conv3x3_bn_act(out, blk["conv2"], blk["bn2"], stride, "relu")
    conv3_out = conv1x1_bn_act(out, blk["conv3"], blk["bn3"], 1, "none")

    if "down_conv" in blk:
        residual = conv1x1_bn_act(x, blk["down_conv"], blk["down_bn"], stride, "none")
    else:
        residual = x

    B, H, W, C = conv3_out.shape
    # SE squeeze: mean_HW(conv3_out) == BN_affine(mean_HW(conv2_out) @ W3)
    # (1x1 conv and affine BN commute with the spatial mean) -> pool the 4x
    # smaller conv2 activation instead of re-reading conv3_out.
    Bm, Hm, Wm, Cm = out.shape
    m2 = global_avg_pool(out.reshape(Bm, Hm * Wm, Cm))                       # (B, Cmid)
    scale3, shift3 = _bn_scale_shift(blk["bn3"])
    pooled = fused_matmul(m2, blk["conv3"], scale3, shift3,
                          act="none", out_dtype=jnp.float32)                 # (B, C)
    hid = C // 16
    y = fused_matmul(pooled, blk["se_w1"],
                     jnp.ones((1, hid), jnp.float32), jnp.zeros((1, hid), jnp.float32),
                     act="relu", out_dtype=jnp.float32)                      # (B, hid)
    y = fused_matmul(y, blk["se_w2"],
                     jnp.ones((1, C), jnp.float32), jnp.zeros((1, C), jnp.float32),
                     act="sigmoid", out_dtype=jnp.float32)                   # (B, C)

    out3 = se_residual_relu(conv3_out.reshape(B, H * W, C),
                            y.reshape(B, 1, C),
                            residual.reshape(B, H * W, C))
    return out3.reshape(B, H, W, C)


def custom_resnet50_forward(params, x_nchw):
    """x_nchw: (B, 3, H, W) f32 -> {'feats': (B, 2048) f32, 'out': (B, num_classes) f32}."""
    x = jnp.transpose(x_nchw, (0, 2, 3, 1)).astype(ACT_DTYPE)   # NCHW -> NHWC
    x = conv3x3_bn_act(x, params["conv1"], params["bn1"], 1, "relu")
    x = conv3x3_bn_act(x, params["conv2"], params["bn2"], 1, "relu")
    x = conv3x3_bn_act(x, params["conv3"], params["bn3"], 1, "relu")
    for layer in params["layers"]:
        for blk in layer:
            x = bottleneck_forward(x, blk)
    B, H, W, C = x.shape
    feats = global_avg_pool(x.reshape(B, H * W, C))              # (B, 2048) f32
    # Dropout(0.5): identity in eval mode.
    num_classes = params["fc_w"].shape[1]
    out = fused_matmul(feats, params["fc_w"],
                       jnp.ones((1, num_classes), jnp.float32),
                       params["fc_b"].reshape(1, -1),
                       act="none", out_dtype=jnp.float32)
    return {"feats": feats, "out": out}


if __name__ == "__main__":
    key = jax.random.PRNGKey(0)
    k_param, k_x = jax.random.split(key)
    params = init_params(k_param, num_classes=8631)

    x = jax.random.normal(k_x, (2, 3, 16, 16), jnp.float32)      # NCHW, 3 channels

    result = custom_resnet50_forward(params, x)
    jax.block_until_ready(result["feats"])
    jax.block_until_ready(result["out"])

    assert result["feats"].shape == (2, 2048)
    assert result["out"].shape == (2, 8631)
    assert result["feats"].dtype == jnp.float32 and result["out"].dtype == jnp.float32
    assert jnp.all(jnp.isfinite(result["feats"])) and jnp.all(jnp.isfinite(result["out"]))
    print("KERNEL_OK")
</pallas_src>

<mosaic_0001>
module attributes {stable_mosaic.version = 11 : i64} {
  func.func @_conv3x3_kernel(%arg0: i32, %arg1: memref<1x324x3xbf16, #tpu.memory_space<vmem>>, %arg2: memref<9x3x32xbf16, #tpu.memory_space<vmem>>, %arg3: memref<1x32xf32, #tpu.memory_space<vmem>>, %arg4: memref<1x32xf32, #tpu.memory_space<vmem>>, %arg5: memref<1x16x16x32xbf16, #tpu.memory_space<vmem>>, %arg6: memref<142x32xf32, #tpu.memory_space<vmem>>) attributes {dimension_semantics = [#tpu.dimension_semantics<parallel>], iteration_bounds = array<i64: 2>, scalar_prefetch = 0 : i64, scratch_operands = 1 : i64, tpu.core_type = #tpu.core_type<tc>, window_params = [{transform_indices = @transform_0, window_bounds = array<i64: 1, 324, 3>}, {pipeline_mode = #tpu.pipeline_mode<synchronous>, transform_indices = @transform_1, window_bounds = array<i64: 9, 3, 32>}, {pipeline_mode = #tpu.pipeline_mode<synchronous>, transform_indices = @transform_2, window_bounds = array<i64: 1, 32>}, {pipeline_mode = #tpu.pipeline_mode<synchronous>, transform_indices = @transform_3, window_bounds = array<i64: 1, 32>}, {transform_indices = @transform_4, window_bounds = array<i64: 1, 16, 16, 32>}]} {
    %c0 = arith.constant 0 : index
    %c0_0 = arith.constant 0 : index
    %0 = vector.load %arg3[%c0, %c0_0] : memref<1x32xf32, #tpu.memory_space<vmem>>, vector<1x32xf32>
    %c0_1 = arith.constant 0 : index
    %c0_2 = arith.constant 0 : index
    %1 = vector.load %arg4[%c0_1, %c0_2] : memref<1x32xf32, #tpu.memory_space<vmem>>, vector<1x32xf32>
    %c0_3 = arith.constant 0 : index
    %c0_4 = arith.constant 0 : index
    %c0_5 = arith.constant 0 : index
    %2 = vector.load %arg1[%c0_3, %c0_4, %c0_5] : memref<1x324x3xbf16, #tpu.memory_space<vmem>>, vector<1x142x3xbf16>
    %3 = vector.shape_cast %2 : vector<1x142x3xbf16> to vector<142x3xbf16>
    %c0_6 = arith.constant 0 : index
    %c0_7 = arith.constant 0 : index
    %c0_8 = arith.constant 0 : index
    %4 = vector.load %arg2[%c0_6, %c0_7, %c0_8] : memref<9x3x32xbf16, #tpu.memory_space<vmem>>, vector<1x3x32xbf16>
    %5 = vector.shape_cast %4 : vector<1x3x32xbf16> to vector<3x32xbf16>
    %cst = arith.constant dense<0.000000e+00> : vector<142x32xf32>
    %6 = tpu.matmul %3, %5, %cst {dimension_numbers = #tpu.dot_dimension_numbers<[1], [0], [0], [1], [0, 0, 1, 1], [], []>} : vector<142x3xbf16>, vector<3x32xbf16>, vector<142x32xf32> -> vector<142x32xf32>
    %c0_9 = arith.constant 0 : index
    %c0_10 = arith.constant 0 : index
    %7 = vector.load %arg6[%c0_9, %c0_10] : memref<142x32xf32, #tpu.memory_space<vmem>>, vector<142x32xf32>
    tpu.vector_store %arg6[%c0_9, %c0_10], %6 {strides = array<i32>} : memref<142x32xf32, #tpu.memory_space<vmem>>, vector<142x32xf32>,
    %c0_11 = arith.constant 0 : index
    %c1 = arith.constant 1 : index
    %c0_12 = arith.constant 0 : index
    %8 = vector.load %arg1[%c0_11, %c1, %c0_12] : memref<1x324x3xbf16, #tpu.memory_space<vmem>>, vector<1x142x3xbf16>
    %9 = vector.shape_cast %8 : vector<1x142x3xbf16> to vector<142x3xbf16>
    %c1_13 = arith.constant 1 : index
    %c0_14 = arith.constant 0 : index
    %c0_15 = arith.constant 0 : index
    %10 = vector.load %arg2[%c1_13, %c0_14, %c0_15] : memref<9x3x32xbf16, #tpu.memory_space<vmem>>, vector<1x3x32xbf16>
    %11 = vector.shape_cast %10 : vector<1x3x32xbf16> to vector<3x32xbf16>
    %cst_16 = arith.constant dense<0.000000e+00> : vector<142x32xf32>
    %12 = tpu.matmul %9, %11, %cst_16 {dimension_numbers = #tpu.dot_dimension_numbers<[1], [0], [0], [1], [0, 0, 1, 1], [], []>} : vector<142x3xbf16>, vector<3x32xbf16>, vector<142x32xf32> -> vector<142x32xf32>
    %c0_17 = arith.constant 0 : index
    %c0_18 = arith.constant 0 : index
    %13 = vector.load %arg6[%c0_17, %c0_18] : memref<142x32xf32, #tpu.memory_space<vmem>>, vector<142x32xf32>
    %14 = arith.addf %13, %12 : vector<142x32xf32>
    %c0_19 = arith.constant 0 : index
    %c0_20 = arith.constant 0 : index
    %15 = vector.load %arg6[%c0_19, %c0_20] : memref<142x32xf32, #tpu.memory_space<vmem>>, vector<142x32xf32>
    tpu.vector_store %arg6[%c0_19, %c0_20], %14 {strides = array<i32>} : memref<142x32xf32, #tpu.memory_space<vmem>>, vector<142x32xf32>,
    %c0_21 = arith.constant 0 : index
    %c2 = arith.constant 2 : index
    %c0_22 = arith.constant 0 : index
    %16 = vector.load %arg1[%c0_21, %c2, %c0_22] : memref<1x324x3xbf16, #tpu.memory_space<vmem>>, vector<1x142x3xbf16>
    %17 = vector.shape_cast %16 : vector<1x142x3xbf16> to vector<142x3xbf16>
    %c2_23 = arith.constant 2 : index
    %c0_24 = arith.constant 0 : index
    %c0_25 = arith.constant 0 : index
    %18 = vector.load %arg2[%c2_23, %c0_24, %c0_25] : memref<9x3x32xbf16, #tpu.memory_space<vmem>>, vector<1x3x32xbf16>
    %19 = vector.shape_cast %18 : vector<1x3x32xbf16> to vector<3x32xbf16>
    %cst_26 = arith.constant dense<0.000000e+00> : vector<142x32xf32>
    %20 = tpu.matmul %17, %19, %cst_26 {dimension_numbers = #tpu.dot_dimension_numbers<[1], [0], [0], [1], [0, 0, 1, 1], [], []>} : vector<142x3xbf16>, vector<3x32xbf16>, vector<142x32xf32> -> vector<142x32xf32>
    %c0_27 = arith.constant 0 : index
    %c0_28 = arith.constant 0 : index
    %21 = vector.load %arg6[%c0_27, %c0_28] : memref<142x32xf32, #tpu.memory_space<vmem>>, vector<142x32xf32>
    %22 = arith.addf %21, %20 : vector<142x32xf32>
    %c0_29 = arith.constant 0 : index
    %c0_30 = arith.constant 0 : index
    %23 = vector.load %arg6[%c0_29, %c0_30] : memref<142x32xf32, #tpu.memory_space<vmem>>, vector<142x32xf32>
    tpu.vector_store %arg6[%c0_29, %c0_30], %22 {strides = array<i32>} : memref<142x32xf32, #tpu.memory_space<vmem>>, vector<142x32xf32>,
    %c0_31 = arith.constant 0 : index
    %c18 = arith.constant 18 : index
    %c0_32 = arith.constant 0 : index
    %24 = vector.load %arg1[%c0_31, %c18, %c0_32] : memref<1x324x3xbf16, #tpu.memory_space<vmem>>, vector<1x142x3xbf16>
    %25 = vector.shape_cast %24 : vector<1x142x3xbf16> to vector<142x3xbf16>
    %c3 = arith.constant 3 : index
    %c0_33 = arith.constant 0 : index
    %c0_34 = arith.constant 0 : index
    %26 = vector.load %arg2[%c3, %c0_33, %c0_34] : memref<9x3x32xbf16, #tpu.memory_space<vmem>>, vector<1x3x32xbf16>
    %27 = vector.shape_cast %26 : vector<1x3x32xbf16> to vector<3x32xbf16>
    %cst_35 = arith.constant dense<0.000000e+00> : vector<142x32xf32>
    %28 = tpu.matmul %25, %27, %cst_35 {dimension_numbers = #tpu.dot_dimension_numbers<[1], [0], [0], [1], [0, 0, 1, 1], [], []>} : vector<142x3xbf16>, vector<3x32xbf16>, vector<142x32xf32> -> vector<142x32xf32>
    %c0_36 = arith.constant 0 : index
    %c0_37 = arith.constant 0 : index
    %29 = vector.load %arg6[%c0_36, %c0_37] : memref<142x32xf32, #tpu.memory_space<vmem>>, vector<142x32xf32>
    %30 = arith.addf %29, %28 : vector<142x32xf32>
    %c0_38 = arith.constant 0 : index
    %c0_39 = arith.constant 0 : index
    %31 = vector.load %arg6[%c0_38, %c0_39] : memref<142x32xf32, #tpu.memory_space<vmem>>, vector<142x32xf32>
    tpu.vector_store %arg6[%c0_38, %c0_39], %30 {strides = array<i32>} : memref<142x32xf32, #tpu.memory_space<vmem>>, vector<142x32xf32>,
    %c0_40 = arith.constant 0 : index
    %c19 = arith.constant 19 : index
    %c0_41 = arith.constant 0 : index
    %32 = vector.load %arg1[%c0_40, %c19, %c0_41] : memref<1x324x3xbf16, #tpu.memory_space<vmem>>, vector<1x142x3xbf16>
    %33 = vector.shape_cast %32 : vector<1x142x3xbf16> to vector<142x3xbf16>
    %c4 = arith.constant 4 : index
    %c0_42 = arith.constant 0 : index
    %c0_43 = arith.constant 0 : index
    %34 = vector.load %arg2[%c4, %c0_42, %c0_43] : memref<9x3x32xbf16, #tpu.memory_space<vmem>>, vector<1x3x32xbf16>
    %35 = vector.shape_cast %34 : vector<1x3x32xbf16> to vector<3x32xbf16>
    %cst_44 = arith.constant dense<0.000000e+00> : vector<142x32xf32>
    %36 = tpu.matmul %33, %35, %cst_44 {dimension_numbers = #tpu.dot_dimension_numbers<[1], [0], [0], [1], [0, 0, 1, 1], [], []>} : vector<142x3xbf16>, vector<3x32xbf16>, vector<142x32xf32> -> vector<142x32xf32>
    %c0_45 = arith.constant 0 : index
    %c0_46 = arith.constant 0 : index
    %37 = vector.load %arg6[%c0_45, %c0_46] : memref<142x32xf32, #tpu.memory_space<vmem>>, vector<142x32xf32>
    %38 = arith.addf %37, %36 : vector<142x32xf32>
    %c0_47 = arith.constant 0 : index
    %c0_48 = arith.constant 0 : index
    %39 = vector.load %arg6[%c0_47, %c0_48] : memref<142x32xf32, #tpu.memory_space<vmem>>, vector<142x32xf32>
    tpu.vector_store %arg6[%c0_47, %c0_48], %38 {strides = array<i32>} : memref<142x32xf32, #tpu.memory_space<vmem>>, vector<142x32xf32>,
    %c0_49 = arith.constant 0 : index
    %c20 = arith.constant 20 : index
    %c0_50 = arith.constant 0 : index
    %40 = vector.load %arg1[%c0_49, %c20, %c0_50] : memref<1x324x3xbf16, #tpu.memory_space<vmem>>, vector<1x142x3xbf16>
    %41 = vector.shape_cast %40 : vector<1x142x3xbf16> to vector<142x3xbf16>
    %c5 = arith.constant 5 : index
    %c0_51 = arith.constant 0 : index
    %c0_52 = arith.constant 0 : index
    %42 = vector.load %arg2[%c5, %c0_51, %c0_52] : memref<9x3x32xbf16, #tpu.memory_space<vmem>>, vector<1x3x32xbf16>
    %43 = vector.shape_cast %42 : vector<1x3x32xbf16> to vector<3x32xbf16>
    %cst_53 = arith.constant dense<0.000000e+00> : vector<142x32xf32>
    %44 = tpu.matmul %41, %43, %cst_53 {dimension_numbers = #tpu.dot_dimension_numbers<[1], [0], [0], [1], [0, 0, 1, 1], [], []>} : vector<142x3xbf16>, vector<3x32xbf16>, vector<142x32xf32> -> vector<142x32xf32>
    %c0_54 = arith.constant 0 : index
    %c0_55 = arith.constant 0 : index
    %45 = vector.load %arg6[%c0_54, %c0_55] : memref<142x32xf32, #tpu.memory_space<vmem>>, vector<142x32xf32>
    %46 = arith.addf %45, %44 : vector<142x32xf32>
    %c0_56 = arith.constant 0 : index
    %c0_57 = arith.constant 0 : index
    %47 = vector.load %arg6[%c0_56, %c0_57] : memref<142x32xf32, #tpu.memory_space<vmem>>, vector<142x32xf32>
    tpu.vector_store %arg6[%c0_56, %c0_57], %46 {strides = array<i32>} : memref<142x32xf32, #tpu.memory_space<vmem>>, vector<142x32xf32>,
    %c0_58 = arith.constant 0 : index
    %c36 = arith.constant 36 : index
    %c0_59 = arith.constant 0 : index
    %48 = vector.load %arg1[%c0_58, %c36, %c0_59] : memref<1x324x3xbf16, #tpu.memory_space<vmem>>, vector<1x142x3xbf16>
    %49 = vector.shape_cast %48 : vector<1x142x3xbf16> to vector<142x3xbf16>
    %c6 = arith.constant 6 : index
    %c0_60 = arith.constant 0 : index
    %c0_61 = arith.constant 0 : index
    %50 = vector.load %arg2[%c6, %c0_60, %c0_61] : memref<9x3x32xbf16, #tpu.memory_space<vmem>>, vector<1x3x32xbf16>
    %51 = vector.shape_cast %50 : vector<1x3x32xbf16> to vector<3x32xbf16>
    %cst_62 = arith.constant dense<0.000000e+00> : vector<142x32xf32>
    %52 = tpu.matmul %49, %51, %cst_62 {dimension_numbers = #tpu.dot_dimension_numbers<[1], [0], [0], [1], [0, 0, 1, 1], [], []>} : vector<142x3xbf16>, vector<3x32xbf16>, vector<142x32xf32> -> vector<142x32xf32>
    %c0_63 = arith.constant 0 : index
    %c0_64 = arith.constant 0 : index
    %53 = vector.load %arg6[%c0_63, %c0_64] : memref<142x32xf32, #tpu.memory_space<vmem>>, vector<142x32xf32>
    %54 = arith.addf %53, %52 : vector<142x32xf32>
    %c0_65 = arith.constant 0 : index
    %c0_66 = arith.constant 0 : index
    %55 = vector.load %arg6[%c0_65, %c0_66] : memref<142x32xf32, #tpu.memory_space<vmem>>, vector<142x32xf32>
    tpu.vector_store %arg6[%c0_65, %c0_66], %54 {strides = array<i32>} : memref<142x32xf32, #tpu.memory_space<vmem>>, vector<142x32xf32>,
    %c0_67 = arith.constant 0 : index
    %c37 = arith.constant 37 : index
    %c0_68 = arith.constant 0 : index
    %56 = vector.load %arg1[%c0_67, %c37, %c0_68] : memref<1x324x3xbf16, #tpu.memory_space<vmem>>, vector<1x142x3xbf16>
    %57 = vector.shape_cast %56 : vector<1x142x3xbf16> to vector<142x3xbf16>
    %c7 = arith.constant 7 : index
    %c0_69 = arith.constant 0 : index
    %c0_70 = arith.constant 0 : index
    %58 = vector.load %arg2[%c7, %c0_69, %c0_70] : memref<9x3x32xbf16, #tpu.memory_space<vmem>>, vector<1x3x32xbf16>
    %59 = vector.shape_cast %58 : vector<1x3x32xbf16> to vector<3x32xbf16>
    %cst_71 = arith.constant dense<0.000000e+00> : vector<142x32xf32>
    %60 = tpu.matmul %57, %59, %cst_71 {dimension_numbers = #tpu.dot_dimension_numbers<[1], [0], [0], [1], [0, 0, 1, 1], [], []>} : vector<142x3xbf16>, vector<3x32xbf16>, vector<142x32xf32> -> vector<142x32xf32>
    %c0_72 = arith.constant 0 : index
    %c0_73 = arith.constant 0 : index
    %61 = vector.load %arg6[%c0_72, %c0_73] : memref<142x32xf32, #tpu.memory_space<vmem>>, vector<142x32xf32>
    %62 = arith.addf %61, %60 : vector<142x32xf32>
    %c0_74 = arith.constant 0 : index
    %c0_75 = arith.constant 0 : index
    %63 = vector.load %arg6[%c0_74, %c0_75] : memref<142x32xf32, #tpu.memory_space<vmem>>, vector<142x32xf32>
    tpu.vector_store %arg6[%c0_74, %c0_75], %62 {strides = array<i32>} : memref<142x32xf32, #tpu.memory_space<vmem>>, vector<142x32xf32>,
    %c0_76 = arith.constant 0 : index
    %c38 = arith.constant 38 : index
    %c0_77 = arith.constant 0 : index
    %64 = vector.load %arg1[%c0_76, %c38, %c0_77] : memref<1x324x3xbf16, #tpu.memory_space<vmem>>, vector<1x142x3xbf16>
    %65 = vector.shape_cast %64 : vector<1x142x3xbf16> to vector<142x3xbf16>
    %c8 = arith.constant 8 : index
    %c0_78 = arith.constant 0 : index
    %c0_79 = arith.constant 0 : index
    %66 = vector.load %arg2[%c8, %c0_78, %c0_79] : memref<9x3x32xbf16, #tpu.memory_space<vmem>>, vector<1x3x32xbf16>
    %67 = vector.shape_cast %66 : vector<1x3x32xbf16> to vector<3x32xbf16>
    %cst_80 = arith.constant dense<0.000000e+00> : vector<142x32xf32>
    %68 = tpu.matmul %65, %67, %cst_80 {dimension_numbers = #tpu.dot_dimension_numbers<[1], [0], [0], [1], [0, 0, 1, 1], [], []>} : vector<142x3xbf16>, vector<3x32xbf16>, vector<142x32xf32> -> vector<142x32xf32>
    %c0_81 = arith.constant 0 : index
    %c0_82 = arith.constant 0 : index
    %69 = vector.load %arg6[%c0_81, %c0_82] : memref<142x32xf32, #tpu.memory_space<vmem>>, vector<142x32xf32>
    %70 = arith.addf %69, %68 : vector<142x32xf32>
    %c0_83 = arith.constant 0 : index
    %c0_84 = arith.constant 0 : index
    %71 = vector.load %arg6[%c0_83, %c0_84] : memref<142x32xf32, #tpu.memory_space<vmem>>, vector<142x32xf32>
    tpu.vector_store %arg6[%c0_83, %c0_84], %70 {strides = array<i32>} : memref<142x32xf32, #tpu.memory_space<vmem>>, vector<142x32xf32>,
    %c0_85 = arith.constant 0 : index
    %c0_86 = arith.constant 0 : index
    %72 = vector.load %arg6[%c0_85, %c0_86] : memref<142x32xf32, #tpu.memory_space<vmem>>, vector<16x32xf32>
    %73 = vector.broadcast %0 : vector<1x32xf32> to vector<16x32xf32>
    %74 = arith.mulf %72, %73 : vector<16x32xf32>
    %75 = vector.broadcast %1 : vector<1x32xf32> to vector<16x32xf32>
    %76 = arith.addf %74, %75 : vector<16x32xf32>
    %cst_87 = arith.constant 0.000000e+00 : f32
    %77 = vector.broadcast %cst_87 : f32 to vector<16x32xf32>
    %78 = arith.maximumf %76, %77 : vector<16x32xf32>
    %79 = arith.truncf %78 : vector<16x32xf32> to vector<16x32xbf16>
    %c0_88 = arith.constant 0 : index
    %c0_89 = arith.constant 0 : index
    %c0_90 = arith.constant 0 : index
    %c0_91 = arith.constant 0 : index
    %80 = vector.load %arg5[%c0_88, %c0_89, %c0_90, %c0_91] : memref<1x16x16x32xbf16, #tpu.memory_space<vmem>>, vector<1x1x16x32xbf16>
    %81 = vector.shape_cast %80 : vector<1x1x16x32xbf16> to vector<16x32xbf16>
    %82 = vector.shape_cast %79 : vector<16x32xbf16> to vector<1x1x16x32xbf16>
    tpu.vector_store %arg5[%c0_88, %c0_89, %c0_90, %c0_91], %82 {strides = array<i32>} : memref<1x16x16x32xbf16, #tpu.memory_space<vmem>>, vector<1x1x16x32xbf16>,
    %c18_92 = arith.constant 18 : index
    %c0_93 = arith.constant 0 : index
    %83 = vector.load %arg6[%c18_92, %c0_93] : memref<142x32xf32, #tpu.memory_space<vmem>>, vector<16x32xf32>
    %84 = vector.broadcast %0 : vector<1x32xf32> to vector<16x32xf32>
    %85 = arith.mulf %83, %84 : vector<16x32xf32>
    %86 = vector.broadcast %1 : vector<1x32xf32> to vector<16x32xf32>
    %87 = arith.addf %85, %86 : vector<16x32xf32>
    %cst_94 = arith.constant 0.000000e+00 : f32
    %88 = vector.broadcast %cst_94 : f32 to vector<16x32xf32>
    %89 = arith.maximumf %87, %88 : vector<16x32xf32>
    %90 = arith.truncf %89 : vector<16x32xf32> to vector<16x32xbf16>
    %c0_95 = arith.constant 0 : index
    %c1_96 = arith.constant 1 : index
    %c0_97 = arith.constant 0 : index
    %c0_98 = arith.constant 0 : index
    %91 = vector.load %arg5[%c0_95, %c1_96, %c0_97, %c0_98] : memref<1x16x16x32xbf16, #tpu.memory_space<vmem>>, vector<1x1x16x32xbf16>
    %92 = vector.shape_cast %91 : vector<1x1x16x32xbf16> to vector<16x32xbf16>
    %93 = vector.shape_cast %90 : vector<16x32xbf16> to vector<1x1x16x32xbf16>
    tpu.vector_store %arg5[%c0_95, %c1_96, %c0_97, %c0_98], %93 {strides = array<i32>} : memref<1x16x16x32xbf16, #tpu.memory_space<vmem>>, vector<1x1x16x32xbf16>,
    %c36_99 = arith.constant 36 : index
    %c0_100 = arith.constant 0 : index
    %94 = vector.load %arg6[%c36_99, %c0_100] : memref<142x32xf32, #tpu.memory_space<vmem>>, vector<16x32xf32>
    %95 = vector.broadcast %0 : vector<1x32xf32> to vector<16x32xf32>
    %96 = arith.mulf %94, %95 : vector<16x32xf32>
    %97 = vector.broadcast %1 : vector<1x32xf32> to vector<16x32xf32>
    %98 = arith.addf %96, %97 : vector<16x32xf32>
    %cst_101 = arith.constant 0.000000e+00 : f32
    %99 = vector.broadcast %cst_101 : f32 to vector<16x32xf32>
    %100 = arith.maximumf %98, %99 : vector<16x32xf32>
    %101 = arith.truncf %100 : vector<16x32xf32> to vector<16x32xbf16>
    %c0_102 = arith.constant 0 : index
    %c2_103 = arith.constant 2 : index
    %c0_104 = arith.constant 0 : index
    %c0_105 = arith.constant 0 : index
    %102 = vector.load %arg5[%c0_102, %c2_103, %c0_104, %c0_105] : memref<1x16x16x32xbf16, #tpu.memory_space<vmem>>, vector<1x1x16x32xbf16>
    %103 = vector.shape_cast %102 : vector<1x1x16x32xbf16> to vector<16x32xbf16>
    %104 = vector.shape_cast %101 : vector<16x32xbf16> to vector<1x1x16x32xbf16>
    tpu.vector_store %arg5[%c0_102, %c2_103, %c0_104, %c0_105], %104 {strides = array<i32>} : memref<1x16x16x32xbf16, #tpu.memory_space<vmem>>, vector<1x1x16x32xbf16>,
    %c54 = arith.constant 54 : index
    %c0_106 = arith.constant 0 : index
    %105 = vector.load %arg6[%c54, %c0_106] : memref<142x32xf32, #tpu.memory_space<vmem>>, vector<16x32xf32>
    %106 = vector.broadcast %0 : vector<1x32xf32> to vector<16x32xf32>
    %107 = arith.mulf %105, %106 : vector<16x32xf32>
    %108 = vector.broadcast %1 : vector<1x32xf32> to vector<16x32xf32>
    %109 = arith.addf %107, %108 : vector<16x32xf32>
    %cst_107 = arith.constant 0.000000e+00 : f32
    %110 = vector.broadcast %cst_107 : f32 to vector<16x32xf32>
    %111 = arith.maximumf %109, %110 : vector<16x32xf32>
    %112 = arith.truncf %111 : vector<16x32xf32> to vector<16x32xbf16>
    %c0_108 = arith.constant 0 : index
    %c3_109 = arith.constant 3 : index
    %c0_110 = arith.constant 0 : index
    %c0_111 = arith.constant 0 : index
    %113 = vector.load %arg5[%c0_108, %c3_109, %c0_110, %c0_111] : memref<1x16x16x32xbf16, #tpu.memory_space<vmem>>, vector<1x1x16x32xbf16>
    %114 = vector.shape_cast %113 : vector<1x1x16x32xbf16> to vector<16x32xbf16>
    %115 = vector.shape_cast %112 : vector<16x32xbf16> to vector<1x1x16x32xbf16>
    tpu.vector_store %arg5[%c0_108, %c3_109, %c0_110, %c0_111], %115 {strides = array<i32>} : memref<1x16x16x32xbf16, #tpu.memory_space<vmem>>, vector<1x1x16x32xbf16>,
    %c72 = arith.constant 72 : index
    %c0_112 = arith.constant 0 : index
    %116 = vector.load %arg6[%c72, %c0_112] : memref<142x32xf32, #tpu.memory_space<vmem>>, vector<16x32xf32>
    %117 = vector.broadcast %0 : vector<1x32xf32> to vector<16x32xf32>
    %118 = arith.mulf %116, %117 : vector<16x32xf32>
    %119 = vector.broadcast %1 : vector<1x32xf32> to vector<16x32xf32>
    %120 = arith.addf %118, %119 : vector<16x32xf32>
    %cst_113 = arith.constant 0.000000e+00 : f32
    %121 = vector.broadcast %cst_113 : f32 to vector<16x32xf32>
    %122 = arith.maximumf %120, %121 : vector<16x32xf32>
    %123 = arith.truncf %122 : vector<16x32xf32> to vector<16x32xbf16>
    %c0_114 = arith.constant 0 : index
    %c4_115 = arith.constant 4 : index
    %c0_116 = arith.constant 0 : index
    %c0_117 = arith.constant 0 : index
    %124 = vector.load %arg5[%c0_114, %c4_115, %c0_116, %c0_117] : memref<1x16x16x32xbf16, #tpu.memory_space<vmem>>, vector<1x1x16x32xbf16>
    %125 = vector.shape_cast %124 : vector<1x1x16x32xbf16> to vector<16x32xbf16>
    %126 = vector.shape_cast %123 : vector<16x32xbf16> to vector<1x1x16x32xbf16>
    tpu.vector_store %arg5[%c0_114, %c4_115, %c0_116, %c0_117], %126 {strides = array<i32>} : memref<1x16x16x32xbf16, #tpu.memory_space<vmem>>, vector<1x1x16x32xbf16>,
    %c90 = arith.constant 90 : index
    %c0_118 = arith.constant 0 : index
    %127 = vector.load %arg6[%c90, %c0_118] : memref<142x32xf32, #tpu.memory_space<vmem>>, vector<16x32xf32>
    %128 = vector.broadcast %0 : vector<1x32xf32> to vector<16x32xf32>
    %129 = arith.mulf %127, %128 : vector<16x32xf32>
    %130 = vector.broadcast %1 : vector<1x32xf32> to vector<16x32xf32>
    %131 = arith.addf %129, %130 : vector<16x32xf32>
    %cst_119 = arith.constant 0.000000e+00 : f32
    %132 = vector.broadcast %cst_119 : f32 to vector<16x32xf32>
    %133 = arith.maximumf %131, %132 : vector<16x32xf32>
    %134 = arith.truncf %133 : vector<16x32xf32> to vector<16x32xbf16>
    %c0_120 = arith.constant 0 : index
    %c5_121 = arith.constant 5 : index
    %c0_122 = arith.constant 0 : index
    %c0_123 = arith.constant 0 : index
    %135 = vector.load %arg5[%c0_120, %c5_121, %c0_122, %c0_123] : memref<1x16x16x32xbf16, #tpu.memory_space<vmem>>, vector<1x1x16x32xbf16>
    %136 = vector.shape_cast %135 : vector<1x1x16x32xbf16> to vector<16x32xbf16>
    %137 = vector.shape_cast %134 : vector<16x32xbf16> to vector<1x1x16x32xbf16>
    tpu.vector_store %arg5[%c0_120, %c5_121, %c0_122, %c0_123], %137 {strides = array<i32>} : memref<1x16x16x32xbf16, #tpu.memory_space<vmem>>, vector<1x1x16x32xbf16>,
    %c108 = arith.constant 108 : index
    %c0_124 = arith.constant 0 : index
    %138 = vector.load %arg6[%c108, %c0_124] : memref<142x32xf32, #tpu.memory_space<vmem>>, vector<16x32xf32>
    %139 = vector.broadcast %0 : vector<1x32xf32> to vector<16x32xf32>
    %140 = arith.mulf %138, %139 : vector<16x32xf32>
    %141 = vector.broadcast %1 : vector<1x32xf32> to vector<16x32xf32>
    %142 = arith.addf %140, %141 : vector<16x32xf32>
    %cst_125 = arith.constant 0.000000e+00 : f32
    %143 = vector.broadcast %cst_125 : f32 to vector<16x32xf32>
    %144 = arith.maximumf %142, %143 : vector<16x32xf32>
    %145 = arith.truncf %144 : vector<16x32xf32> to vector<16x32xbf16>
    %c0_126 = arith.constant 0 : index
    %c6_127 = arith.constant 6 : index
    %c0_128 = arith.constant 0 : index
    %c0_129 = arith.constant 0 : index
    %146 = vector.load %arg5[%c0_126, %c6_127, %c0_128, %c0_129] : memref<1x16x16x32xbf16, #tpu.memory_space<vmem>>, vector<1x1x16x32xbf16>
    %147 = vector.shape_cast %146 : vector<1x1x16x32xbf16> to vector<16x32xbf16>
    %148 = vector.shape_cast %145 : vector<16x32xbf16> to vector<1x1x16x32xbf16>
    tpu.vector_store %arg5[%c0_126, %c6_127, %c0_128, %c0_129], %148 {strides = array<i32>} : memref<1x16x16x32xbf16, #tpu.memory_space<vmem>>, vector<1x1x16x32xbf16>,
    %c126 = arith.constant 126 : index
    %c0_130 = arith.constant 0 : index
    %149 = vector.load %arg6[%c126, %c0_130] : memref<142x32xf32, #tpu.memory_space<vmem>>, vector<16x32xf32>
    %150 = vector.broadcast %0 : vector<1x32xf32> to vector<16x32xf32>
    %151 = arith.mulf %149, %150 : vector<16x32xf32>
    %152 = vector.broadcast %1 : vector<1x32xf32> to vector<16x32xf32>
    %153 = arith.addf %151, %152 : vector<16x32xf32>
    %cst_131 = arith.constant 0.000000e+00 : f32
    %154 = vector.broadcast %cst_131 : f32 to vector<16x32xf32>
    %155 = arith.maximumf %153, %154 : vector<16x32xf32>
    %156 = arith.truncf %155 : vector<16x32xf32> to vector<16x32xbf16>
    %c0_132 = arith.constant 0 : index
    %c7_133 = arith.constant 7 : index
    %c0_134 = arith.constant 0 : index
    %c0_135 = arith.constant 0 : index
    %157 = vector.load %arg5[%c0_132, %c7_133, %c0_134, %c0_135] : memref<1x16x16x32xbf16, #tpu.memory_space<vmem>>, vector<1x1x16x32xbf16>
    %158 = vector.shape_cast %157 : vector<1x1x16x32xbf16> to vector<16x32xbf16>
    %159 = vector.shape_cast %156 : vector<16x32xbf16> to vector<1x1x16x32xbf16>
    tpu.vector_store %arg5[%c0_132, %c7_133, %c0_134, %c0_135], %159 {strides = array<i32>} : memref<1x16x16x32xbf16, #tpu.memory_space<vmem>>, vector<1x1x16x32xbf16>,
    %c0_136 = arith.constant 0 : index
    %c144 = arith.constant 144 : index
    %c0_137 = arith.constant 0 : index
    %160 = vector.load %arg1[%c0_136, %c144, %c0_137] : memref<1x324x3xbf16, #tpu.memory_space<vmem>>, vector<1x142x3xbf16>
    %161 = vector.shape_cast %160 : vector<1x142x3xbf16> to vector<142x3xbf16>
    %c0_138 = arith.constant 0 : index
    %c0_139 = arith.constant 0 : index
    %c0_140 = arith.constant 0 : index
    %162 = vector.load %arg2[%c0_138, %c0_139, %c0_140] : memref<9x3x32xbf16, #tpu.memory_space<vmem>>, vector<1x3x32xbf16>
    %163 = vector.shape_cast %162 : vector<1x3x32xbf16> to vector<3x32xbf16>
    %cst_141 = arith.constant dense<0.000000e+00> : vector<142x32xf32>
    %164 = tpu.matmul %161, %163, %cst_141 {dimension_numbers = #tpu.dot_dimension_numbers<[1], [0], [0], [1], [0, 0, 1, 1], [], []>} : vector<142x3xbf16>, vector<3x32xbf16>, vector<142x32xf32> -> vector<142x32xf32>
    %c0_142 = arith.constant 0 : index
    %c0_143 = arith.constant 0 : index
    %165 = vector.load %arg6[%c0_142, %c0_143] : memref<142x32xf32, #tpu.memory_space<vmem>>, vector<142x32xf32>
    tpu.vector_store %arg6[%c0_142, %c0_143], %164 {strides = array<i32>} : memref<142x32xf32, #tpu.memory_space<vmem>>, vector<142x32xf32>,
    %c0_144 = arith.constant 0 : index
    %c145 = arith.constant 145 : index
    %c0_145 = arith.constant 0 : index
    %166 = vector.load %arg1[%c0_144, %c145, %c0_145] : memref<1x324x3xbf16, #tpu.memory_space<vmem>>, vector<1x142x3xbf16>
    %167 = vector.shape_cast %166 : vector<1x142x3xbf16> to vector<142x3xbf16>
    %c1_146 = arith.constant 1 : index
    %c0_147 = arith.constant 0 : index
    %c0_148 = arith.constant 0 : index
    %168 = vector.load %arg2[%c1_146, %c0_147, %c0_148] : memref<9x3x32xbf16, #tpu.memory_space<vmem>>, vector<1x3x32xbf16>
    %169 = vector.shape_cast %168 : vector<1x3x32xbf16> to vector<3x32xbf16>
    %cst_149 = arith.constant dense<0.000000e+00> : vector<142x32xf32>
    %170 = tpu.matmul %167, %169, %cst_149 {dimension_numbers = #tpu.dot_dimension_numbers<[1], [0], [0], [1], [0, 0, 1, 1], [], []>} : vector<142x3xbf16>, vector<3x32xbf16>, vector<142x32xf32> -> vector<142x32xf32>
    %c0_150 = arith.constant 0 : index
    %c0_151 = arith.constant 0 : index
    %171 = vector.load %arg6[%c0_150, %c0_151] : memref<142x32xf32, #tpu.memory_space<vmem>>, vector<142x32xf32>
    %172 = arith.addf %171, %170 : vector<142x32xf32>
    %c0_152 = arith.constant 0 : index
    %c0_153 = arith.constant 0 : index
    %173 = vector.load %arg6[%c0_152, %c0_153] : memref<142x32xf32, #tpu.memory_space<vmem>>, vector<142x32xf32>
    tpu.vector_store %arg6[%c0_152, %c0_153], %172 {strides = array<i32>} : memref<142x32xf32, #tpu.memory_space<vmem>>, vector<142x32xf32>,
    %c0_154 = arith.constant 0 : index
    %c146 = arith.constant 146 : index
    %c0_155 = arith.constant 0 : index
    %174 = vector.load %arg1[%c0_154, %c146, %c0_155] : memref<1x324x3xbf16, #tpu.memory_space<vmem>>, vector<1x142x3xbf16>
    %175 = vector.shape_cast %174 : vector<1x142x3xbf16> to vector<142x3xbf16>
    %c2_156 = arith.constant 2 : index
    %c0_157 = arith.constant 0 : index
    %c0_158 = arith.constant 0 : index
    %176 = vector.load %arg2[%c2_156, %c0_157, %c0_158] : memref<9x3x32xbf16, #tpu.memory_space<vmem>>, vector<1x3x32xbf16>
    %177 = vector.shape_cast %176 : vector<1x3x32xbf16> to vector<3x32xbf16>
    %cst_159 = arith.constant dense<0.000000e+00> : vector<142x32xf32>
    %178 = tpu.matmul %175, %177, %cst_159 {dimension_numbers = #tpu.dot_dimension_numbers<[1], [0], [0], [1], [0, 0, 1, 1], [], []>} : vector<142x3xbf16>, vector<3x32xbf16>, vector<142x32xf32> -> vector<142x32xf32>
    %c0_160 = arith.constant 0 : index
    %c0_161 = arith.constant 0 : index
    %179 = vector.load %arg6[%c0_160, %c0_161] : memref<142x32xf32, #tpu.memory_space<vmem>>, vector<142x32xf32>
    %180 = arith.addf %179, %178 : vector<142x32xf32>
    %c0_162 = arith.constant 0 : index
    %c0_163 = arith.constant 0 : index
    %181 = vector.load %arg6[%c0_162, %c0_163] : memref<142x32xf32, #tpu.memory_space<vmem>>, vector<142x32xf32>
    tpu.vector_store %arg6[%c0_162, %c0_163], %180 {strides = array<i32>} : memref<142x32xf32, #tpu.memory_space<vmem>>, vector<142x32xf32>,
    %c0_164 = arith.constant 0 : index
    %c162 = arith.constant 162 : index
    %c0_165 = arith.constant 0 : index
    %182 = vector.load %arg1[%c0_164, %c162, %c0_165] : memref<1x324x3xbf16, #tpu.memory_space<vmem>>, vector<1x142x3xbf16>
    %183 = vector.shape_cast %182 : vector<1x142x3xbf16> to vector<142x3xbf16>
    %c3_166 = arith.constant 3 : index
    %c0_167 = arith.constant 0 : index
    %c0_168 = arith.constant 0 : index
    %184 = vector.load %arg2[%c3_166, %c0_167, %c0_168] : memref<9x3x32xbf16, #tpu.memory_space<vmem>>, vector<1x3x32xbf16>
    %185 = vector.shape_cast %184 : vector<1x3x32xbf16> to vector<3x32xbf16>
    %cst_169 = arith.constant dense<0.000000e+00> : vector<142x32xf32>
    %186 = tpu.matmul %183, %185, %cst_169 {dimension_numbers = #tpu.dot_dimension_numbers<[1], [0], [0], [1], [0, 0, 1, 1], [], []>} : vector<142x3xbf16>, vector<3x32xbf16>, vector<142x32xf32> -> vector<142x32xf32>
    %c0_170 = arith.constant 0 : index
    %c0_171 = arith.constant 0 : index
    %187 = vector.load %arg6[%c0_170, %c0_171] : memref<142x32xf32, #tpu.memory_space<vmem>>, vector<142x32xf32>
    %188 = arith.addf %187, %186 : vector<142x32xf32>
    %c0_172 = arith.constant 0 : index
    %c0_173 = arith.constant 0 : index
    %189 = vector.load %arg6[%c0_172, %c0_173] : memref<142x32xf32, #tpu.memory_space<vmem>>, vector<142x32xf32>
    tpu.vector_store %arg6[%c0_172, %c0_173], %188 {strides = array<i32>} : memref<142x32xf32, #tpu.memory_space<vmem>>, vector<142x32xf32>,
    %c0_174 = arith.constant 0 : index
    %c163 = arith.constant 163 : index
    %c0_175 = arith.constant 0 : index
    %190 = vector.load %arg1[%c0_174, %c163, %c0_175] : memref<1x324x3xbf16, #tpu.memory_space<vmem>>, vector<1x142x3xbf16>
    %191 = vector.shape_cast %190 : vector<1x142x3xbf16> to vector<142x3xbf16>
    %c4_176 = arith.constant 4 : index
    %c0_177 = arith.constant 0 : index
    %c0_178 = arith.constant 0 : index
    %192 = vector.load %arg2[%c4_176, %c0_177, %c0_178] : memref<9x3x32xbf16, #tpu.memory_space<vmem>>, vector<1x3x32xbf16>
    %193 = vector.shape_cast %192 : vector<1x3x32xbf16> to vector<3x32xbf16>
    %cst_179 = arith.constant dense<0.000000e+00> : vector<142x32xf32>
    %194 = tpu.matmul %191, %193, %cst_179 {dimension_numbers = #tpu.dot_dimension_numbers<[1], [0], [0], [1], [0, 0, 1, 1], [], []>} : vector<142x3xbf16>, vector<3x32xbf16>, vector<142x32xf32> -> vector<142x32xf32>
    %c0_180 = arith.constant 0 : index
    %c0_181 = arith.constant 0 : index
    %195 = vector.load %arg6[%c0_180, %c0_181] : memref<142x32xf32, #tpu.memory_space<vmem>>, vector<142x32xf32>
    %196 = arith.addf %195, %194 : vector<142x32xf32>
    %c0_182 = arith.constant 0 : index
    %c0_183 = arith.constant 0 : index
    %197 = vector.load %arg6[%c0_182, %c0_183] : memref<142x32xf32, #tpu.memory_space<vmem>>, vector<142x32xf32>
    tpu.vector_store %arg6[%c0_182, %c0_183], %196 {strides = array<i32>} : memref<142x32xf32, #tpu.memory_space<vmem>>, vector<142x32xf32>,
    %c0_184 = arith.constant 0 : index
    %c164 = arith.constant 164 : index
    %c0_185 = arith.constant 0 : index
    %198 = vector.load %arg1[%c0_184, %c164, %c0_185] : memref<1x324x3xbf16, #tpu.memory_space<vmem>>, vector<1x142x3xbf16>
    %199 = vector.shape_cast %198 : vector<1x142x3xbf16> to vector<142x3xbf16>
    %c5_186 = arith.constant 5 : index
    %c0_187 = arith.constant 0 : index
    %c0_188 = arith.constant 0 : index
    %200 = vector.load %arg2[%c5_186, %c0_187, %c0_188] : memref<9x3x32xbf16, #tpu.memory_space<vmem>>, vector<1x3x32xbf16>
    %201 = vector.shape_cast %200 : vector<1x3x32xbf16> to vector<3x32xbf16>
    %cst_189 = arith.constant dense<0.000000e+00> : vector<142x32xf32>
    %202 = tpu.matmul %199, %201, %cst_189 {dimension_numbers = #tpu.dot_dimension_numbers<[1], [0], [0], [1], [0, 0, 1, 1], [], []>} : vector<142x3xbf16>, vector<3x32xbf16>, vector<142x32xf32> -> vector<142x32xf32>
    %c0_190 = arith.constant 0 : index
    %c0_191 = arith.constant 0 : index
    %203 = vector.load %arg6[%c0_190, %c0_191] : memref<142x32xf32, #tpu.memory_space<vmem>>, vector<142x32xf32>
    %204 = arith.addf %203, %202 : vector<142x32xf32>
    %c0_192 = arith.constant 0 : index
    %c0_193 = arith.constant 0 : index
    %205 = vector.load %arg6[%c0_192, %c0_193] : memref<142x32xf32, #tpu.memory_space<vmem>>, vector<142x32xf32>
    tpu.vector_store %arg6[%c0_192, %c0_193], %204 {strides = array<i32>} : memref<142x32xf32, #tpu.memory_space<vmem>>, vector<142x32xf32>,
    %c0_194 = arith.constant 0 : index
    %c180 = arith.constant 180 : index
    %c0_195 = arith.constant 0 : index
    %206 = vector.load %arg1[%c0_194, %c180, %c0_195] : memref<1x324x3xbf16, #tpu.memory_space<vmem>>, vector<1x142x3xbf16>
    %207 = vector.shape_cast %206 : vector<1x142x3xbf16> to vector<142x3xbf16>
    %c6_196 = arith.constant 6 : index
    %c0_197 = arith.constant 0 : index
    %c0_198 = arith.constant 0 : index
    %208 = vector.load %arg2[%c6_196, %c0_197, %c0_198] : memref<9x3x32xbf16, #tpu.memory_space<vmem>>, vector<1x3x32xbf16>
    %209 = vector.shape_cast %208 : vector<1x3x32xbf16> to vector<3x32xbf16>
    %cst_199 = arith.constant dense<0.000000e+00> : vector<142x32xf32>
    %210 = tpu.matmul %207, %209, %cst_199 {dimension_numbers = #tpu.dot_dimension_numbers<[1], [0], [0], [1], [0, 0, 1, 1], [], []>} : vector<142x3xbf16>, vector<3x32xbf16>, vector<142x32xf32> -> vector<142x32xf32>
    %c0_200 = arith.constant 0 : index
    %c0_201 = arith.constant 0 : index
    %211 = vector.load %arg6[%c0_200, %c0_201] : memref<142x32xf32, #tpu.memory_space<vmem>>, vector<142x32xf32>
    %212 = arith.addf %211, %210 : vector<142x32xf32>
    %c0_202 = arith.constant 0 : index
    %c0_203 = arith.constant 0 : index
    %213 = vector.load %arg6[%c0_202, %c0_203] : memref<142x32xf32, #tpu.memory_space<vmem>>, vector<142x32xf32>
    tpu.vector_store %arg6[%c0_202, %c0_203], %212 {strides = array<i32>} : memref<142x32xf32, #tpu.memory_space<vmem>>, vector<142x32xf32>,
    %c0_204 = arith.constant 0 : index
    %c181 = arith.constant 181 : index
    %c0_205 = arith.constant 0 : index
    %214 = vector.load %arg1[%c0_204, %c181, %c0_205] : memref<1x324x3xbf16, #tpu.memory_space<vmem>>, vector<1x142x3xbf16>
    %215 = vector.shape_cast %214 : vector<1x142x3xbf16> to vector<142x3xbf16>
    %c7_206 = arith.constant 7 : index
    %c0_207 = arith.constant 0 : index
    %c0_208 = arith.constant 0 : index
    %216 = vector.load %arg2[%c7_206, %c0_207, %c0_208] : memref<9x3x32xbf16, #tpu.memory_space<vmem>>, vector<1x3x32xbf16>
    %217 = vector.shape_cast %216 : vector<1x3x32xbf16> to vector<3x32xbf16>
    %cst_209 = arith.constant dense<0.000000e+00> : vector<142x32xf32>
    %218 = tpu.matmul %215, %217, %cst_209 {dimension_numbers = #tpu.dot_dimension_numbers<[1], [0], [0], [1], [0, 0, 1, 1], [], []>} : vector<142x3xbf16>, vector<3x32xbf16>, vector<142x32xf32> -> vector<142x32xf32>
    %c0_210 = arith.constant 0 : index
    %c0_211 = arith.constant 0 : index
    %219 = vector.load %arg6[%c0_210, %c0_211] : memref<142x32xf32, #tpu.memory_space<vmem>>, vector<142x32xf32>
    %220 = arith.addf %219, %218 : vector<142x32xf32>
    %c0_212 = arith.constant 0 : index
    %c0_213 = arith.constant 0 : index
    %221 = vector.load %arg6[%c0_212, %c0_213] : memref<142x32xf32, #tpu.memory_space<vmem>>, vector<142x32xf32>
    tpu.vector_store %arg6[%c0_212, %c0_213], %220 {strides = array<i32>} : memref<142x32xf32, #tpu.memory_space<vmem>>, vector<142x32xf32>,
    %c0_214 = arith.constant 0 : index
    %c182 = arith.constant 182 : index
    %c0_215 = arith.constant 0 : index
    %222 = vector.load %arg1[%c0_214, %c182, %c0_215] : memref<1x324x3xbf16, #tpu.memory_space<vmem>>, vector<1x142x3xbf16>
    %223 = vector.shape_cast %222 : vector<1x142x3xbf16> to vector<142x3xbf16>
    %c8_216 = arith.constant 8 : index
    %c0_217 = arith.constant 0 : index
    %c0_218 = arith.constant 0 : index
    %224 = vector.load %arg2[%c8_216, %c0_217, %c0_218] : memref<9x3x32xbf16, #tpu.memory_space<vmem>>, vector<1x3x32xbf16>
    %225 = vector.shape_cast %224 : vector<1x3x32xbf16> to vector<3x32xbf16>
    %cst_219 = arith.constant dense<0.000000e+00> : vector<142x32xf32>
    %226 = tpu.matmul %223, %225, %cst_219 {dimension_numbers = #tpu.dot_dimension_numbers<[1], [0], [0], [1], [0, 0, 1, 1], [], []>} : vector<142x3xbf16>, vector<3x32xbf16>, vector<142x32xf32> -> vector<142x32xf32>
    %c0_220 = arith.constant 0 : index
    %c0_221 = arith.constant 0 : index
    %227 = vector.load %arg6[%c0_220, %c0_221] : memref<142x32xf32, #tpu.memory_space<vmem>>, vector<142x32xf32>
    %228 = arith.addf %227, %226 : vector<142x32xf32>
    %c0_222 = arith.constant 0 : index
    %c0_223 = arith.constant 0 : index
    %229 = vector.load %arg6[%c0_222, %c0_223] : memref<142x32xf32, #tpu.memory_space<vmem>>, vector<142x32xf32>
    tpu.vector_store %arg6[%c0_222, %c0_223], %228 {strides = array<i32>} : memref<142x32xf32, #tpu.memory_space<vmem>>, vector<142x32xf32>,
    %c0_224 = arith.constant 0 : index
    %c0_225 = arith.constant 0 : index
    %230 = vector.load %arg6[%c0_224, %c0_225] : memref<142x32xf32, #tpu.memory_space<vmem>>, vector<16x32xf32>
    %231 = vector.broadcast %0 : vector<1x32xf32> to vector<16x32xf32>
    %232 = arith.mulf %230, %231 : vector<16x32xf32>
    %233 = vector.broadcast %1 : vector<1x32xf32> to vector<16x32xf32>
    %234 = arith.addf %232, %233 : vector<16x32xf32>
    %cst_226 = arith.constant 0.000000e+00 : f32
    %235 = vector.broadcast %cst_226 : f32 to vector<16x32xf32>
    %236 = arith.maximumf %234, %235 : vector<16x32xf32>
    %237 = arith.truncf %236 : vector<16x32xf32> to vector<16x32xbf16>
    %c0_227 = arith.constant 0 : index
    %c8_228 = arith.constant 8 : index
    %c0_229 = arith.constant 0 : index
    %c0_230 = arith.constant 0 : index
    %238 = vector.load %arg5[%c0_227, %c8_228, %c0_229, %c0_230] : memref<1x16x16x32xbf16, #tpu.memory_space<vmem>>, vector<1x1x16x32xbf16>
    %239 = vector.shape_cast %238 : vector<1x1x16x32xbf16> to vector<16x32xbf16>
    %240 = vector.shape_cast %237 : vector<16x32xbf16> to vector<1x1x16x32xbf16>
    tpu.vector_store %arg5[%c0_227, %c8_228, %c0_229, %c0_230], %240 {strides = array<i32>} : memref<1x16x16x32xbf16, #tpu.memory_space<vmem>>, vector<1x1x16x32xbf16>,
    %c18_231 = arith.constant 18 : index
    %c0_232 = arith.constant 0 : index
    %241 = vector.load %arg6[%c18_231, %c0_232] : memref<142x32xf32, #tpu.memory_space<vmem>>, vector<16x32xf32>
    %242 = vector.broadcast %0 : vector<1x32xf32> to vector<16x32xf32>
    %243 = arith.mulf %241, %242 : vector<16x32xf32>
    %244 = vector.broadcast %1 : vector<1x32xf32> to vector<16x32xf32>
    %245 = arith.addf %243, %244 : vector<16x32xf32>
    %cst_233 = arith.constant 0.000000e+00 : f32
    %246 = vector.broadcast %cst_233 : f32 to vector<16x32xf32>
    %247 = arith.maximumf %245, %246 : vector<16x32xf32>
    %248 = arith.truncf %247 : vector<16x32xf32> to vector<16x32xbf16>
    %c0_234 = arith.constant 0 : index
    %c9 = arith.constant 9 : index
    %c0_235 = arith.constant 0 : index
    %c0_236 = arith.constant 0 : index
    %249 = vector.load %arg5[%c0_234, %c9, %c0_235, %c0_236] : memref<1x16x16x32xbf16, #tpu.memory_space<vmem>>, vector<1x1x16x32xbf16>
    %250 = vector.shape_cast %249 : vector<1x1x16x32xbf16> to vector<16x32xbf16>
    %251 = vector.shape_cast %248 : vector<16x32xbf16> to vector<1x1x16x32xbf16>
    tpu.vector_store %arg5[%c0_234, %c9, %c0_235, %c0_236], %251 {strides = array<i32>} : memref<1x16x16x32xbf16, #tpu.memory_space<vmem>>, vector<1x1x16x32xbf16>,
    %c36_237 = arith.constant 36 : index
    %c0_238 = arith.constant 0 : index
    %252 = vector.load %arg6[%c36_237, %c0_238] : memref<142x32xf32, #tpu.memory_space<vmem>>, vector<16x32xf32>
    %253 = vector.broadcast %0 : vector<1x32xf32> to vector<16x32xf32>
    %254 = arith.mulf %252, %253 : vector<16x32xf32>
    %255 = vector.broadcast %1 : vector<1x32xf32> to vector<16x32xf32>
    %256 = arith.addf %254, %255 : vector<16x32xf32>
    %cst_239 = arith.constant 0.000000e+00 : f32
    %257 = vector.broadcast %cst_239 : f32 to vector<16x32xf32>
    %258 = arith.maximumf %256, %257 : vector<16x32xf32>
    %259 = arith.truncf %258 : vector<16x32xf32> to vector<16x32xbf16>
    %c0_240 = arith.constant 0 : index
    %c10 = arith.constant 10 : index
    %c0_241 = arith.constant 0 : index
    %c0_242 = arith.constant 0 : index
    %260 = vector.load %arg5[%c0_240, %c10, %c0_241, %c0_242] : memref<1x16x16x32xbf16, #tpu.memory_space<vmem>>, vector<1x1x16x32xbf16>
    %261 = vector.shape_cast %260 : vector<1x1x16x32xbf16> to vector<16x32xbf16>
    %262 = vector.shape_cast %259 : vector<16x32xbf16> to vector<1x1x16x32xbf16>
    tpu.vector_store %arg5[%c0_240, %c10, %c0_241, %c0_242], %262 {strides = array<i32>} : memref<1x16x16x32xbf16, #tpu.memory_space<vmem>>, vector<1x1x16x32xbf16>,
    %c54_243 = arith.constant 54 : index
    %c0_244 = arith.constant 0 : index
    %263 = vector.load %arg6[%c54_243, %c0_244] : memref<142x32xf32, #tpu.memory_space<vmem>>, vector<16x32xf32>
    %264 = vector.broadcast %0 : vector<1x32xf32> to vector<16x32xf32>
    %265 = arith.mulf %263, %264 : vector<16x32xf32>
    %266 = vector.broadcast %1 : vector<1x32xf32> to vector<16x32xf32>
    %267 = arith.addf %265, %266 : vector<16x32xf32>
    %cst_245 = arith.constant 0.000000e+00 : f32
    %268 = vector.broadcast %cst_245 : f32 to vector<16x32xf32>
    %269 = arith.maximumf %267, %268 : vector<16x32xf32>
    %270 = arith.truncf %269 : vector<16x32xf32> to vector<16x32xbf16>
    %c0_246 = arith.constant 0 : index
    %c11 = arith.constant 11 : index
    %c0_247 = arith.constant 0 : index
    %c0_248 = arith.constant 0 : index
    %271 = vector.load %arg5[%c0_246, %c11, %c0_247, %c0_248] : memref<1x16x16x32xbf16, #tpu.memory_space<vmem>>, vector<1x1x16x32xbf16>
    %272 = vector.shape_cast %271 : vector<1x1x16x32xbf16> to vector<16x32xbf16>
    %273 = vector.shape_cast %270 : vector<16x32xbf16> to vector<1x1x16x32xbf16>
    tpu.vector_store %arg5[%c0_246, %c11, %c0_247, %c0_248], %273 {strides = array<i32>} : memref<1x16x16x32xbf16, #tpu.memory_space<vmem>>, vector<1x1x16x32xbf16>,
    %c72_249 = arith.constant 72 : index
    %c0_250 = arith.constant 0 : index
    %274 = vector.load %arg6[%c72_249, %c0_250] : memref<142x32xf32, #tpu.memory_space<vmem>>, vector<16x32xf32>
    %275 = vector.broadcast %0 : vector<1x32xf32> to vector<16x32xf32>
    %276 = arith.mulf %274, %275 : vector<16x32xf32>
    %277 = vector.broadcast %1 : vector<1x32xf32> to vector<16x32xf32>
    %278 = arith.addf %276, %277 : vector<16x32xf32>
    %cst_251 = arith.constant 0.000000e+00 : f32
    %279 = vector.broadcast %cst_251 : f32 to vector<16x32xf32>
    %280 = arith.maximumf %278, %279 : vector<16x32xf32>
    %281 = arith.truncf %280 : vector<16x32xf32> to vector<16x32xbf16>
    %c0_252 = arith.constant 0 : index
    %c12 = arith.constant 12 : index
    %c0_253 = arith.constant 0 : index
    %c0_254 = arith.constant 0 : index
    %282 = vector.load %arg5[%c0_252, %c12, %c0_253, %c0_254] : memref<1x16x16x32xbf16, #tpu.memory_space<vmem>>, vector<1x1x16x32xbf16>
    %283 = vector.shape_cast %282 : vector<1x1x16x32xbf16> to vector<16x32xbf16>
    %284 = vector.shape_cast %281 : vector<16x32xbf16> to vector<1x1x16x32xbf16>
    tpu.vector_store %arg5[%c0_252, %c12, %c0_253, %c0_254], %284 {strides = array<i32>} : memref<1x16x16x32xbf16, #tpu.memory_space<vmem>>, vector<1x1x16x32xbf16>,
    %c90_255 = arith.constant 90 : index
    %c0_256 = arith.constant 0 : index
    %285 = vector.load %arg6[%c90_255, %c0_256] : memref<142x32xf32, #tpu.memory_space<vmem>>, vector<16x32xf32>
    %286 = vector.broadcast %0 : vector<1x32xf32> to vector<16x32xf32>
    %287 = arith.mulf %285, %286 : vector<16x32xf32>
    %288 = vector.broadcast %1 : vector<1x32xf32> to vector<16x32xf32>
    %289 = arith.addf %287, %288 : vector<16x32xf32>
    %cst_257 = arith.constant 0.000000e+00 : f32
    %290 = vector.broadcast %cst_257 : f32 to vector<16x32xf32>
    %291 = arith.maximumf %289, %290 : vector<16x32xf32>
    %292 = arith.truncf %291 : vector<16x32xf32> to vector<16x32xbf16>
    %c0_258 = arith.constant 0 : index
    %c13 = arith.constant 13 : index
    %c0_259 = arith.constant 0 : index
    %c0_260 = arith.constant 0 : index
    %293 = vector.load %arg5[%c0_258, %c13, %c0_259, %c0_260] : memref<1x16x16x32xbf16, #tpu.memory_space<vmem>>, vector<1x1x16x32xbf16>
    %294 = vector.shape_cast %293 : vector<1x1x16x32xbf16> to vector<16x32xbf16>
    %295 = vector.shape_cast %292 : vector<16x32xbf16> to vector<1x1x16x32xbf16>
    tpu.vector_store %arg5[%c0_258, %c13, %c0_259, %c0_260], %295 {strides = array<i32>} : memref<1x16x16x32xbf16, #tpu.memory_space<vmem>>, vector<1x1x16x32xbf16>,
    %c108_261 = arith.constant 108 : index
    %c0_262 = arith.constant 0 : index
    %296 = vector.load %arg6[%c108_261, %c0_262] : memref<142x32xf32, #tpu.memory_space<vmem>>, vector<16x32xf32>
    %297 = vector.broadcast %0 : vector<1x32xf32> to vector<16x32xf32>
    %298 = arith.mulf %296, %297 : vector<16x32xf32>
    %299 = vector.broadcast %1 : vector<1x32xf32> to vector<16x32xf32>
    %300 = arith.addf %298, %299 : vector<16x32xf32>
    %cst_263 = arith.constant 0.000000e+00 : f32
    %301 = vector.broadcast %cst_263 : f32 to vector<16x32xf32>
    %302 = arith.maximumf %300, %301 : vector<16x32xf32>
    %303 = arith.truncf %302 : vector<16x32xf32> to vector<16x32xbf16>
    %c0_264 = arith.constant 0 : index
    %c14 = arith.constant 14 : index
    %c0_265 = arith.constant 0 : index
    %c0_266 = arith.constant 0 : index
    %304 = vector.load %arg5[%c0_264, %c14, %c0_265, %c0_266] : memref<1x16x16x32xbf16, #tpu.memory_space<vmem>>, vector<1x1x16x32xbf16>
    %305 = vector.shape_cast %304 : vector<1x1x16x32xbf16> to vector<16x32xbf16>
    %306 = vector.shape_cast %303 : vector<16x32xbf16> to vector<1x1x16x32xbf16>
    tpu.vector_store %arg5[%c0_264, %c14, %c0_265, %c0_266], %306 {strides = array<i32>} : memref<1x16x16x32xbf16, #tpu.memory_space<vmem>>, vector<1x1x16x32xbf16>,
    %c126_267 = arith.constant 126 : index
    %c0_268 = arith.constant 0 : index
    %307 = vector.load %arg6[%c126_267, %c0_268] : memref<142x32xf32, #tpu.memory_space<vmem>>, vector<16x32xf32>
    %308 = vector.broadcast %0 : vector<1x32xf32> to vector<16x32xf32>
    %309 = arith.mulf %307, %308 : vector<16x32xf32>
    %310 = vector.broadcast %1 : vector<1x32xf32> to vector<16x32xf32>
    %311 = arith.addf %309, %310 : vector<16x32xf32>
    %cst_269 = arith.constant 0.000000e+00 : f32
    %312 = vector.broadcast %cst_269 : f32 to vector<16x32xf32>
    %313 = arith.maximumf %311, %312 : vector<16x32xf32>
    %314 = arith.truncf %313 : vector<16x32xf32> to vector<16x32xbf16>
    %c0_270 = arith.constant 0 : index
    %c15 = arith.constant 15 : index
    %c0_271 = arith.constant 0 : index
    %c0_272 = arith.constant 0 : index
    %315 = vector.load %arg5[%c0_270, %c15, %c0_271, %c0_272] : memref<1x16x16x32xbf16, #tpu.memory_space<vmem>>, vector<1x1x16x32xbf16>
    %316 = vector.shape_cast %315 : vector<1x1x16x32xbf16> to vector<16x32xbf16>
    %317 = vector.shape_cast %314 : vector<16x32xbf16> to vector<1x1x16x32xbf16>
    tpu.vector_store %arg5[%c0_270, %c15, %c0_271, %c0_272], %317 {strides = array<i32>} : memref<1x16x16x32xbf16, #tpu.memory_space<vmem>>, vector<1x1x16x32xbf16>,
    return
  }
  func.func @transform_0(%arg0: i32) -> (i32, i32, i32) {
    %c0_i32 = arith.constant 0 : i32
    %c0_i32_0 = arith.constant 0 : i32
    %c0_i32_1 = arith.constant 0 : i32
    return %arg0, %c0_i32, %c0_i32_0 : i32, i32, i32
  }
  func.func @transform_1(%arg0: i32) -> (i32, i32, i32) {
    %c0_i32 = arith.constant 0 : i32
    %c0_i32_0 = arith.constant 0 : i32
    %c0_i32_1 = arith.constant 0 : i32
    %c0_i32_2 = arith.constant 0 : i32
    return %c0_i32, %c0_i32_0, %c0_i32_1 : i32, i32, i32
  }
  func.func @transform_2(%arg0: i32) -> (i32, i32) {
    %c0_i32 = arith.constant 0 : i32
    %c0_i32_0 = arith.constant 0 : i32
    %c0_i32_1 = arith.constant 0 : i32
    return %c0_i32, %c0_i32_0 : i32, i32
  }
  func.func @transform_3(%arg0: i32) -> (i32, i32) {
    %c0_i32 = arith.constant 0 : i32
    %c0_i32_0 = arith.constant 0 : i32
    %c0_i32_1 = arith.constant 0 : i32
    return %c0_i32, %c0_i32_0 : i32, i32
  }
  func.func @transform_4(%arg0: i32) -> (i32, i32, i32, i32) {
    %c0_i32 = arith.constant 0 : i32
    %c0_i32_0 = arith.constant 0 : i32
    %c0_i32_1 = arith.constant 0 : i32
    %c0_i32_2 = arith.constant 0 : i32
    return %arg0, %c0_i32, %c0_i32_0, %c0_i32_1 : i32, i32, i32, i32
  }
}

</mosaic_0001>

<bundles_post_ra>
// kernel: conv3x3_s1.1
= control target key start
LH: loop header
LB: loop body
LE: loop exit
PB: predicated region body
PF: predicated region fallthrough
CT: control target
= control target key end

     0   :  { %9 = vsyncpa [#allocation4], 0  ;;  %s7695_s0 = inlined_call_operand.vmem [shape: bf16[2,324,3], index: 0, kind: input, shape index: {}]   ;;  %s7696_s1 = inlined_call_operand.vmem [shape: bf16[9,3,32], index: 1, kind: input, shape index: {}]   ;;  %s7697_s2 = inlined_call_operand.vmem [shape: f32[1,32], index: 2, kind: input, shape index: {}]   ;;  %s7698_s3 = inlined_call_operand.vmem [shape: f32[1,32], index: 3, kind: input, shape index: {}]   ;;  %s7699_s4 = inlined_call_operand.hbm [shape: bf16[2,16,16,32], index: 4, kind: output, shape index: {}]  }
   0x1   :  { %11 = vsyncpa [#allocation4 + $0x1], 0  ;;  %s5961_s15 = smov 0   ;;  %s5963_s16 = smov 0  }
   0x2   :  { %s5965_s17 = smov 0   ;;  %s5967_s18 = smov 0  }
   0x3 LB: > { %s5982_s19 = sadd.s32 4294967295, %s5931_s18   ;;  %s4788_s20 = sadd.s32 4294967294, %s5931_s18   ;;  %s5931_s18 = sphi %s5967_s18, %s7705_s18   ;;  %s5927_s17 = sphi %s5965_s17, %s7704_s17   ;;  %s5923_s16 = sphi %s5963_s16, %s7703_s16   ;;  %s5919_s15 = sphi %s5961_s15, %s7702_s15  }
   0x4   : > { %s5986_s21 = sadd.s32 1, %s5931_s18   ;;  %s113_s22 = sadd.s32 1, %s5927_s17 }
   0x5   : > { %s110_s23 = ssub.s32 %s5931_s18, %s5986_s21  ;;  %p123_p0 = scmp.ne.s32.totalorder %s5927_s17, %s5923_s16 }
   0x6   : > { %p111_p1 = scmp.eq.s32.totalorder %s110_s23, 0  ;;  %p124_p2 = scmp.eq.s32.totalorder %s5982_s19, 1 }
   0x7   : > { %p129_p3 = scmp.ne.s32.totalorder %s5923_s16, %s5919_s15  ;;  %p130_p4 = scmp.eq.s32.totalorder %s4788_s20, 1 }
   0x8   : > { %s5997_s24 = scalar_select %p111_p1, %s5927_s17, %s113_s22  }
   0x9   : > { %p5999_p5 = por %p124_p2, %p123_p0  ;;  %p6003_p6 = por %p130_p4, %p129_p3 }
   0xa   : > { %p4791_p7 = scmp.ge.s32.totalorder %s5931_s18, 1  ;;  %p165_p8 = scmp.lt.s32.totalorder %s5931_s18, 3 }
   0xc   : > { %p166_p9 = pnand %p4791_p7, %p165_p8 }
   0xd   : > { %p191_p10 = scmp.lt.s32.totalorder (!%p166_p9), %s5982_s19, 1  ;;  %s188_s9 = sand.u32 (!%p166_p9), 1, %s5923_s16  }
   0xe   : > { %169 = sbr.rel (%p166_p9) target bundleno = 843 (0x34b), region = 36  ;;  %s4792_s12 = sshll.u32 (!%p166_p9), %s188_s9, 7 }
   0xf   : > { %s6728_s13 = scalar_lea.vmem (!%p166_p9), [#allocation3], %s4792_s12  ;;  %s5889_s29 = scalar_lea.hbm (!%p166_p9), %s7699_s4, 256 }
  0x10   : > { %s4723_s12 = sshll.u32 (!%p166_p9), %s6728_s13, 4  ;;  %s4724_s12 = int_to_ptr.vmem [resolvable:$true] %s4723_s12 }
  0x13   : > { %v217_v0 = vld [vmem:[%s7696_s1] sm:$0x3]  ;;  %vm291_vm0 = vcmask 1040384   ;;  %vm292_vm1 = vcmask 1041408   ;;  %v5933_v1 = vmov 65535   ;;  %s192_s7 = scalar_select %p191_p10, %s5982_s19, 1 }
  0x14   : > { %v293_v2 = vsel %vm291_vm0, 4294967295, %v5933_v1  ;;  %v4885_v3 = vld [vmem:[%s7696_s1 + $0x4] sm:$0x3]  ;;  %v4839_v4 = vld [vmem:[%s7696_s1 + $0x2] sm:$0x3]  ;;  %vm263_vm2 = vcmask 23552  }
  0x15   : > { %v6019_v5 = vsel %vm292_vm1, %v293_v2, 0  ;;  %v4931_v6 = vld [vmem:[%s7696_s1 + $0x6] sm:$0x3]  ;;  %v4977_v11 = vld [vmem:[%s7696_s1 + $0x8] sm:$0x3]  ;;  %s5820_s14 = smul.u32 164, %s192_s7 }
  0x16   : > { %v296_v7 = vand.u32 %v6019_v5, %v217_v0  ;;  %v758_v8 = vand.u32 %v4885_v3, %v6019_v5  ;;  %v537_v9 = vand.u32 %v4839_v4, %v6019_v5  ;;  %v978_v10 = vand.u32 %v4931_v6, %v6019_v5  ;;  %v5023_v12 = vld [vmem:[%s7696_s1 + $0xa] sm:$0x3]  ;;  %v5069_v59 = vld [vmem:[%s7696_s1 + $0xc] sm:$0x3]  ;;  %v5115_v1 = vld [vmem:[%s7696_s1 + $0xe] sm:$0x3] }
  0x17   : > { %v1271_v13 = vand.u32 %v4977_v11, %v6019_v5  ;;  %v1498_v14 = vand.u32 %v5023_v12, %v6019_v5  ;;  %s6040_s23 = scalar_lea.vmem %s7695_s0, %s5820_s14  ;;  %vm437_vm3 = vsmask.f32 7424  ;;  %v1724_v62 = vand.u32 %v5069_v59, %v6019_v5  ;;  %s5817_s7 = sshll.u32 %s5982_s19, 7 }
  0x18   : > { %5818 = vmatpush.bf16.msra.mxu2 %v296_v7  ;;  %305 = vmatpush.bf16.msra.mxu0 %v296_v7  ;;  %v5660_v15 = vld [vmem:[%s6040_s23 + $0x28] sm:$0xff]  ;;  %v5655_v16 = vld [vmem:[%s6040_s23] sm:$0xff]  ;;  %v5670_v18 = vld [vmem:[%s6040_s23 + $0x30] sm:$0xff]  ;;  %v2021_v6 = vand.u32 %v5115_v1, %v6019_v5  ;;  %vm712_vm4 = vcmask 1046528   ;;  %vm1157_vm5 = vsmask.f32 6400  ;;  %s4722_s11 = scalar_lea.hbm %s7699_s4, %s5817_s7 }
  0x19   : > { %5819 = vmatpush.bf16.msra.mxu3 %v537_v9  ;;  %546 = vmatpush.bf16.msra.mxu1 %v537_v9  ;;  %v5669_v17 = vld [vmem:[%s6040_s23 + $0x28] sm:$0xff]  ;;  %v5664_v19 = vld [vmem:[%s6040_s23] sm:$0xff]  ;;  %v486_v23 = vshll.u32 %v5670_v18, 16  ;;  %v5671_v35 = vld [vmem:[%s6040_s23 + $0x38] sm:$0xff]  ;;  %v490_v39 = vshrl.u32 %v5670_v18, 16  ;;  %vm1450_vm6 = vcmask 1045504  }
  0x1a   : > { %v5665_v20 = vld [vmem:[%s6040_s23 + $0x8] sm:$0xff]  ;;  %v478_v21 = vshll.u32 %v5669_v17, 16  ;;  %v482_v22 = vshrl.u32 %v5669_v17, 16  ;;  %v439_v24 = vshrl.u32 %v5664_v19, 16  ;;  %v441_v25 = vshll.u32 %v5664_v19, 16  ;;  %v5666_v36 = vld [vmem:[%s6040_s23 + $0x10] sm:$0xff] }
  0x1b   : > { %4835 = vmatmul.msk.bf16.vlgmr.msra.gmra.mxu2 %vm263_vm2, %v5660_v15  ;;  %4830 = vmatmul.msk.bf16.vlgmr.msra.gmra.mxu0 %vm263_vm2, %v5655_v16  ;;  %v446_v26 = vshll.u32 %v5665_v20, 16  ;;  %v488_v28 = vrot.slane %v486_v23, 1  ;;  %v5661_v37 = vld [vmem:[%s6040_s23 + $0x30] sm:$0xff]  ;;  %v5656_v38 = vld [vmem:[%s6040_s23 + $0x8] sm:$0xff]  ;;  %v494_v40 = vshll.u32 %v5671_v35, 16  ;;  %v450_v41 = vshrl.u32 %v5665_v20, 16 }
  0x1c   : > { %767 = vmatpush.bf16.msrb.mxu2 %v758_v8  ;;  %1280 = vmatpush.bf16.msrb.mxu0 %v1271_v13  ;;  %v6050_v27 = vrot.slane %v478_v21, 1  ;;  %v443_v29 = vrot.slane %v441_v25, 1  ;;  %v454_v42 = vshll.u32 %v5666_v36, 16  ;;  %v5672_v49 = vld [vmem:[%s6040_s23 + $0x40] sm:$0xff]  ;;  %v5667_v50 = vld [vmem:[%s6040_s23 + $0x18] sm:$0xff]  ;;  %v5657_v52 = vld [vmem:[%s6040_s23 + $0x10] sm:$0xff] }
  0x1d   : > { %987 = vmatpush.bf16.msrb.mxu3 %v978_v10  ;;  %1507 = vmatpush.bf16.msrb.mxu1 %v1498_v14  ;;  %v448_v30 = vrot.slane %v446_v26, 1  ;;  %v492_v43 = vor.u32 %v490_v39, %v488_v28  ;;  %v496_v44 = vrot.slane %v494_v40, 1  ;;  %v5662_v51 = vld [vmem:[%s6040_s23 + $0x38] sm:$0xff]  ;;  %v498_v53 = vshrl.u32 %v5671_v35, 16  ;;  %v4828_v2 = vld [vmem:[%s6040_s23 + $0x40] sm:$0xf] }
  0x1e   : > { %v484_v31 = vor.u32 %v482_v22, %v6050_v27  ;;  %v444_v32 = vor.u32 %v443_v29, %v439_v24  ;;  %v456_v46 = vrot.slane %v454_v42, 1  ;;  %v502_v54 = vshll.u32 %v5672_v49, 16  ;;  %v5663_v3 = vld [vmem:[%s6040_s23 + $0x40] sm:$0x70]  ;;  %v5658_v8 = vld [vmem:[%s6040_s23 + $0x18] sm:$0xff]  ;;  %v5674_v18 = vld [vmem:[%s6040_s23 + $0x8] sm:$0xff] }
  0x1f   : > { %v452_v45 = vor.u32 %v450_v41, %v448_v30  ;;  %v497_v47 = vsel %vm437_vm3, %v492_v43, %v496_v44  ;;  %v458_v55 = vshrl.u32 %v5666_v36, 16  ;;  %v462_v56 = vshll.u32 %v5667_v50, 16  ;;  %v5668_v4 = vld [vmem:[%s6040_s23 + $0x20] sm:$0xff]  ;;  %v5161_v20 = vld [vmem:[%s7696_s1 + $0x10] sm:$0x3]  ;;  %s4725_s14 = sshll.u32 %s4722_s11, 4  ;;  %s4726_s14 = int_to_ptr.hbm [resolvable:$true] %s4725_s14 }
  0x20   : > { %v489_v33 = vsel %vm437_vm3, %v484_v31, %v488_v28  ;;  %v449_v34 = vsel %vm437_vm3, %v444_v32, %v448_v30  ;;  %v500_v57 = vor.u32 %v498_v53, %v496_v44  ;;  %v504_v58 = vrot.slane %v502_v54, 1  ;;  %1733 = vmatpush.bf16.msra.mxu2 %v1724_v62  ;;  %v4888_v14 = vld [vmem:[%s6040_s23] sm:$0xe]  ;;  %v5673_v15 = vld [vmem:[%s6040_s23] sm:$0xf0]  ;;  %v5683_v30 = vld [vmem:[%s6040_s23 + $0x10] sm:$0xff] }
  0x21   : > { %4881 = vmatmul.msk.bf16.vlgmr.msra.gmra.mxu3 %vm263_vm2, %v489_v33  ;;  %4876 = vmatmul.msk.bf16.vlgmr.msra.gmra.mxu1 %vm263_vm2, %v449_v34  ;;  %v457_v48 = vsel %vm437_vm3, %v452_v45, %v456_v46  ;;  %v460_v60 = vor.u32 %v458_v55, %v456_v46  ;;  %v464_v61 = vrot.slane %v462_v56, 1  ;;  %v4829_v7 = vor.u32 %v5663_v3, %v4828_v2  ;;  %v4934_v24 = vld [vmem:[%s6040_s23 + $0x8] sm:$0xe]  ;;  %v5682_v25 = vld [vmem:[%s6040_s23 + $0x8] sm:$0xf0]  ;;  %v5659_v29 = vld [vmem:[%s6040_s23 + $0x20] sm:$0xff] }
  0x22   : > { %v505_v63 = vsel %vm437_vm3, %v500_v57, %v504_v58  ;;  %2030 = vmatpush.bf16.msra.mxu3 %v2021_v6  ;;  %v466_v9 = vshrl.u32 %v5667_v50, 16  ;;  %v470_v10 = vshll.u32 %v5668_v4, 16  ;;  %v506_v11 = vshrl.u32 %v5672_v49, 16  ;;  %v4980_v26 = vld [vmem:[%s6040_s23 + $0x8] sm:$0xe]  ;;  %v5692_v33 = vld [vmem:[%s6040_s23 + $0x10] sm:$0xff] }
  0x23   : > { %v465_v0 = vsel %vm437_vm3, %v460_v60, %v464_v61  ;;  %v4889_v19 = vor.u32 %v5673_v15, %v4888_v14  ;;  %v2248_v21 = vand.u32 %v5161_v20, %v6019_v5  ;;  %v714_v23 = vrot.slane %v5674_v18, 1  ;;  %v5691_v28 = vld [vmem:[%s6040_s23 + $0x8] sm:$0xf0]  ;;  %v2486_v40 = vld [vmem:[%s7696_s1] sm:$0x3]  ;;  %v5684_v57 = vld [vmem:[%s6040_s23 + $0x18] sm:$0xff] }
  0x24   : > { %v468_v12 = vor.u32 %v466_v9, %v464_v61  ;;  %v472_v13 = vrot.slane %v470_v10, 1  ;;  %v508_v16 = vor.u32 %v506_v11, %v504_v58  ;;  %v4935_v31 = vor.u32 %v5682_v25, %v4934_v24  ;;  %v5026_v55 = vld [vmem:[%s6040_s23 + $0x8] sm:$0xc]  ;;  %v5700_v56 = vld [vmem:[%s6040_s23 + $0x8] sm:$0xf0]  ;;  %v5701_v59 = vld [vmem:[%s6040_s23 + $0x10] sm:$0xff] }
  0x25   : > { %v713_v22 = vrot.slane %v4889_v19, 1  ;;  %2257 = vmatpush.bf16.msra.mxu0 %v2248_v21  ;;  %v474_v32 = vshrl.u32 %v5668_v4, 16  ;;  %v4981_v35 = vor.u32 %v5691_v28, %v4980_v26  ;;  %v1167_v39 = vshrl.u32 %v5692_v33, 16  ;;  %v5693_v61 = vld [vmem:[%s6040_s23 + $0x18] sm:$0xff]  ;;  %v5685_v11 = vld [vmem:[%s6040_s23 + $0x20] sm:$0xff]  ;;  %v5686_v28 = vld [vmem:[%s6040_s23 + $0x28] sm:$0xff] }
  0x26   : > { %v473_v17 = vsel %vm437_vm3, %v468_v12, %v472_v13  ;;  %v933_v36 = vrot.slane %v4935_v31, 1  ;;  %v1170_v43 = vshll.u32 %v5692_v33, 16  ;;  %v2560_v44 = vand.u32 %v2486_v40, %v6019_v5  ;;  %v5676_v6 = vld [vmem:[%s6040_s23 + $0x18] sm:$0xff]  ;;  %v5694_v15 = vld [vmem:[%s6040_s23 + $0x20] sm:$0xff]  ;;  %s4711_s19 = scalar_lea.sflag [#allocation4], %s188_s9  ;;  %s5883_s20 = sshra.s32 %s4726_s14, 4  ;;  %s5884_s20 = int_to_ptr.hbm [resolvable:$true] %s5883_s20 }
  0x27   : > { %v715_v34 = vsel %vm712_vm4, %v713_v22, %v714_v23  ;;  %v1159_v41 = vshrl.u32 %v4981_v35, 16  ;;  %v1162_v42 = vshll.u32 %v4981_v35, 16  ;;  %v1169_v50 = vrot.slane %v1167_v39, 1  ;;  %v5702_v14 = vld [vmem:[%s6040_s23 + $0x18] sm:$0xff]  ;;  %v5677_v22 = vld [vmem:[%s6040_s23 + $0x20] sm:$0xff]  ;;  %v5678_v39 = vld [vmem:[%s6040_s23 + $0x28] sm:$0xff]  ;;  %p5890_p0 = scmp.lt.s32.totalorder %s5884_s20, %s7699_s4 }
  0x28   : > { %2569 = vmatpush.bf16.msra.mxu1 %v2560_v44  ;;  %v5027_v60 = vor.u32 %v5700_v56, %v5026_v55  ;;  %v936_v62 = vrot.slane %v5684_v57, 1  ;;  %v1176_v1 = vshrl.u32 %v5693_v61, 16  ;;  %v1179_v2 = vshll.u32 %v5693_v61, 16  ;;  %v5703_v31 = vld [vmem:[%s6040_s23 + $0x20] sm:$0xff]  ;;  %v5687_v44 = vld [vmem:[%s6040_s23 + $0x30] sm:$0xff]  ;;  %s5885_s22 = scalar_lea.hbm %s5884_s20, 128 }
  0x29   : > { %v1164_v49 = vrot.slane %v1162_v42, 2  ;;  %v718_v9 = vrot.slane %v5676_v6, 1  ;;  %v1185_v18 = vshrl.u32 %v5694_v15, 16  ;;  %v1188_v19 = vshll.u32 %v5694_v15, 16  ;;  %v6180_v6 = vld [vmem:[%s6040_s23 + $0x38] sm:$0xff]  ;;  %p5886_p11 = scmp.ne.s32.totalorder %s5884_s20, %s5885_s22  ;;  %p5891_p1 = scmp.lt.s32.totalorder %s5889_s29, %s5885_s22 }
  0x2a   : > { %v720_v25 = vrot.slane %v5677_v22, 1  ;;  %v940_v33 = vrot.slane %v5686_v28, 1  ;;  %v722_v42 = vrot.slane %v5678_v39, 1  ;;  %vm352_vm7 = vcmask 261120   ;;  %v6199_v28 = vld [vmem:[%s6040_s23 + $0x38] sm:$0xff]  ;;  %v6209_v39 = vld [vmem:[%s6040_s23 + $0x40] sm:$0xff] }
  0x2b   : > { %4836 = vmatmul.msk.bf16.gmra.mxu2 %vm263_vm2, %v5661_v37  ;;  %4831 = vmatmul.msk.bf16.gmra.mxu0 %vm263_vm2, %v5656_v38  ;;  %v934_v37 = vrot.slane %v5683_v30, 1  ;;  %v476_v38 = vor.u32 %v474_v32, %v472_v13  ;;  %v1190_v24 = vrot.slane %v1188_v19, 2  ;;  %v5695_v32 = vld [vmem:[%s6040_s23 + $0x28] sm:$0xff]  ;;  %v944_v15 = vrot.slane %v6180_v6, 1  ;;  %p5887_p12 = pnand %p5886_p11, %p5999_p5  ;;  %p5892_p2 = por %p5891_p1, %p5890_p0 }
  0x2c   : > { %v1194_v35 = vshrl.u32 %v5695_v32, 16  ;;  %vm370_vm8 = vcmask 259072   ;;  %vm1903_vm9 = vsmask.f32 5376  ;;  %vm2200_vm10 = vcmask 1044480  }
  0x2d   : > { %v935_v45 = vsel %vm712_vm4, %v933_v36, %v934_v37  ;;  %v481_v46 = vsel %vm437_vm3, %v476_v38, %v6050_v27  ;;  %v937_v3 = vsel %vm712_vm4, %v934_v37, %v936_v62  ;;  %v1197_v36 = vshll.u32 %v5695_v32, 16  ;;  %p5888_p13 = pneg %p5887_p12 }
  0x2e   : > { %v1196_v40 = vrot.slane %v1194_v35, 1  ;;  %vm2374_vm11 = vcmask 257024  }
  0x2f   : > { %p5893_p3 = pnand %p5892_p2, %p5888_p13 }
  0x31   : > { %4882 = vmatmul.msk.bf16.gmra.mxu3 %vm263_vm2, %v497_v47  ;;  %4877 = vmatmul.msk.bf16.gmra.mxu1 %vm263_vm2, %v457_v48  ;;  %v5675_v47 = vld [vmem:[%s6040_s23 + $0x10] sm:$0xff]  ;;  %v1161_v48 = vrot.slane %v1159_v41, 1  ;;  %v1199_v41 = vrot.slane %v1197_v36, 2 }
  0x33   : > { %v1165_v53 = vor.u32 %v1164_v49, %v1161_v48  ;;  %v5704_v48 = vld [vmem:[%s6040_s23 + $0x28] sm:$0xff]  ;;  %v5696_v49 = vld [vmem:[%s6040_s23 + $0x30] sm:$0xff] }
  0x3b   : > { %4837 = vmatmul.msk.bf16.gmra.mxu2 %vm263_vm2, %v5662_v51  ;;  %4832 = vmatmul.msk.bf16.gmra.mxu0 %vm263_vm2, %v5657_v52  ;;  %v1172_v51 = vrot.slane %v1170_v43, 2  ;;  %v716_v52 = vrot.slane %v5675_v47, 1  ;;  %v1200_v43 = vor.u32 %v1199_v41, %v1196_v40 }
  0x3d   : > { %v1173_v54 = vor.u32 %v1172_v51, %v1169_v50  ;;  %v717_v27 = vsel %vm712_vm4, %v714_v23, %v716_v52  ;;  %v719_v12 = vsel %vm712_vm4, %v716_v52, %v718_v9  ;;  %v1187_v23 = vrot.slane %v1185_v18, 1 }
  0x3e   : > { %v942_v50 = vrot.slane %v5687_v44, 1  ;;  %v1458_v51 = vrot.slane %v5704_v48, 2  ;;  %v1203_v52 = vshrl.u32 %v5696_v49, 16  ;;  %v6214_v44 = vld [vmem:[%s6040_s23 + $0x38] sm:$0xff]  ;;  %v946_v48 = vrot.slane %v6209_v39, 1 }
  0x3f   : > { %v1174_v58 = vsel %vm1157_vm5, %v1165_v53, %v1173_v54  ;;  %v1191_v26 = vor.u32 %v1190_v24, %v1187_v23  ;;  %v1206_v53 = vshll.u32 %v5696_v49, 16  ;;  %v1462_v49 = vrot.slane %v6214_v44, 2  ;;  %v6276_v44 = vld [vmem:[%s6040_s23 + $0x48] sm:$0xff] }
  0x40   : > { %v943_v55 = vsel %vm712_vm4, %v940_v33, %v942_v50  ;;  %v945_v23 = vsel %vm712_vm4, %v942_v50, %v944_v15 }
  0x41   : > { %4883 = vmatmul.msk.bf16.gmra.mxu3 %vm263_vm2, %v505_v63  ;;  %4878 = vmatmul.msk.bf16.gmra.mxu1 %vm263_vm2, %v465_v0  ;;  %v1451_v63 = vrot.slane %v5027_v60, 2  ;;  %v1452_v0 = vrot.slane %v5701_v59, 2  ;;  %v1201_v47 = vsel %vm1157_vm5, %v1191_v26, %v1200_v43  ;;  %v6171_v59 = vld [vmem:[%s6040_s23 + $0x30] sm:$0xff]  ;;  %v1205_v60 = vrot.slane %v1203_v52, 1 }
  0x42   : > { %v1208_v61 = vrot.slane %v1206_v53, 2 }
  0x43   : > { %v1453_v4 = vsel %vm1450_vm6, %v1451_v63, %v1452_v0  ;;  %v724_v63 = vrot.slane %v6171_v59, 1  ;;  %v6228_v59 = vld [vmem:[%s6040_s23 + $0x40] sm:$0xff] }
  0x4b   : > { %4838 = vmatmul.msk.bf16.gmra.mxu2 %vm263_vm2, %v4829_v7  ;;  %4833 = vmatmul.msk.bf16.gmra.mxu0 %vm263_vm2, %v5658_v8  ;;  %v1178_v7 = vrot.slane %v1176_v1, 1  ;;  %v1181_v8 = vrot.slane %v1179_v2, 2 }
  0x4d   : > { %v1182_v10 = vor.u32 %v1181_v8, %v1178_v7 }
  0x4f   : > { %v1183_v13 = vsel %vm1157_vm5, %v1173_v54, %v1182_v10  ;;  %v1192_v30 = vsel %vm1157_vm5, %v1182_v10, %v1191_v26  ;;  %v725_v10 = vsel %vm712_vm4, %v722_v42, %v724_v63 }
  0x51   : > { %4884 = vmatmul.msk.bf16.gmra.mxu3 %vm263_vm2, %v508_v16  ;;  %4879 = vmatmul.msk.bf16.gmra.mxu1 %vm263_vm2, %v473_v17  ;;  %v938_v16 = vrot.slane %v5685_v11, 1  ;;  %v1454_v17 = vrot.slane %v5702_v14, 2 }
  0x53   : > { %v939_v20 = vsel %vm712_vm4, %v936_v62, %v938_v16  ;;  %v1455_v21 = vsel %vm1450_vm6, %v1452_v0, %v1454_v17  ;;  %v941_v37 = vsel %vm712_vm4, %v938_v16, %v940_v33  ;;  %v1209_v0 = vor.u32 %v1208_v61, %v1205_v60 }
  0x54   : > { %v726_v33 = vrot.slane %v6199_v28, 1 }
  0x55   : > { %v1210_v11 = vsel %vm1157_vm5, %v1200_v43, %v1209_v0 }
  0x5b   : > { %4922 = vmatmul.msk.bf16.vlgmr.msrb.gmra.mxu2 %vm263_vm2, %v715_v34  ;;  %4834 = vmatmul.msk.bf16.gmra.mxu0 %vm263_vm2, %v5659_v29  ;;  %v721_v29 = vsel %vm712_vm4, %v718_v9, %v720_v25  ;;  %v1456_v34 = vrot.slane %v5703_v31, 2 }
  0x5d   : > { %v1457_v38 = vsel %vm1450_vm6, %v1454_v17, %v1456_v34 }
  0x61   : > { %4968 = vmatmul.msk.bf16.vlgmr.msrb.gmra.mxu3 %vm263_vm2, %v935_v45  ;;  %4880 = vmatmul.msk.bf16.gmra.mxu1 %vm263_vm2, %v481_v46  ;;  %v723_v46 = vsel %vm712_vm4, %v720_v25, %v722_v42  ;;  %v727_v42 = vsel %vm712_vm4, %v724_v63, %v726_v33 }
  0x6b   : > { %4923 = vmatmul.msk.bf16.gmra.mxu2 %vm263_vm2, %v717_v27  ;;  %5014 = vmatmul.msk.bf16.vlgmr.msrb.gmra.mxu0 %vm263_vm2, %v1174_v58  ;;  %v1459_v58 = vsel %vm1450_vm6, %v1456_v34, %v1458_v51 }
  0x71   : > { %4969 = vmatmul.msk.bf16.gmra.mxu3 %vm263_vm2, %v937_v3  ;;  %5060 = vmatmul.msk.bf16.vlgmr.msrb.gmra.mxu1 %vm263_vm2, %v1453_v4 }
  0x7b   : > { %4924 = vmatmul.msk.bf16.gmra.mxu2 %vm263_vm2, %v719_v12  ;;  %5015 = vmatmul.msk.bf16.gmra.mxu0 %vm263_vm2, %v1183_v13  ;;  %v6185_v12 = vld [vmem:[%s6040_s23 + $0x30] sm:$0xff]  ;;  %v5697_v13 = vld [vmem:[%s6040_s23 + $0x38] sm:$0xff] }
  0x7c   : > { %v1460_v16 = vrot.slane %v6185_v12, 2  ;;  %v1212_v17 = vshrl.u32 %v5697_v13, 16  ;;  %v1215_v18 = vshll.u32 %v5697_v13, 16  ;;  %v6245_v12 = vld [vmem:[%s6040_s23 + $0x40] sm:$0xff]  ;;  %v5699_v13 = vld [vmem:[%s6040_s23 + $0x48] sm:$0xff] }
  0x7e   : > { %v1461_v26 = vsel %vm1450_vm6, %v1458_v51, %v1460_v16 }
  0x81   : > { %4970 = vmatmul.msk.bf16.gmra.mxu3 %vm263_vm2, %v939_v20  ;;  %5061 = vmatmul.msk.bf16.gmra.mxu1 %vm263_vm2, %v1455_v21 }
  0x8b   : > { %4925 = vmatmul.msk.bf16.gmra.mxu2 %vm263_vm2, %v721_v29  ;;  %5016 = vmatmul.msk.bf16.gmra.mxu0 %vm263_vm2, %v1192_v30  ;;  %v1214_v29 = vrot.slane %v1212_v17, 1  ;;  %v1217_v30 = vrot.slane %v1215_v18, 2  ;;  %v1464_v17 = vrot.slane %v6245_v12, 2  ;;  %v1230_v18 = vshrl.u32 %v5699_v13, 16 }
  0x8d   : > { %v1218_v34 = vor.u32 %v1217_v30, %v1214_v29  ;;  %v1465_v28 = vsel %vm1450_vm6, %v1462_v49, %v1464_v17  ;;  %v1232_v29 = vrot.slane %v1230_v18, 1 }
  0x8f   : > { %v1219_v43 = vsel %vm1157_vm5, %v1209_v0, %v1218_v34  ;;  %v728_v0 = vrot.slane %v6228_v59, 1 }
  0x91   : > { %4971 = vmatmul.msk.bf16.gmra.mxu3 %vm263_vm2, %v941_v37  ;;  %5062 = vmatmul.msk.bf16.gmra.mxu1 %vm263_vm2, %v1457_v38 }
  0x98   : > { %v307_v45 = vpop.f32.mrf.mxu0 }
  0x99   : > { %353 = vst.msk [vmem:[#allocation2] sm:$0xff] %vm352_vm7, %v307_v45  ;;  %v5698_v45 = vld [vmem:[%s6040_s23 + $0x40] sm:$0xff] }
  0x9a   : > { %v1221_v50 = vshrl.u32 %v5698_v45, 16  ;;  %v1224_v51 = vshll.u32 %v5698_v45, 16 }
  0x9b   : > { %4926 = vmatmul.msk.bf16.gmra.mxu2 %vm263_vm2, %v723_v46  ;;  %5017 = vmatmul.msk.bf16.gmra.mxu0 %vm263_vm2, %v1201_v47 }
  0x9c   : > { %v1223_v60 = vrot.slane %v1221_v50, 1  ;;  %v1226_v61 = vrot.slane %v1224_v51, 2  ;;  %v5118_v50 = vld [vmem:[%s6040_s23 + $0x10] sm:$0xc]  ;;  %v5718_v51 = vld [vmem:[%s6040_s23 + $0x10] sm:$0xf0] }
  0x9e   : > { %v332_v54 = vpop.f32.mrf.mxu2  ;;  %v548_v57 = vpop.f32.mrf.mxu1 }
  0x9f   : > { %363 = vst.msk [vmem:[#allocation2 + $0x50] sm:$0xff] %vm352_vm7, %v332_v54 }
  0xa0   : > { %v309_v56 = vpop.f32.mrf.mxu0  ;;  %v593_v27 = vld [vmem:[#allocation2] sm:$0xff] }
  0xa1   : > { %354 = vst.msk [vmem:[#allocation2 + $0x8] sm:$0xff] %vm352_vm7, %v309_v56  ;;  %v611_v62 = vadd.f32 %v593_v27, %v548_v57  ;;  %4972 = vmatmul.msk.bf16.gmra.mxu3 %vm263_vm2, %v943_v55  ;;  %5063 = vmatmul.msk.bf16.gmra.mxu1 %vm263_vm2, %v1459_v58  ;;  %v947_v56 = vsel %vm712_vm4, %v944_v15, %v946_v48 }
  0xa2   : > { %v1463_v58 = vsel %vm1450_vm6, %v1460_v16, %v1462_v49 }
  0xa3   : > { %629 = vst.msk [vmem:[#allocation2] sm:$0xff] %vm352_vm7, %v611_v62 }
  0xa4   : > { %v573_v1 = vpop.f32.mrf.mxu3 }
  0xa6   : > { %v603_v2 = vld [vmem:[#allocation2 + $0x50] sm:$0xff]  ;;  %v334_v3 = vpop.f32.mrf.mxu2  ;;  %v550_v8 = vpop.f32.mrf.mxu1 }
  0xa7   : > { %v621_v4 = vadd.f32 %v603_v2, %v573_v1  ;;  %364 = vst.msk [vmem:[#allocation2 + $0x58] sm:$0xff] %vm352_vm7, %v334_v3  ;;  %v1227_v1 = vor.u32 %v1226_v61, %v1223_v60  ;;  %v5119_v60 = vor.u32 %v5718_v51, %v5118_v50 }
  0xa8   : > { %v312_v7 = vpop.f32.mrf.mxu0  ;;  %v594_v9 = vld [vmem:[#allocation2 + $0x8] sm:$0xff] }
  0xa9   : > { %639 = vst.msk [vmem:[#allocation2 + $0x50] sm:$0xff] %vm352_vm7, %v621_v4  ;;  %v612_v14 = vadd.f32 %v594_v9, %v550_v8  ;;  %v1908_v12 = vshll.u32 %v5119_v60, 16 }
  0xaa   : > { %355 = vst.msk [vmem:[#allocation2 + $0x10] sm:$0xff] %vm352_vm7, %v312_v7  ;;  %v6238_v7 = vld [vmem:[%s6040_s23 + $0x48] sm:$0xff] }
  0xab   : > { %630 = vst.msk [vmem:[#allocation2 + $0x8] sm:$0xff] %vm352_vm7, %v612_v14  ;;  %4927 = vmatmul.msk.bf16.gmra.mxu2 %vm263_vm2, %v725_v10  ;;  %5018 = vmatmul.msk.bf16.gmra.mxu0 %vm263_vm2, %v1210_v11  ;;  %v729_v10 = vsel %vm712_vm4, %v726_v33, %v728_v0  ;;  %v1228_v11 = vsel %vm1157_vm5, %v1218_v34, %v1227_v1  ;;  %v948_v16 = vrot.slane %v6238_v7, 1 }
  0xac   : > { %v575_v19 = vpop.f32.mrf.mxu3 }
  0xae   : > { %v604_v20 = vld [vmem:[#allocation2 + $0x58] sm:$0xff]  ;;  %v337_v21 = vpop.f32.mrf.mxu2  ;;  %v553_v25 = vpop.f32.mrf.mxu1 }
  0xaf   : > { %v622_v22 = vadd.f32 %v604_v20, %v575_v19  ;;  %365 = vst.msk [vmem:[#allocation2 + $0x60] sm:$0xff] %vm352_vm7, %v337_v21  ;;  %v1233_v19 = vshll.u32 %v5699_v13, 16 }
  0xb0   : > { %v314_v24 = vpop.f32.mrf.mxu0 }
  0xb1   : > { %640 = vst.msk [vmem:[#allocation2 + $0x58] sm:$0xff] %vm352_vm7, %v622_v22  ;;  %v595_v31 = vld [vmem:[#allocation2 + $0x10] sm:$0xff]  ;;  %4973 = vmatmul.msk.bf16.gmra.mxu3 %vm263_vm2, %v945_v23  ;;  %5064 = vmatmul.msk.bf16.gmra.mxu1 %vm263_vm2, %v1461_v26  ;;  %v1235_v30 = vrot.slane %v1233_v19, 2 }
  0xb2   : > { %356 = vst.msk [vmem:[#allocation2 + $0x18] sm:$0xff] %vm352_vm7, %v314_v24  ;;  %v613_v32 = vadd.f32 %v595_v31, %v553_v25  ;;  %v949_v24 = vsel %vm712_vm4, %v946_v48, %v948_v16  ;;  %v1466_v48 = vrot.slane %v6276_v44, 2 }
  0xb3   : > { %v6265_v33 = vor.u32 %v1235_v30, %v1232_v29 }
  0xb4   : > { %631 = vst.msk [vmem:[#allocation2 + $0x10] sm:$0xff] %vm352_vm7, %v613_v32  ;;  %v578_v35 = vpop.f32.mrf.mxu3 }
  0xb6   : > { %v605_v36 = vld [vmem:[#allocation2 + $0x60] sm:$0xff]  ;;  %v339_v37 = vpop.f32.mrf.mxu2  ;;  %v555_v41 = vpop.f32.mrf.mxu1 }
  0xb7   : > { %v623_v38 = vadd.f32 %v605_v36, %v578_v35  ;;  %366 = vst.msk [vmem:[#allocation2 + $0x68] sm:$0xff] %vm352_vm7, %v339_v37  ;;  %v1106_v35 = vld [vmem:[%s6040_s23 + $0x50] sm:$0x1] }
  0xb8   : > { %v317_v40 = vpop.f32.mrf.mxu0  ;;  %v1146_v45 = vunpack.c.l.b16 %v1106_v35 }
  0xb9   : > { %641 = vst.msk [vmem:[#allocation2 + $0x60] sm:$0xff] %vm352_vm7, %v623_v38  ;;  %v596_v46 = vld [vmem:[#allocation2 + $0x18] sm:$0xff]  ;;  %v5266_v38 = vld [vmem:[%s7696_s1 + $0x2] sm:$0x3] }
  0xba   : > { %357 = vst.msk [vmem:[#allocation2 + $0x20] sm:$0xff] %vm352_vm7, %v317_v40  ;;  %v614_v47 = vadd.f32 %v596_v46, %v555_v41  ;;  %v2797_v40 = vand.u32 %v5266_v38, %v6019_v5  ;;  %v1156_v49 = vpack.c.b16 %v1146_v45, %v1146_v45 }
  0xbb   : > { %4928 = vmatmul.msk.bf16.gmra.mxu2 %vm263_vm2, %v727_v42  ;;  %5019 = vmatmul.msk.bf16.gmra.mxu0 %vm263_vm2, %v1219_v43  ;;  %v1237_v43 = vsel %vm1157_vm5, %v1227_v1, %v6265_v33 }
  0xbc   : > { %632 = vst.msk [vmem:[#allocation2 + $0x18] sm:$0xff] %vm352_vm7, %v614_v47  ;;  %v580_v52 = vpop.f32.mrf.mxu3  ;;  %2806 = vmatpush.bf16.msrb.mxu2 %v2797_v40  ;;  %v5727_v40 = vld [vmem:[%s6040_s23 + $0x10] sm:$0xf0] }
  0xbe   : > { %v606_v53 = vld [vmem:[#allocation2 + $0x68] sm:$0xff]  ;;  %v342_v54 = vpop.f32.mrf.mxu2  ;;  %v558_v27 = vpop.f32.mrf.mxu1 }
  0xbf   : > { %v624_v55 = vadd.f32 %v606_v53, %v580_v52  ;;  %367 = vst.msk [vmem:[#allocation2 + $0x70] sm:$0xff] %vm352_vm7, %v342_v54  ;;  %v5072_v53 = vld [vmem:[%s6040_s23 + $0x10] sm:$0xc]  ;;  %v5709_v54 = vld [vmem:[%s6040_s23 + $0x10] sm:$0xf0] }
  0xc0   : > { %v319_v57 = vpop.f32.mrf.mxu0  ;;  %v5073_v1 = vor.u32 %v5709_v54, %v5072_v53  ;;  %v6335_v53 = vld [vmem:[%s6040_s23 + $0x20] sm:$0xff]  ;;  %v6338_v54 = vld [vmem:[%s6040_s23 + $0x18] sm:$0xff] }
  0xc1   : > { %642 = vst.msk [vmem:[#allocation2 + $0x68] sm:$0xff] %vm352_vm7, %v624_v55  ;;  %v597_v62 = vld [vmem:[#allocation2 + $0x20] sm:$0xff]  ;;  %4974 = vmatmul.msk.bf16.gmra.mxu3 %vm263_vm2, %v947_v56  ;;  %5065 = vmatmul.msk.bf16.gmra.mxu1 %vm263_vm2, %v1463_v58 }
  0xc2   : > { %358 = vst.msk [vmem:[#allocation2 + $0x28] sm:$0xff] %vm352_vm7, %v319_v57  ;;  %v615_v63 = vadd.f32 %v597_v62, %v558_v27  ;;  %v814_v57 = vld [vmem:[#allocation2] sm:$0xff]  ;;  %v5719_v27 = vld [vmem:[%s6040_s23 + $0x18] sm:$0xff] }
  0xc3   : > { %v1916_v13 = vshll.u32 %v5719_v27, 16 }
  0xc4   : > { %633 = vst.msk [vmem:[#allocation2 + $0x20] sm:$0xff] %vm352_vm7, %v615_v63  ;;  %v583_v2 = vpop.f32.mrf.mxu3  ;;  %v1467_v63 = vsel %vm1450_vm6, %v1464_v17, %v1466_v48 }
  0xc6   : > { %v607_v3 = vld [vmem:[#allocation2 + $0x70] sm:$0xff]  ;;  %v344_v4 = vpop.f32.mrf.mxu2  ;;  %v560_v9 = vpop.f32.mrf.mxu1 }
  0xc7   : > { %v625_v6 = vadd.f32 %v607_v3, %v583_v2  ;;  %368 = vst.msk [vmem:[#allocation2 + $0x78] sm:$0xff] %vm352_vm7, %v344_v4  ;;  %v1239_v2 = vshll.u32 %v1156_v49, 16  ;;  %v5312_v3 = vld [vmem:[%s7696_s1 + $0x4] sm:$0x3] }
  0xc8   : > { %v322_v8 = vpop.f32.mrf.mxu0 }
  0xc9   : > { %643 = vst.msk [vmem:[#allocation2 + $0x70] sm:$0xff] %vm352_vm7, %v625_v6  ;;  %v598_v14 = vld [vmem:[#allocation2 + $0x28] sm:$0xff]  ;;  %v3016_v6 = vand.u32 %v5312_v3, %v6019_v5  ;;  %v1241_v17 = vrot.slane %v1239_v2, 2 }
  0xca   : > { %359 = vst.msk [vmem:[#allocation2 + $0x30] sm:$0xff] %vm352_vm7, %v322_v8  ;;  %v616_v15 = vadd.f32 %v598_v14, %v560_v9  ;;  %v1399_v8 = vld [vmem:[%s6040_s23 + $0x50] sm:$0x1]  ;;  %v1677_v14 = vrot.slane %v5073_v1, 2  ;;  %v817_v1 = vld [vmem:[#allocation2 + $0x18] sm:$0xff] }
  0xcb   : > { %4929 = vmatmul.msk.bf16.gmra.mxu2 %vm263_vm2, %v729_v10  ;;  %5020 = vmatmul.msk.bf16.gmra.mxu0 %vm263_vm2, %v1228_v11  ;;  %v1913_v10 = vshrl.u32 %v5719_v27, 16  ;;  %v1905_v11 = vshrl.u32 %v5119_v60, 16  ;;  %v1439_v18 = vunpack.c.l.b16 %v1399_v8  ;;  %v1242_v29 = vsel %vm1157_vm5, %v6265_v33, %v1241_v17 }
  0xcc   : > { %634 = vst.msk [vmem:[#allocation2 + $0x28] sm:$0xff] %vm352_vm7, %v616_v15  ;;  %v585_v20 = vpop.f32.mrf.mxu3  ;;  %3025 = vmatpush.bf16.msrb.mxu3 %v3016_v6  ;;  %v5404_v6 = vld [vmem:[%s7696_s1 + $0x8] sm:$0x3] }
  0xcd   : > { %v1449_v30 = vpack.c.b16 %v1439_v18, %v1439_v18 }
  0xce   : > { %v608_v21 = vld [vmem:[#allocation2 + $0x78] sm:$0xff]  ;;  %v347_v22 = vpop.f32.mrf.mxu2  ;;  %v563_v26 = vpop.f32.mrf.mxu1 }
  0xcf   : > { %v626_v23 = vadd.f32 %v608_v21, %v585_v20  ;;  %369 = vst.msk [vmem:[#allocation2 + $0x80] sm:$0xff] %vm352_vm7, %v347_v22  ;;  %v815_v20 = vld [vmem:[#allocation2 + $0x8] sm:$0xff]  ;;  %v1907_v22 = vrot.slane %v1905_v11, 2  ;;  %v1468_v33 = vrot.slane %v1449_v30, 2  ;;  %v6374_v30 = vld [vmem:[%s6040_s23 + $0x20] sm:$0xff] }
  0xd0   : > { %v324_v25 = vpop.f32.mrf.mxu0 }
  0xd1   : > { %644 = vst.msk [vmem:[#allocation2 + $0x78] sm:$0xff] %vm352_vm7, %v626_v23  ;;  %v599_v31 = vld [vmem:[#allocation2 + $0x30] sm:$0xff]  ;;  %4975 = vmatmul.msk.bf16.gmra.mxu3 %vm263_vm2, %v949_v24  ;;  %5066 = vmatmul.msk.bf16.gmra.mxu1 %vm263_vm2, %v1465_v28  ;;  %v1910_v23 = vrot.slane %v1908_v12, 3  ;;  %v1918_v24 = vrot.slane %v1916_v13, 3  ;;  %v3526_v13 = vand.u32 %v5404_v6, %v6019_v5 }
  0xd2   : > { %360 = vst.msk [vmem:[#allocation2 + $0x38] sm:$0xff] %vm352_vm7, %v324_v25  ;;  %v617_v32 = vadd.f32 %v599_v31, %v563_v26 }
  0xd3   : > { %3535 = vmatpush.bf16.msrb.mxu1 %v3526_v13 }
  0xd4   : > { %635 = vst.msk [vmem:[#allocation2 + $0x30] sm:$0xff] %vm352_vm7, %v617_v32  ;;  %v588_v34 = vpop.f32.mrf.mxu3 }
  0xd6   : > { %v609_v36 = vld [vmem:[#allocation2 + $0x80] sm:$0xff]  ;;  %v349_v37 = vpop.f32.mrf.mxu2  ;;  %v565_v42 = vpop.f32.mrf.mxu1 }
  0xd7   : > { %v627_v39 = vadd.f32 %v609_v36, %v588_v34  ;;  %371 = vst.msk [vmem:[#allocation2 + $0x88] sm:$0x3f] %vm370_vm8, %v349_v37  ;;  %v1911_v36 = vor.u32 %v1910_v23, %v1907_v22  ;;  %v5736_v23 = vld [vmem:[%s6040_s23 + $0x48] sm:$0xff] }
  0xd8   : > { %v327_v41 = vpop.f32.mrf.mxu0 }
  0xd9   : > { %645 = vst.msk [vmem:[#allocation2 + $0x80] sm:$0xff] %vm352_vm7, %v627_v39  ;;  %v600_v46 = vld [vmem:[#allocation2 + $0x38] sm:$0xff]  ;;  %v5164_v39 = vld [vmem:[%s6040_s23 + $0x10] sm:$0x8] }
  0xda   : > { %361 = vst.msk [vmem:[#allocation2 + $0x40] sm:$0xff] %vm352_vm7, %v327_v41  ;;  %v618_v47 = vadd.f32 %v600_v46, %v565_v42  ;;  %v816_v42 = vld [vmem:[#allocation2 + $0x10] sm:$0xff]  ;;  %v5720_v46 = vld [vmem:[%s6040_s23 + $0x20] sm:$0xff] }
  0xdb   : > { %4930 = vmatmul.msk.bf16.gmra.mxu2 %vm263_vm2, %v728_v0  ;;  %5021 = vmatmul.msk.bf16.gmra.mxu0 %vm263_vm2, %v1237_v43  ;;  %v6295_v0 = vld [vmem:[%s6040_s23 + $0x18] sm:$0xff]  ;;  %v1922_v44 = vshrl.u32 %v5720_v46, 16 }
  0xdc   : > { %636 = vst.msk [vmem:[#allocation2 + $0x38] sm:$0xff] %vm352_vm7, %v618_v47  ;;  %v590_v52 = vpop.f32.mrf.mxu3  ;;  %v1678_v15 = vrot.slane %v6295_v0, 2  ;;  %v5358_v47 = vld [vmem:[%s7696_s1 + $0x6] sm:$0x3] }
  0xdd   : > { %v1924_v3 = vrot.slane %v1922_v44, 2 }
  0xde   : > { %v610_v55 = vld [vmem:[#allocation2 + $0x88] sm:$0x3f]  ;;  %v769_v56 = vpop.f32.mrf.mxu2  ;;  %v568_v62 = vpop.f32.mrf.mxu1  ;;  %v1679_v28 = vsel %vm1450_vm6, %v1677_v14, %v1678_v15 }
  0xdf   : > { %v628_v58 = vadd.f32 %v610_v55, %v590_v52  ;;  %v832_v59 = vadd.f32 %v814_v57, %v769_v56  ;;  %v1469_v52 = vsel %vm1450_vm6, %v1466_v48, %v1468_v33  ;;  %v5165_v55 = vor.u32 %v5727_v40, %v5164_v39 }
  0xe0   : > { %v329_v61 = vpop.f32.mrf.mxu0  ;;  %v3235_v56 = vand.u32 %v5358_v47, %v6019_v5  ;;  %v1925_v48 = vshll.u32 %v5720_v46, 16 }
  0xe1   : > { %646 = vst.msk [vmem:[#allocation2 + $0x88] sm:$0x3f] %vm370_vm8, %v628_v58  ;;  %v601_v4 = vld [vmem:[#allocation2 + $0x40] sm:$0xff]  ;;  %4976 = vmatmul.msk.bf16.gmra.mxu3 %vm263_vm2, %v948_v16  ;;  %5067 = vmatmul.msk.bf16.gmra.mxu1 %vm263_vm2, %v1467_v63  ;;  %v1915_v16 = vrot.slane %v1913_v10, 2  ;;  %v2201_v60 = vrot.slane %v5165_v55, 3 }
  0xe2   : > { %850 = vst.msk [vmem:[#allocation2] sm:$0xff] %vm352_vm7, %v832_v59  ;;  %v619_v9 = vadd.f32 %v601_v4, %v568_v62  ;;  %3244 = vmatpush.bf16.msrb.mxu0 %v3235_v56  ;;  %v1680_v59 = vrot.slane %v6335_v53, 2  ;;  %v1927_v4 = vrot.slane %v1925_v48, 3 }
  0xe3   : > { %362 = vst.msk [vmem:[#allocation2 + $0x48] sm:$0xff] %vm352_vm7, %v329_v61  ;;  %v6319_v37 = vor.u32 %v1918_v24, %v1915_v16  ;;  %v2202_v61 = vrot.slane %v6338_v54, 3  ;;  %v818_v16 = vld [vmem:[#allocation2 + $0x20] sm:$0xff]  ;;  %v5721_v24 = vld [vmem:[%s6040_s23 + $0x28] sm:$0xff] }
  0xe4   : > { %637 = vst.msk [vmem:[#allocation2 + $0x40] sm:$0xff] %vm352_vm7, %v619_v9  ;;  %v989_v19 = vpop.f32.mrf.mxu3  ;;  %v1681_v10 = vsel %vm1450_vm6, %v1678_v15, %v1680_v59  ;;  %v1928_v0 = vor.u32 %v1927_v4, %v1924_v3  ;;  %v6404_v3 = vld [vmem:[%s6040_s23 + $0x30] sm:$0xff]  ;;  %v6407_v4 = vld [vmem:[%s6040_s23 + $0x28] sm:$0xff] }
  0xe5   : > { %v1920_v45 = vsel %vm1903_vm9, %v1911_v36, %v6319_v37  ;;  %v2203_v12 = vsel %vm2200_vm10, %v2201_v60, %v2202_v61  ;;  %v1934_v36 = vshll.u32 %v5721_v24, 16  ;;  %v1684_v13 = vrot.slane %v6404_v3, 2 }
  0xe6   : > { %v771_v7 = vpop.f32.mrf.mxu2  ;;  %v570_v25 = vpop.f32.mrf.mxu1  ;;  %v1929_v22 = vsel %vm1903_vm9, %v6319_v37, %v1928_v0 }
  0xe7   : > { %v833_v21 = vadd.f32 %v815_v20, %v771_v7  ;;  %v1936_v46 = vrot.slane %v1934_v36, 3 }
  0xe8   : > { %v1282_v26 = vpop.f32.mrf.mxu0 }
  0xe9   : > { %v1034_v31 = vld [vmem:[#allocation2] sm:$0xff]  ;;  %851 = vst.msk [vmem:[#allocation2 + $0x8] sm:$0xff] %vm352_vm7, %v833_v21 }
  0xea   : > { %v1052_v32 = vadd.f32 %v1034_v31, %v989_v19  ;;  %v602_v34 = vld [vmem:[#allocation2 + $0x48] sm:$0xff] }
  0xeb   : > { %v620_v35 = vadd.f32 %v602_v34, %v570_v25  ;;  %5106 = vmatmul.msk.bf16.vlgmr.msra.gmra.mxu2 %vm263_vm2, %v1679_v28  ;;  %5022 = vmatmul.msk.bf16.gmra.mxu0 %vm263_vm2, %v1242_v29  ;;  %v6371_v29 = vld [vmem:[%s6040_s23 + $0x28] sm:$0xff] }
  0xec   : > { %1070 = vst.msk [vmem:[#allocation2] sm:$0xff] %vm352_vm7, %v1052_v32  ;;  %v991_v38 = vpop.f32.mrf.mxu3  ;;  %v1682_v33 = vrot.slane %v6371_v29, 2 }
  0xed   : > { %638 = vst.msk [vmem:[#allocation2 + $0x48] sm:$0xff] %vm352_vm7, %v620_v35  ;;  %v1931_v35 = vshrl.u32 %v5721_v24, 16 }
  0xee   : > { %v774_v41 = vpop.f32.mrf.mxu2  ;;  %v1509_v51 = vpop.f32.mrf.mxu1 }
  0xef   : > { %v834_v43 = vadd.f32 %v816_v42, %v774_v41  ;;  %v819_v42 = vld [vmem:[#allocation2 + $0x28] sm:$0xff] }
  0xf0   : > { %v1035_v49 = vld [vmem:[#allocation2 + $0x8] sm:$0xff]  ;;  %v1284_v50 = vpop.f32.mrf.mxu0 }
  0xf1   : > { %v1053_v57 = vadd.f32 %v1035_v49, %v991_v38  ;;  %852 = vst.msk [vmem:[#allocation2 + $0x10] sm:$0xff] %vm352_vm7, %v834_v43  ;;  %5152 = vmatmul.msk.bf16.vlgmr.msra.gmra.mxu3 %vm263_vm2, %v1920_v45  ;;  %5068 = vmatmul.msk.bf16.gmra.mxu1 %vm263_vm2, %v1469_v52  ;;  %v2204_v38 = vrot.slane %v6374_v30, 3  ;;  %v1933_v45 = vrot.slane %v1931_v35, 2  ;;  %v822_v35 = vld [vmem:[#allocation2 + $0x40] sm:$0xff] }
  0xf3   : > { %v1327_v27 = vld [vmem:[#allocation2] sm:$0xff]  ;;  %1071 = vst.msk [vmem:[#allocation2 + $0x8] sm:$0xff] %vm352_vm7, %v1053_v57  ;;  %v2205_v52 = vsel %vm2200_vm10, %v2202_v61, %v2204_v38  ;;  %v1937_v53 = vor.u32 %v1936_v46, %v1933_v45  ;;  %v5737_v61 = vld [vmem:[%s6040_s23 + $0x50] sm:$0xff] }
  0xf4   : > { %v1345_v58 = vadd.f32 %v1327_v27, %v1282_v26  ;;  %v994_v62 = vpop.f32.mrf.mxu3 }
  0xf5   : > { %v1938_v60 = vsel %vm1903_vm9, %v1928_v0, %v1937_v53 }
  0xf6   : > { %1363 = vst.msk [vmem:[#allocation2] sm:$0xff] %vm352_vm7, %v1345_v58  ;;  %v776_v63 = vpop.f32.mrf.mxu2  ;;  %v1511_v11 = vpop.f32.mrf.mxu1  ;;  %v820_v58 = vld [vmem:[#allocation2 + $0x30] sm:$0xff] }
  0xf7   : > { %v835_v2 = vadd.f32 %v817_v1, %v776_v63 }
  0xf8   : > { %v1036_v8 = vld [vmem:[#allocation2 + $0x10] sm:$0xff]  ;;  %v1287_v9 = vpop.f32.mrf.mxu0 }
  0xf9   : > { %v1054_v14 = vadd.f32 %v1036_v8, %v994_v62  ;;  %853 = vst.msk [vmem:[#allocation2 + $0x18] sm:$0xff] %vm352_vm7, %v835_v2  ;;  %v5722_v62 = vld [vmem:[%s6040_s23 + $0x30] sm:$0xff] }
  0xfa   : > { %v1328_v17 = vld [vmem:[#allocation2 + $0x8] sm:$0xff] }
  0xfb   : > { %v1346_v18 = vadd.f32 %v1328_v17, %v1284_v50  ;;  %1072 = vst.msk [vmem:[#allocation2 + $0x10] sm:$0xff] %vm352_vm7, %v1054_v14  ;;  %5107 = vmatmul.msk.bf16.gmra.mxu2 %vm263_vm2, %v1681_v10  ;;  %5198 = vmatmul.msk.bf16.vlgmr.msra.gmra.mxu0 %vm263_vm2, %v2203_v12  ;;  %v1683_v50 = vsel %vm1450_vm6, %v1680_v59, %v1682_v33  ;;  %v1940_v10 = vshrl.u32 %v5722_v62, 16  ;;  %v2206_v14 = vrot.slane %v6407_v4, 3 }
  0xfc   : > { %v996_v19 = vpop.f32.mrf.mxu3 }
  0xfd   : > { %1364 = vst.msk [vmem:[#allocation2 + $0x8] sm:$0xff] %vm352_vm7, %v1346_v18  ;;  %v1554_v15 = vld [vmem:[#allocation2] sm:$0xff]  ;;  %v2207_v24 = vsel %vm2200_vm10, %v2204_v38, %v2206_v14  ;;  %v5723_v38 = vld [vmem:[%s6040_s23 + $0x38] sm:$0xff] }
  0xfe   : > { %v1572_v7 = vadd.f32 %v1554_v15, %v1509_v51  ;;  %v779_v20 = vpop.f32.mrf.mxu2  ;;  %v1514_v28 = vpop.f32.mrf.mxu1  ;;  %v821_v15 = vld [vmem:[#allocation2 + $0x38] sm:$0xff] }
  0xff   : > { %v836_v21 = vadd.f32 %v818_v16, %v779_v20 }
 0x100   : > { %1590 = vst.msk [vmem:[#allocation2] sm:$0xff] %vm352_vm7, %v1572_v7  ;;  %v1037_v25 = vld [vmem:[#allocation2 + $0x18] sm:$0xff]  ;;  %v1289_v26 = vpop.f32.mrf.mxu0  ;;  %v1942_v7 = vrot.slane %v1940_v10, 2  ;;  %v824_v10 = vld [vmem:[#allocation2 + $0x50] sm:$0xff] }
 0x101   : > { %v1055_v31 = vadd.f32 %v1037_v25, %v996_v19  ;;  %854 = vst.msk [vmem:[#allocation2 + $0x20] sm:$0xff] %vm352_vm7, %v836_v21  ;;  %5153 = vmatmul.msk.bf16.gmra.mxu3 %vm263_vm2, %v1929_v22  ;;  %5257 = vmatmul.msk.bf16.vlgmr.msra.gmra.mxu1 %vm263_vm2, %v5736_v23  ;;  %v1685_v22 = vsel %vm1450_vm6, %v1682_v33, %v1684_v13  ;;  %v5738_v33 = vld [vmem:[%s6040_s23 + $0x58] sm:$0xff] }
 0x102   : > { %v1329_v32 = vld [vmem:[#allocation2 + $0x10] sm:$0xff] }
 0x103   : > { %v1347_v34 = vadd.f32 %v1329_v32, %v1287_v9  ;;  %1073 = vst.msk [vmem:[#allocation2 + $0x18] sm:$0xff] %vm352_vm7, %v1055_v31 }
 0x104   : > { %v1555_v37 = vld [vmem:[#allocation2 + $0x8] sm:$0xff]  ;;  %v999_v40 = vpop.f32.mrf.mxu3 }
 0x105   : > { %1365 = vst.msk [vmem:[#allocation2 + $0x10] sm:$0xff] %vm352_vm7, %v1347_v34  ;;  %v1573_v39 = vadd.f32 %v1555_v37, %v1511_v11  ;;  %v1943_v11 = vshll.u32 %v5722_v62, 16 }
 0x106   : > { %v781_v41 = vpop.f32.mrf.mxu2  ;;  %v1516_v51 = vpop.f32.mrf.mxu1 }
 0x107   : > { %1591 = vst.msk [vmem:[#allocation2 + $0x8] sm:$0xff] %vm352_vm7, %v1573_v39  ;;  %v837_v43 = vadd.f32 %v819_v42, %v781_v41  ;;  %v1945_v20 = vrot.slane %v1943_v11, 3  ;;  %v6437_v42 = vld [vmem:[%s6040_s23 + $0x38] sm:$0xff] }
 0x108   : > { %v1038_v47 = vld [vmem:[#allocation2 + $0x20] sm:$0xff]  ;;  %v1292_v49 = vpop.f32.mrf.mxu0 }
 0x109   : > { %v1056_v55 = vadd.f32 %v1038_v47, %v999_v40  ;;  %855 = vst.msk [vmem:[#allocation2 + $0x28] sm:$0xff] %vm352_vm7, %v837_v43  ;;  %v1946_v29 = vor.u32 %v1945_v20, %v1942_v7  ;;  %v6440_v43 = vld [vmem:[%s6040_s23 + $0x30] sm:$0xff] }
 0x10a   : > { %v1330_v56 = vld [vmem:[#allocation2 + $0x18] sm:$0xff] }
 0x10b   : > { %v1348_v57 = vadd.f32 %v1330_v56, %v1289_v26  ;;  %1074 = vst.msk [vmem:[#allocation2 + $0x20] sm:$0xff] %vm352_vm7, %v1056_v55  ;;  %5108 = vmatmul.msk.bf16.gmra.mxu2 %vm263_vm2, %v1683_v50  ;;  %5199 = vmatmul.msk.bf16.gmra.mxu0 %vm263_vm2, %v2205_v52  ;;  %v1947_v37 = vsel %vm1903_vm9, %v1937_v53, %v1946_v29  ;;  %v1952_v50 = vshll.u32 %v5723_v38, 16  ;;  %v1686_v52 = vrot.slane %v6437_v42, 2 }
 0x10c   : > { %v1556_v27 = vld [vmem:[#allocation2 + $0x10] sm:$0xff]  ;;  %v1001_v44 = vpop.f32.mrf.mxu3  ;;  %v2208_v55 = vrot.slane %v6440_v43, 3 }
 0x10d   : > { %1366 = vst.msk [vmem:[#allocation2 + $0x18] sm:$0xff] %vm352_vm7, %v1348_v57  ;;  %v1574_v54 = vadd.f32 %v1556_v27, %v1514_v28  ;;  %v823_v27 = vld [vmem:[#allocation2 + $0x48] sm:$0xff] }
 0x10e   : > { %v784_v48 = vpop.f32.mrf.mxu2  ;;  %v1519_v2 = vpop.f32.mrf.mxu1  ;;  %v2209_v62 = vsel %vm2200_vm10, %v2206_v14, %v2208_v55  ;;  %v5724_v14 = vld [vmem:[%s6040_s23 + $0x40] sm:$0xff] }
 0x10f   : > { %1592 = vst.msk [vmem:[#allocation2 + $0x10] sm:$0xff] %vm352_vm7, %v1574_v54  ;;  %v838_v59 = vadd.f32 %v820_v58, %v784_v48  ;;  %v1954_v48 = vrot.slane %v1952_v50, 3 }
 0x110   : > { %v1039_v63 = vld [vmem:[#allocation2 + $0x28] sm:$0xff]  ;;  %v1294_v1 = vpop.f32.mrf.mxu0 }
 0x111   : > { %v1057_v6 = vadd.f32 %v1039_v63, %v1001_v44  ;;  %856 = vst.msk [vmem:[#allocation2 + $0x30] sm:$0xff] %vm352_vm7, %v838_v59  ;;  %5154 = vmatmul.msk.bf16.gmra.mxu3 %vm263_vm2, %v1938_v60  ;;  %5258 = vmatmul.msk.bf16.gmra.mxu1 %vm263_vm2, %v5737_v61  ;;  %v1687_v60 = vsel %vm1450_vm6, %v1684_v13, %v1686_v52  ;;  %v5739_v13 = vld [vmem:[%s6040_s23 + $0x60] sm:$0xff] }
 0x112   : > { %v1331_v8 = vld [vmem:[#allocation2 + $0x20] sm:$0xff] }
 0x113   : > { %v1349_v9 = vadd.f32 %v1331_v8, %v1292_v49  ;;  %1075 = vst.msk [vmem:[#allocation2 + $0x28] sm:$0xff] %vm352_vm7, %v1057_v6  ;;  %v1949_v49 = vshrl.u32 %v5723_v38, 16 }
 0x114   : > { %v1557_v12 = vld [vmem:[#allocation2 + $0x18] sm:$0xff]  ;;  %v1004_v18 = vpop.f32.mrf.mxu3 }
 0x115   : > { %1367 = vst.msk [vmem:[#allocation2 + $0x20] sm:$0xff] %vm352_vm7, %v1349_v9  ;;  %v1575_v17 = vadd.f32 %v1557_v12, %v1516_v51  ;;  %v1951_v44 = vrot.slane %v1949_v49, 2  ;;  %v826_v49 = vld [vmem:[#allocation2 + $0x60] sm:$0xff] }
 0x116   : > { %v786_v0 = vpop.f32.mrf.mxu2  ;;  %v1521_v23 = vpop.f32.mrf.mxu1 }
 0x117   : > { %1593 = vst.msk [vmem:[#allocation2 + $0x18] sm:$0xff] %vm352_vm7, %v1575_v17  ;;  %v839_v19 = vadd.f32 %v821_v15, %v786_v0  ;;  %v1955_v3 = vor.u32 %v1954_v48, %v1951_v44  ;;  %v6470_v15 = vld [vmem:[%s6040_s23 + $0x40] sm:$0xff] }
 0x118   : > { %v1040_v16 = vld [vmem:[#allocation2 + $0x30] sm:$0xff]  ;;  %v1297_v21 = vpop.f32.mrf.mxu0 }
 0x119   : > { %v1058_v25 = vadd.f32 %v1040_v16, %v1004_v18  ;;  %857 = vst.msk [vmem:[#allocation2 + $0x38] sm:$0xff] %vm352_vm7, %v839_v19  ;;  %v1956_v12 = vsel %vm1903_vm9, %v1946_v29, %v1955_v3  ;;  %v6473_v19 = vld [vmem:[%s6040_s23 + $0x38] sm:$0xff] }
 0x11a   : > { %v1332_v26 = vld [vmem:[#allocation2 + $0x28] sm:$0xff] }
 0x11b   : > { %v1350_v28 = vadd.f32 %v1332_v26, %v1294_v1  ;;  %1076 = vst.msk [vmem:[#allocation2 + $0x30] sm:$0xff] %vm352_vm7, %v1058_v25  ;;  %5109 = vmatmul.msk.bf16.gmra.mxu2 %vm263_vm2, %v1685_v22  ;;  %5200 = vmatmul.msk.bf16.gmra.mxu0 %vm263_vm2, %v2207_v24  ;;  %v1961_v22 = vshll.u32 %v5724_v14, 16  ;;  %v1688_v24 = vrot.slane %v6470_v15, 2  ;;  %v2210_v25 = vrot.slane %v6473_v19, 3 }
 0x11c   : > { %v1558_v31 = vld [vmem:[#allocation2 + $0x20] sm:$0xff]  ;;  %v1006_v32 = vpop.f32.mrf.mxu3 }
 0x11d   : > { %1368 = vst.msk [vmem:[#allocation2 + $0x28] sm:$0xff] %vm352_vm7, %v1350_v28  ;;  %v1576_v30 = vadd.f32 %v1558_v31, %v1519_v2  ;;  %v825_v31 = vld [vmem:[#allocation2 + $0x58] sm:$0xff]  ;;  %v2211_v38 = vsel %vm2200_vm10, %v2208_v55, %v2210_v25  ;;  %v5725_v55 = vld [vmem:[%s6040_s23 + $0x48] sm:$0xff] }
 0x11e   : > { %v789_v34 = vpop.f32.mrf.mxu2  ;;  %v1524_v41 = vpop.f32.mrf.mxu1 }
 0x11f   : > { %1594 = vst.msk [vmem:[#allocation2 + $0x20] sm:$0xff] %vm352_vm7, %v1576_v30  ;;  %v840_v36 = vadd.f32 %v822_v35, %v789_v34  ;;  %v1963_v34 = vrot.slane %v1961_v22, 3 }
 0x120   : > { %v1041_v39 = vld [vmem:[#allocation2 + $0x38] sm:$0xff]  ;;  %v1299_v40 = vpop.f32.mrf.mxu0 }
 0x121   : > { %v1059_v45 = vadd.f32 %v1041_v39, %v1006_v32  ;;  %858 = vst.msk [vmem:[#allocation2 + $0x40] sm:$0xff] %vm352_vm7, %v840_v36  ;;  %5155 = vmatmul.msk.bf16.gmra.mxu3 %vm263_vm2, %v1947_v37  ;;  %5259 = vmatmul.msk.bf16.gmra.mxu1 %vm263_vm2, %v5738_v33  ;;  %v1689_v37 = vsel %vm1450_vm6, %v1686_v52, %v1688_v24  ;;  %v5740_v52 = vld [vmem:[%s6040_s23 + $0x68] sm:$0xff] }
 0x122   : > { %v1333_v46 = vld [vmem:[#allocation2 + $0x30] sm:$0xff] }
 0x123   : > { %v1351_v47 = vadd.f32 %v1333_v46, %v1297_v21  ;;  %1077 = vst.msk [vmem:[#allocation2 + $0x38] sm:$0xff] %vm352_vm7, %v1059_v45  ;;  %v1958_v21 = vshrl.u32 %v5724_v14, 16 }
 0x124   : > { %v1559_v51 = vld [vmem:[#allocation2 + $0x28] sm:$0xff]  ;;  %v1009_v57 = vpop.f32.mrf.mxu3 }
 0x125   : > { %1369 = vst.msk [vmem:[#allocation2 + $0x30] sm:$0xff] %vm352_vm7, %v1351_v47  ;;  %v1577_v56 = vadd.f32 %v1559_v51, %v1521_v23  ;;  %v1960_v32 = vrot.slane %v1958_v21, 2  ;;  %v828_v21 = vld [vmem:[#allocation2 + $0x70] sm:$0xff] }
 0x126   : > { %v791_v53 = vpop.f32.mrf.mxu2  ;;  %v1526_v61 = vpop.f32.mrf.mxu1 }
 0x127   : > { %1595 = vst.msk [vmem:[#allocation2 + $0x28] sm:$0xff] %vm352_vm7, %v1577_v56  ;;  %v841_v54 = vadd.f32 %v823_v27, %v791_v53  ;;  %v1964_v42 = vor.u32 %v1963_v34, %v1960_v32  ;;  %v6503_v27 = vld [vmem:[%s6040_s23 + $0x48] sm:$0xff] }
 0x128   : > { %v1042_v58 = vld [vmem:[#allocation2 + $0x40] sm:$0xff]  ;;  %v1302_v59 = vpop.f32.mrf.mxu0 }
 0x129   : > { %v1060_v63 = vadd.f32 %v1042_v58, %v1009_v57  ;;  %859 = vst.msk [vmem:[#allocation2 + $0x48] sm:$0xff] %vm352_vm7, %v841_v54  ;;  %v1965_v51 = vsel %vm1903_vm9, %v1955_v3, %v1964_v42  ;;  %v6506_v54 = vld [vmem:[%s6040_s23 + $0x40] sm:$0xff] }
 0x12a   : > { %v1334_v1 = vld [vmem:[#allocation2 + $0x38] sm:$0xff] }
 0x12b   : > { %v1352_v2 = vadd.f32 %v1334_v1, %v1299_v40  ;;  %1078 = vst.msk [vmem:[#allocation2 + $0x40] sm:$0xff] %vm352_vm7, %v1060_v63  ;;  %5110 = vmatmul.msk.bf16.gmra.mxu2 %vm263_vm2, %v1687_v60  ;;  %5201 = vmatmul.msk.bf16.gmra.mxu0 %vm263_vm2, %v2209_v62  ;;  %v1970_v60 = vshll.u32 %v5725_v55, 16  ;;  %v1690_v62 = vrot.slane %v6503_v27, 2  ;;  %v2212_v63 = vrot.slane %v6506_v54, 3 }
 0x12c   : > { %v1560_v6 = vld [vmem:[#allocation2 + $0x30] sm:$0xff]  ;;  %v1011_v8 = vpop.f32.mrf.mxu3 }
 0x12d   : > { %1370 = vst.msk [vmem:[#allocation2 + $0x38] sm:$0xff] %vm352_vm7, %v1352_v2  ;;  %v1578_v4 = vadd.f32 %v1560_v6, %v1524_v41  ;;  %v827_v6 = vld [vmem:[#allocation2 + $0x68] sm:$0xff]  ;;  %v2213_v14 = vsel %vm2200_vm10, %v2210_v25, %v2212_v63  ;;  %v5726_v25 = vld [vmem:[%s6040_s23 + $0x50] sm:$0xff] }
 0x12e   : > { %v794_v9 = vpop.f32.mrf.mxu2  ;;  %v1529_v0 = vpop.f32.mrf.mxu1 }
 0x12f   : > { %1596 = vst.msk [vmem:[#allocation2 + $0x30] sm:$0xff] %vm352_vm7, %v1578_v4  ;;  %v842_v11 = vadd.f32 %v824_v10, %v794_v9  ;;  %v1972_v9 = vrot.slane %v1970_v60, 3 }
 0x130   : > { %v1043_v17 = vld [vmem:[#allocation2 + $0x48] sm:$0xff]  ;;  %v1304_v18 = vpop.f32.mrf.mxu0 }
 0x131   : > { %v1061_v7 = vadd.f32 %v1043_v17, %v1011_v8  ;;  %860 = vst.msk [vmem:[#allocation2 + $0x50] sm:$0xff] %vm352_vm7, %v842_v11  ;;  %5156 = vmatmul.msk.bf16.gmra.mxu3 %vm263_vm2, %v1956_v12  ;;  %5260 = vmatmul.msk.bf16.gmra.mxu1 %vm263_vm2, %v5739_v13  ;;  %v1691_v12 = vsel %vm1450_vm6, %v1688_v24, %v1690_v62  ;;  %v5741_v24 = vld [vmem:[%s6040_s23 + $0x70] sm:$0xff] }
 0x132   : > { %v1335_v20 = vld [vmem:[#allocation2 + $0x40] sm:$0xff] }
 0x133   : > { %v1353_v16 = vadd.f32 %v1335_v20, %v1302_v59  ;;  %1079 = vst.msk [vmem:[#allocation2 + $0x48] sm:$0xff] %vm352_vm7, %v1061_v7  ;;  %v1967_v59 = vshrl.u32 %v5725_v55, 16 }
 0x134   : > { %v1561_v23 = vld [vmem:[#allocation2 + $0x38] sm:$0xff]  ;;  %v1014_v28 = vpop.f32.mrf.mxu3 }
 0x135   : > { %1371 = vst.msk [vmem:[#allocation2 + $0x40] sm:$0xff] %vm352_vm7, %v1353_v16  ;;  %v1579_v26 = vadd.f32 %v1561_v23, %v1526_v61  ;;  %v1969_v8 = vrot.slane %v1967_v59, 2 }
 0x136   : > { %v796_v29 = vpop.f32.mrf.mxu2  ;;  %v1531_v33 = vpop.f32.mrf.mxu1 }
 0x137   : > { %1597 = vst.msk [vmem:[#allocation2 + $0x38] sm:$0xff] %vm352_vm7, %v1579_v26  ;;  %v843_v30 = vadd.f32 %v825_v31, %v796_v29  ;;  %v6530_v15 = vor.u32 %v1972_v9, %v1969_v8  ;;  %v6539_v31 = vld [vmem:[%s6040_s23 + $0x50] sm:$0xff] }
 0x138   : > { %v1044_v35 = vld [vmem:[#allocation2 + $0x50] sm:$0xff]  ;;  %v1307_v36 = vpop.f32.mrf.mxu0 }
 0x139   : > { %v1062_v39 = vadd.f32 %v1044_v35, %v1014_v28  ;;  %861 = vst.msk [vmem:[#allocation2 + $0x58] sm:$0xff] %vm352_vm7, %v843_v30  ;;  %v1974_v23 = vsel %vm1903_vm9, %v1964_v42, %v6530_v15  ;;  %v6542_v30 = vld [vmem:[%s6040_s23 + $0x48] sm:$0xff] }
 0x13a   : > { %v1336_v40 = vld [vmem:[#allocation2 + $0x48] sm:$0xff] }
 0x13b   : > { %v1354_v41 = vadd.f32 %v1336_v40, %v1304_v18  ;;  %1080 = vst.msk [vmem:[#allocation2 + $0x50] sm:$0xff] %vm352_vm7, %v1062_v39  ;;  %5111 = vmatmul.msk.bf16.gmra.mxu2 %vm263_vm2, %v1689_v37  ;;  %5202 = vmatmul.msk.bf16.gmra.mxu0 %vm263_vm2, %v2211_v38  ;;  %v1979_v37 = vshll.u32 %v5726_v25, 16  ;;  %v1692_v38 = vrot.slane %v6539_v31, 2  ;;  %v2214_v39 = vrot.slane %v6542_v30, 3  ;;  %v6605_v30 = vld [vmem:[%s6040_s23 + $0x50] sm:$0xff] }
 0x13c   : > { %v1562_v45 = vld [vmem:[#allocation2 + $0x40] sm:$0xff]  ;;  %v1016_v46 = vpop.f32.mrf.mxu3 }
 0x13d   : > { %1372 = vst.msk [vmem:[#allocation2 + $0x48] sm:$0xff] %vm352_vm7, %v1354_v41  ;;  %v1580_v43 = vadd.f32 %v1562_v45, %v1529_v0  ;;  %v829_v45 = vld [vmem:[#allocation2 + $0x78] sm:$0xff]  ;;  %v2215_v55 = vsel %vm2200_vm10, %v2212_v63, %v2214_v39  ;;  %v830_v63 = vld [vmem:[#allocation2 + $0x80] sm:$0xff] }
 0x13e   : > { %v799_v47 = vpop.f32.mrf.mxu2  ;;  %v1534_v53 = vpop.f32.mrf.mxu1 }
 0x13f   : > { %1598 = vst.msk [vmem:[#allocation2 + $0x40] sm:$0xff] %vm352_vm7, %v1580_v43  ;;  %v844_v50 = vadd.f32 %v826_v49, %v799_v47  ;;  %v1981_v47 = vrot.slane %v1979_v37, 3 }
 0x140   : > { %v1045_v56 = vld [vmem:[#allocation2 + $0x58] sm:$0xff]  ;;  %v1309_v57 = vpop.f32.mrf.mxu0 }
 0x141   : > { %v1063_v44 = vadd.f32 %v1045_v56, %v1016_v46  ;;  %862 = vst.msk [vmem:[#allocation2 + $0x60] sm:$0xff] %vm352_vm7, %v844_v50  ;;  %5157 = vmatmul.msk.bf16.gmra.mxu3 %vm263_vm2, %v1965_v51  ;;  %5261 = vmatmul.msk.bf16.gmra.mxu1 %vm263_vm2, %v5740_v52  ;;  %v1693_v51 = vsel %vm1450_vm6, %v1690_v62, %v1692_v38  ;;  %v1852_v56 = vld [vmem:[%s6040_s23 + $0x58] sm:$0x3] }
 0x142   : > { %v1337_v48 = vld [vmem:[#allocation2 + $0x50] sm:$0xff] }
 0x143   : > { %v1355_v58 = vadd.f32 %v1337_v48, %v1307_v36  ;;  %1081 = vst.msk [vmem:[#allocation2 + $0x58] sm:$0xff] %vm352_vm7, %v1063_v44  ;;  %v1976_v36 = vshrl.u32 %v5726_v25, 16 }
 0x144   : > { %v1563_v61 = vld [vmem:[#allocation2 + $0x48] sm:$0xff]  ;;  %v1019_v2 = vpop.f32.mrf.mxu3 }
 0x145   : > { %1373 = vst.msk [vmem:[#allocation2 + $0x50] sm:$0xff] %vm352_vm7, %v1355_v58  ;;  %v1581_v1 = vadd.f32 %v1563_v61, %v1531_v33  ;;  %v1978_v46 = vrot.slane %v1976_v36, 2  ;;  %v1892_v58 = vunpack.c.l.b16 %v1852_v56  ;;  %v5745_v36 = vld [vmem:[%s6040_s23 + $0x48] sm:$0xff] }
 0x146   : > { %v801_v3 = vpop.f32.mrf.mxu2  ;;  %v1536_v13 = vpop.f32.mrf.mxu1 }
 0x147   : > { %1599 = vst.msk [vmem:[#allocation2 + $0x48] sm:$0xff] %vm352_vm7, %v1581_v1  ;;  %v845_v4 = vadd.f32 %v827_v6, %v801_v3  ;;  %v6568_v27 = vor.u32 %v1981_v47, %v1978_v46  ;;  %v5742_v3 = vld [vmem:[%s6040_s23 + $0x78] sm:$0xff]  ;;  %v1902_v6 = vpack.c.b16 %v1892_v58, %v1892_v58  ;;  %v1780_v47 = vld [vmem:[#allocation2] sm:$0xff] }
 0x148   : > { %v1046_v10 = vld [vmem:[#allocation2 + $0x60] sm:$0xff]  ;;  %v1312_v11 = vpop.f32.mrf.mxu0 }
 0x149   : > { %v1064_v17 = vadd.f32 %v1046_v10, %v1019_v2  ;;  %863 = vst.msk [vmem:[#allocation2 + $0x68] sm:$0xff] %vm352_vm7, %v845_v4  ;;  %v1983_v2 = vsel %vm1903_vm9, %v6530_v15, %v6568_v27 }
 0x14a   : > { %v1338_v18 = vld [vmem:[#allocation2 + $0x58] sm:$0xff] }
 0x14b   : > { %v1356_v0 = vadd.f32 %v1338_v18, %v1309_v57  ;;  %1082 = vst.msk [vmem:[#allocation2 + $0x60] sm:$0xff] %vm352_vm7, %v1064_v17  ;;  %5112 = vmatmul.msk.bf16.gmra.mxu2 %vm263_vm2, %v1691_v12  ;;  %5203 = vmatmul.msk.bf16.gmra.mxu0 %vm263_vm2, %v2213_v14  ;;  %v1985_v17 = vshrl.u32 %v1902_v6, 16  ;;  %v1988_v18 = vshll.u32 %v1902_v6, 16  ;;  %v5496_v6 = vld [vmem:[%s7696_s1 + $0xc] sm:$0x3] }
 0x14c   : > { %v1564_v19 = vld [vmem:[#allocation2 + $0x50] sm:$0xff]  ;;  %v1021_v20 = vpop.f32.mrf.mxu3 }
 0x14d   : > { %1374 = vst.msk [vmem:[#allocation2 + $0x58] sm:$0xff] %vm352_vm7, %v1356_v0  ;;  %v1582_v7 = vadd.f32 %v1564_v19, %v1534_v53  ;;  %v1626_v53 = vld [vmem:[%s6040_s23 + $0x58] sm:$0x1]  ;;  %v1987_v25 = vrot.slane %v1985_v17, 2 }
 0x14e   : > { %v804_v16 = vpop.f32.mrf.mxu2  ;;  %v1539_v29 = vpop.f32.mrf.mxu1  ;;  %v1666_v59 = vunpack.c.l.b16 %v1626_v53 }
 0x14f   : > { %1600 = vst.msk [vmem:[#allocation2 + $0x50] sm:$0xff] %vm352_vm7, %v1582_v7  ;;  %v846_v22 = vadd.f32 %v828_v21, %v804_v16  ;;  %v5450_v16 = vld [vmem:[%s7696_s1 + $0xa] sm:$0x3] }
 0x150   : > { %v1047_v26 = vld [vmem:[#allocation2 + $0x68] sm:$0xff]  ;;  %v1314_v28 = vpop.f32.mrf.mxu0  ;;  %v1676_v10 = vpack.c.b16 %v1666_v59, %v1666_v59 }
 0x151   : > { %v1065_v32 = vadd.f32 %v1047_v26, %v1021_v20  ;;  %864 = vst.msk [vmem:[#allocation2 + $0x70] sm:$0xff] %vm352_vm7, %v846_v22  ;;  %5158 = vmatmul.msk.bf16.gmra.mxu3 %vm263_vm2, %v1974_v23  ;;  %5262 = vmatmul.msk.bf16.gmra.mxu1 %vm263_vm2, %v5741_v24  ;;  %v831_v21 = vld [vmem:[#allocation2 + $0x88] sm:$0x3f]  ;;  %v3751_v23 = vand.u32 %v5450_v16, %v6019_v5  ;;  %v1990_v26 = vrot.slane %v1988_v18, 3 }
 0x152   : > { %v1339_v34 = vld [vmem:[#allocation2 + $0x60] sm:$0xff]  ;;  %v1694_v15 = vrot.slane %v1676_v10, 2 }
 0x153   : > { %v1357_v35 = vadd.f32 %v1339_v34, %v1312_v11  ;;  %1083 = vst.msk [vmem:[#allocation2 + $0x68] sm:$0xff] %vm352_vm7, %v1065_v32  ;;  %v6577_v11 = vld [vmem:[%s6040_s23 + $0x50] sm:$0xff]  ;;  %3760 = vmatpush.bf16.msra.mxu2 %v3751_v23  ;;  %v1991_v31 = vor.u32 %v1990_v26, %v1987_v25  ;;  %v6640_v23 = vld [vmem:[%s6040_s23 + $0x58] sm:$0xff] }
 0x154   : > { %v1565_v33 = vld [vmem:[#allocation2 + $0x58] sm:$0xff]  ;;  %v1024_v41 = vpop.f32.mrf.mxu3  ;;  %v2216_v19 = vrot.slane %v6577_v11, 3  ;;  %v1695_v32 = vsel %vm1450_vm6, %v1692_v38, %v1694_v15  ;;  %v5255_v11 = vld [vmem:[%s6040_s23 + $0x88] sm:$0xf]  ;;  %v5361_v25 = vld [vmem:[%s6040_s23 + $0x50] sm:$0xe] }
 0x155   : > { %1375 = vst.msk [vmem:[#allocation2 + $0x60] sm:$0xff] %vm352_vm7, %v1357_v35  ;;  %v1583_v40 = vadd.f32 %v1565_v33, %v1536_v13  ;;  %v2149_v33 = vld [vmem:[%s6040_s23 + $0x58] sm:$0x3]  ;;  %v5763_v26 = vld [vmem:[%s6040_s23 + $0x50] sm:$0xf0] }
 0x156   : > { %v806_v42 = vpop.f32.mrf.mxu2  ;;  %v1541_v52 = vpop.f32.mrf.mxu1  ;;  %v2217_v35 = vsel %vm2200_vm10, %v2214_v39, %v2216_v19  ;;  %v2701_v39 = vshll.u32 %v5745_v36, 16 }
 0x157   : > { %1601 = vst.msk [vmem:[#allocation2 + $0x58] sm:$0xff] %vm352_vm7, %v1583_v40  ;;  %v847_v43 = vadd.f32 %v829_v45, %v806_v42  ;;  %v2189_v42 = vunpack.c.l.b16 %v2149_v33  ;;  %v2710_v33 = vshrl.u32 %v6605_v30, 16 }
 0x158   : > { %v1048_v49 = vld [vmem:[#allocation2 + $0x70] sm:$0xff]  ;;  %v1317_v50 = vpop.f32.mrf.mxu0  ;;  %v2703_v53 = vrot.slane %v2701_v39, 1  ;;  %v5362_v39 = vor.u32 %v5763_v26, %v5361_v25  ;;  %v1784_v25 = vld [vmem:[#allocation2 + $0x20] sm:$0xff] }
 0x159   : > { %v1066_v57 = vadd.f32 %v1048_v49, %v1024_v41  ;;  %865 = vst.msk [vmem:[#allocation2 + $0x78] sm:$0xff] %vm352_vm7, %v847_v43 }
 0x15a   : > { %v1340_v44 = vld [vmem:[#allocation2 + $0x68] sm:$0xff] }
 0x15b   : > { %v1358_v48 = vadd.f32 %v1340_v44, %v1314_v28  ;;  %1084 = vst.msk [vmem:[#allocation2 + $0x70] sm:$0xff] %vm352_vm7, %v1066_v57  ;;  %5113 = vmatmul.msk.bf16.gmra.mxu2 %vm263_vm2, %v1693_v51  ;;  %5204 = vmatmul.msk.bf16.gmra.mxu0 %vm263_vm2, %v2215_v55  ;;  %v5743_v51 = vld [vmem:[%s6040_s23 + $0x80] sm:$0xff]  ;;  %v2699_v57 = vshrl.u32 %v5745_v36, 16  ;;  %v2706_v44 = vshll.u32 %v6605_v30, 16  ;;  %v1782_v36 = vld [vmem:[#allocation2 + $0x10] sm:$0xff] }
 0x15c   : > { %v1566_v54 = vld [vmem:[#allocation2 + $0x60] sm:$0xff]  ;;  %v1026_v61 = vpop.f32.mrf.mxu3 }
 0x15d   : > { %1376 = vst.msk [vmem:[#allocation2 + $0x68] sm:$0xff] %vm352_vm7, %v1358_v48  ;;  %v1584_v60 = vadd.f32 %v1566_v54, %v1539_v29  ;;  %v2199_v48 = vpack.c.b16 %v2189_v42, %v2189_v42 }
 0x15e   : > { %v809_v62 = vpop.f32.mrf.mxu2  ;;  %v1544_v9 = vpop.f32.mrf.mxu1 }
 0x15f   : > { %1602 = vst.msk [vmem:[#allocation2 + $0x60] sm:$0xff] %vm352_vm7, %v1584_v60  ;;  %v848_v1 = vadd.f32 %v830_v63, %v809_v62  ;;  %v5754_v60 = vld [vmem:[%s6040_s23 + $0x48] sm:$0xf0]  ;;  %v2704_v62 = vor.u32 %v2703_v53, %v2699_v57  ;;  %v2708_v63 = vrot.slane %v2706_v44, 1 }
 0x160   : > { %v1049_v4 = vld [vmem:[#allocation2 + $0x78] sm:$0xff]  ;;  %v1319_v8 = vpop.f32.mrf.mxu0 }
 0x161   : > { %v1067_v12 = vadd.f32 %v1049_v4, %v1026_v61  ;;  %866 = vst.msk [vmem:[#allocation2 + $0x80] sm:$0xff] %vm352_vm7, %v848_v1  ;;  %5159 = vmatmul.msk.bf16.gmra.mxu3 %vm263_vm2, %v1983_v2  ;;  %5263 = vmatmul.msk.bf16.gmra.mxu1 %vm263_vm2, %v5742_v3  ;;  %v2218_v1 = vrot.slane %v2199_v48, 3  ;;  %v2709_v18 = vsel %vm437_vm3, %v2704_v62, %v2708_v63 }
 0x162   : > { %v1341_v13 = vld [vmem:[#allocation2 + $0x70] sm:$0xff]  ;;  %v2712_v30 = vor.u32 %v2710_v33, %v2708_v63 }
 0x163   : > { %v1359_v14 = vadd.f32 %v1341_v13, %v1317_v50  ;;  %1085 = vst.msk [vmem:[#allocation2 + $0x78] sm:$0xff] %vm352_vm7, %v1067_v12  ;;  %v1992_v50 = vsel %vm1903_vm9, %v6568_v27, %v1991_v31  ;;  %v5315_v27 = vld [vmem:[%s6040_s23 + $0x48] sm:$0xe]  ;;  %v3976_v12 = vand.u32 %v5496_v6, %v6019_v5  ;;  %v2219_v15 = vsel %vm2200_vm10, %v2216_v19, %v2218_v1  ;;  %v5744_v19 = vld [vmem:[%s6040_s23 + $0x88] sm:$0x70] }
 0x164   : > { %v1567_v0 = vld [vmem:[#allocation2 + $0x68] sm:$0xff]  ;;  %v1029_v20 = vpop.f32.mrf.mxu3  ;;  %v5316_v10 = vor.u32 %v5754_v60, %v5315_v27  ;;  %v2714_v31 = vshll.u32 %v6640_v23, 16  ;;  %v1783_v60 = vld [vmem:[#allocation2 + $0x18] sm:$0xff] }
 0x165   : > { %1377 = vst.msk [vmem:[#allocation2 + $0x70] sm:$0xff] %vm352_vm7, %v1359_v14  ;;  %v1585_v7 = vadd.f32 %v1567_v0, %v1541_v52  ;;  %3985 = vmatpush.bf16.msra.mxu3 %v3976_v12 }
 0x166   : > { %v811_v22 = vpop.f32.mrf.mxu2  ;;  %v1546_v34 = vpop.f32.mrf.mxu1  ;;  %v2971_v16 = vrot.slane %v5316_v10, 1 }
 0x167   : > { %1603 = vst.msk [vmem:[#allocation2 + $0x68] sm:$0xff] %vm352_vm7, %v1585_v7  ;;  %v849_v24 = vadd.f32 %v831_v21, %v811_v22 }
 0x168   : > { %v1050_v28 = vld [vmem:[#allocation2 + $0x80] sm:$0xff]  ;;  %v1322_v29 = vpop.f32.mrf.mxu0 }
 0x169   : > { %v1068_v37 = vadd.f32 %v1050_v28, %v1029_v20  ;;  %867 = vst.msk [vmem:[#allocation2 + $0x88] sm:$0x3f] %vm370_vm8, %v849_v24 }
 0x16a   : > { %v1342_v40 = vld [vmem:[#allocation2 + $0x78] sm:$0xff] }
 0x16b   : > { %v1360_v41 = vadd.f32 %v1342_v40, %v1319_v8  ;;  %1086 = vst.msk [vmem:[#allocation2 + $0x80] sm:$0xff] %vm352_vm7, %v1068_v37  ;;  %5114 = vmatmul.msk.bf16.gmra.mxu2 %vm263_vm2, %v1695_v32  ;;  %5205 = vmatmul.msk.bf16.gmra.mxu0 %vm263_vm2, %v2217_v35  ;;  %v1781_v8 = vld [vmem:[#allocation2 + $0x8] sm:$0xff]  ;;  %v5407_v32 = vld [vmem:[%s6040_s23 + $0x50] sm:$0xe] }
 0x16c   : > { %v1568_v38 = vld [vmem:[#allocation2 + $0x70] sm:$0xff]  ;;  %v1031_v43 = vpop.f32.mrf.mxu3 }
 0x16d   : > { %1378 = vst.msk [vmem:[#allocation2 + $0x78] sm:$0xff] %vm352_vm7, %v1360_v41  ;;  %v1586_v45 = vadd.f32 %v1568_v38, %v1544_v9  ;;  %v6624_v9 = vld [vmem:[%s6040_s23 + $0x50] sm:$0xff]  ;;  %v5256_v41 = vor.u32 %v5744_v19, %v5255_v11  ;;  %v6654_v38 = vld [vmem:[%s6040_s23 + $0x58] sm:$0xff] }
 0x16e   : > { %v1735_v46 = vpop.f32.mrf.mxu2  ;;  %v1549_v56 = vpop.f32.mrf.mxu1  ;;  %v2972_v21 = vrot.slane %v6624_v9, 1 }
 0x16f   : > { %1604 = vst.msk [vmem:[#allocation2 + $0x70] sm:$0xff] %vm352_vm7, %v1586_v45  ;;  %v1798_v49 = vadd.f32 %v1780_v47, %v1735_v46  ;;  %v5773_v46 = vld [vmem:[%s6040_s23 + $0x58] sm:$0xff] }
 0x170   : > { %v1051_v52 = vld [vmem:[#allocation2 + $0x88] sm:$0x3f]  ;;  %v1324_v55 = vpop.f32.mrf.mxu0  ;;  %v2973_v37 = vsel %vm712_vm4, %v2971_v16, %v2972_v21  ;;  %v3422_v48 = vshrl.u32 %v5773_v46, 16 }
 0x171   : > { %v1069_v58 = vadd.f32 %v1051_v52, %v1031_v43  ;;  %1816 = vst.msk [vmem:[#allocation2] sm:$0xff] %vm352_vm7, %v1798_v49  ;;  %5160 = vmatmul.msk.bf16.gmra.mxu3 %vm263_vm2, %v1992_v50  ;;  %5264 = vmatmul.msk.bf16.gmra.mxu1 %vm263_vm2, %v5743_v51  ;;  %v6661_v52 = vrot.slane %v2714_v31, 1 }
 0x172   : > { %v1343_v54 = vld [vmem:[#allocation2 + $0x80] sm:$0xff]  ;;  %v3424_v10 = vrot.slane %v3422_v48, 1 }
 0x173   : > { %v1361_v59 = vadd.f32 %v1343_v54, %v1322_v29  ;;  %1087 = vst.msk [vmem:[#allocation2 + $0x88] sm:$0x3f] %vm370_vm8, %v1069_v58  ;;  %v3425_v58 = vshll.u32 %v5773_v46, 16  ;;  %v2717_v63 = vsel %vm437_vm3, %v2712_v30, %v6661_v52 }
 0x174   : > { %v1569_v61 = vld [vmem:[#allocation2 + $0x78] sm:$0xff]  ;;  %v2032_v3 = vpop.f32.mrf.mxu3 }
 0x175   : > { %1379 = vst.msk [vmem:[#allocation2 + $0x80] sm:$0xff] %vm352_vm7, %v1361_v59  ;;  %v1587_v2 = vadd.f32 %v1569_v61, %v1546_v34  ;;  %v5772_v34 = vld [vmem:[%s6040_s23 + $0x50] sm:$0xf0]  ;;  %v6666_v61 = vld [vmem:[%s6040_s23 + $0x58] sm:$0xff]  ;;  %v3427_v12 = vrot.slane %v3425_v58, 2 }
 0x176   : > { %v1737_v4 = vpop.f32.mrf.mxu2  ;;  %v1551_v0 = vpop.f32.mrf.mxu1  ;;  %v5408_v47 = vor.u32 %v5772_v34, %v5407_v32 }
 0x177   : > { %1605 = vst.msk [vmem:[#allocation2 + $0x78] sm:$0xff] %vm352_vm7, %v1587_v2  ;;  %v1799_v13 = vadd.f32 %v1781_v8, %v1737_v4  ;;  %v6692_v16 = vor.u32 %v3427_v12, %v3424_v10 }
 0x178   : > { %v2077_v14 = vld [vmem:[#allocation2] sm:$0xff]  ;;  %v2259_v17 = vpop.f32.mrf.mxu0  ;;  %v3414_v53 = vshrl.u32 %v5408_v47, 16  ;;  %v3417_v44 = vshll.u32 %v5408_v47, 16 }
 0x179   : > { %v2095_v7 = vadd.f32 %v2077_v14, %v2032_v3  ;;  %1817 = vst.msk [vmem:[#allocation2 + $0x8] sm:$0xff] %vm352_vm7, %v1799_v13  ;;  %v6679_v13 = vld [vmem:[%s7697_s2] ss:$0 sm:$0xff] }
 0x17a   : > { %v1344_v20 = vld [vmem:[#allocation2 + $0x88] sm:$0x3f]  ;;  %v3416_v4 = vrot.slane %v3414_v53, 1  ;;  %v3419_v8 = vrot.slane %v3417_v44, 2 }
 0x17b   : > { %v1362_v22 = vadd.f32 %v1344_v20, %v1324_v55  ;;  %2113 = vst.msk [vmem:[#allocation2] sm:$0xff] %vm352_vm7, %v2095_v7  ;;  %5303 = vmatmul.msk.bf16.vlgmr.msrb.gmra.mxu2 %vm263_vm2, %v2709_v18  ;;  %5206 = vmatmul.msk.bf16.gmra.mxu0 %vm263_vm2, %v2219_v15  ;;  %v3190_v55 = vrot.slane %v5362_v39, 1  ;;  %v2974_v18 = vrot.slane %v6666_v61, 1  ;;  %v6686_v15 = vld [vmem:[%s7698_s3] ss:$0 sm:$0xff]  ;;  %v1785_v53 = vld [vmem:[#allocation2 + $0x28] sm:$0xff] }
 0x17c   : > { %v1570_v24 = vld [vmem:[#allocation2 + $0x80] sm:$0xff]  ;;  %v2034_v29 = vpop.f32.mrf.mxu3  ;;  %v3420_v20 = vor.u32 %v3419_v8, %v3416_v4 }
 0x17d   : > { %1380 = vst.msk [vmem:[#allocation2 + $0x88] sm:$0x3f] %vm370_vm8, %v1362_v22  ;;  %v1588_v28 = vadd.f32 %v1570_v24, %v1549_v56  ;;  %v3191_v56 = vrot.slane %v6654_v38, 1  ;;  %v6695_v22 = vld [vmem:[%s6040_s23 + $0x60] sm:$0xff]  ;;  %v2975_v26 = vsel %vm712_vm4, %v2972_v21, %v2974_v18 }
 0x17e   : > { %v1740_v35 = vpop.f32.mrf.mxu2  ;;  %v2571_v43 = vpop.f32.mrf.mxu1  ;;  %v3429_v9 = vsel %vm1157_vm5, %v3420_v20, %v6692_v16  ;;  %v2722_v21 = vshll.u32 %v6695_v22, 16  ;;  %v2726_v20 = vshrl.u32 %v6695_v22, 16 }
 0x17f   : > { %1606 = vst.msk [vmem:[#allocation2 + $0x80] sm:$0xff] %vm352_vm7, %v1588_v28  ;;  %v1800_v40 = vadd.f32 %v1782_v36, %v1740_v35  ;;  %v3192_v1 = vsel %vm712_vm4, %v3190_v55, %v3191_v56  ;;  %v5542_v28 = vld [vmem:[%s7696_s1 + $0xe] sm:$0x3]  ;;  %v2718_v35 = vshrl.u32 %v6640_v23, 16 }
 0x180   : > { %v2078_v42 = vld [vmem:[#allocation2 + $0x8] sm:$0xff]  ;;  %v2261_v45 = vpop.f32.mrf.mxu0  ;;  %v4271_v34 = vand.u32 %v5542_v28, %v6019_v5  ;;  %v2724_v47 = vrot.slane %v2722_v21, 1 }
 0x181   : > { %v2096_v49 = vadd.f32 %v2078_v42, %v2034_v29  ;;  %1818 = vst.msk [vmem:[#allocation2 + $0x10] sm:$0xff] %vm352_vm7, %v1800_v40  ;;  %5349 = vmatmul.msk.bf16.vlgmr.msrb.gmra.mxu3 %vm263_vm2, %v2973_v37  ;;  %5265 = vmatmul.msk.bf16.gmra.mxu1 %vm263_vm2, %v5256_v41  ;;  %v6719_v40 = vld [vmem:[%s6040_s23 + $0x60] sm:$0xff]  ;;  %v6778_v28 = vld [vmem:[%s6040_s23 + $0x68] sm:$0xff] }
 0x182   : > { %v2304_v50 = vld [vmem:[#allocation2] sm:$0xff]  ;;  %4280 = vmatpush.bf16.msra.mxu0 %v4271_v34  ;;  %v2728_v22 = vor.u32 %v2726_v20, %v2724_v47 }
 0x183   : > { %v2322_v51 = vadd.f32 %v2304_v50, %v2259_v17  ;;  %2114 = vst.msk [vmem:[#allocation2 + $0x8] sm:$0xff] %vm352_vm7, %v2096_v49  ;;  %v5774_v41 = vld [vmem:[%s6040_s23 + $0x60] sm:$0xff]  ;;  %v3193_v49 = vrot.slane %v6719_v40, 1 }
 0x184   : > { %v1571_v57 = vld [vmem:[#allocation2 + $0x88] sm:$0x3f]  ;;  %v2037_v59 = vpop.f32.mrf.mxu3  ;;  %v3431_v50 = vshrl.u32 %v5774_v41, 16  ;;  %v3434_v30 = vshll.u32 %v5774_v41, 16 }
 0x185   : > { %2340 = vst.msk [vmem:[#allocation2] sm:$0xff] %vm352_vm7, %v2322_v51  ;;  %v1589_v54 = vadd.f32 %v1571_v57, %v1551_v0  ;;  %v5588_v57 = vld [vmem:[%s7696_s1 + $0x10] sm:$0x3] }
 0x186   : > { %v1742_v27 = vpop.f32.mrf.mxu2  ;;  %v6674_v6 = vpop.f32.mrf.mxu1  ;;  %v4496_v44 = vand.u32 %v5588_v57, %v6019_v5  ;;  %v3194_v5 = vsel %vm712_vm4, %v3191_v56, %v3193_v49  ;;  %v6758_v56 = vld [vmem:[%s6040_s23 + $0x68] sm:$0xff] }
 0x187   : > { %1607 = vst.msk [vmem:[#allocation2 + $0x88] sm:$0x3f] %vm370_vm8, %v1589_v54  ;;  %v1801_v62 = vadd.f32 %v1783_v60, %v1742_v27  ;;  %v6742_v54 = vld [vmem:[%s6040_s23 + $0x60] sm:$0xff] }
 0x188   : > { %v2079_v2 = vld [vmem:[#allocation2 + $0x10] sm:$0xff]  ;;  %v2264_v3 = vpop.f32.mrf.mxu0  ;;  %4505 = vmatpush.bf16.msra.mxu1 %v4496_v44  ;;  %v2976_v38 = vrot.slane %v6742_v54, 1 }
 0x189   : > { %v2097_v14 = vadd.f32 %v2079_v2, %v2037_v59  ;;  %1819 = vst.msk [vmem:[#allocation2 + $0x18] sm:$0xff] %vm352_vm7, %v1801_v62 }
 0x18a   : > { %v2305_v17 = vld [vmem:[#allocation2 + $0x8] sm:$0xff] }
 0x18b   : > { %v2323_v0 = vadd.f32 %v2305_v17, %v2261_v45  ;;  %2115 = vst.msk [vmem:[#allocation2 + $0x10] sm:$0xff] %vm352_vm7, %v2097_v14  ;;  %5304 = vmatmul.msk.bf16.gmra.mxu2 %vm263_vm2, %v2717_v63  ;;  %5395 = vmatmul.msk.bf16.vlgmr.msrb.gmra.mxu0 %vm263_vm2, %v3192_v1  ;;  %v3433_v63 = vrot.slane %v3431_v50, 1  ;;  %v3436_v1 = vrot.slane %v3434_v30, 2  ;;  %v1786_v17 = vld [vmem:[#allocation2 + $0x30] sm:$0xff] }
 0x18c   : > { %v2358_v7 = vld [vmem:[#allocation2] sm:$0xff]  ;;  %v2039_v19 = vpop.f32.mrf.mxu3 }
 0x18d   : > { %2341 = vst.msk [vmem:[#allocation2 + $0x8] sm:$0xff] %vm352_vm7, %v2323_v0  ;;  %v2363_v11 = vmul.f32 %v6679_v13, %v2358_v7  ;;  %v6760_v10 = vor.u32 %v3436_v1, %v3433_v63  ;;  %v2977_v7 = vsel %vm712_vm4, %v2974_v18, %v2976_v38 }
 0x18e   : > { %2616 = vst.msk [vmem:[#allocation2] sm:$0xff] %vm352_vm7, %v2571_v43  ;;  %v1745_v24 = vpop.f32.mrf.mxu2  ;;  %v6713_v33 = vpop.f32.mrf.mxu1  ;;  %v2720_v43 = vor.u32 %v2718_v35, %v6661_v52  ;;  %v3195_v35 = vrot.slane %v6778_v28, 1 }
 0x18f   : > { %v2368_v29 = vadd.f32 %v6686_v15, %v2363_v11  ;;  %v1802_v32 = vadd.f32 %v1784_v25, %v1745_v24  ;;  %v2730_v11 = vshll.u32 %v6758_v56, 16 }
 0x190   : > { %v2080_v36 = vld [vmem:[#allocation2 + $0x18] sm:$0xff]  ;;  %v2266_v37 = vpop.f32.mrf.mxu0  ;;  %v2725_v60 = vsel %vm437_vm3, %v2720_v43, %v2724_v47 }
 0x191   : > { %v2370_v31 = vmax.f32 %v2368_v29, 0.0  ;;  %v2098_v39 = vadd.f32 %v2080_v36, %v2039_v19  ;;  %1820 = vst.msk [vmem:[#allocation2 + $0x20] sm:$0xff] %vm352_vm7, %v1802_v32  ;;  %5350 = vmatmul.msk.bf16.gmra.mxu3 %vm263_vm2, %v2975_v26  ;;  %5441 = vmatmul.msk.bf16.vlgmr.msrb.gmra.mxu1 %vm263_vm2, %v3429_v9  ;;  %v3438_v26 = vsel %vm1157_vm5, %v6692_v16, %v6760_v10  ;;  %v5775_v29 = vld [vmem:[%s6040_s23 + $0x68] sm:$0xff]  ;;  %v2732_v34 = vrot.slane %v2730_v11, 1 }
 0x192   : > { %v2306_v42 = vld [vmem:[#allocation2 + $0x10] sm:$0xff]  ;;  %v3440_v16 = vshrl.u32 %v5775_v29, 16  ;;  %v3443_v36 = vshll.u32 %v5775_v29, 16 }
 0x193   : > { %v2372_v23 = vpack.c.bf16 %v2370_v31, %v2370_v31  ;;  %v2324_v45 = vadd.f32 %v2306_v42, %v2264_v3  ;;  %2116 = vst.msk [vmem:[#allocation2 + $0x18] sm:$0xff] %vm352_vm7, %v2098_v39  ;;  %v1787_v31 = vld [vmem:[#allocation2 + $0x38] sm:$0xff]  ;;  %v2733_v42 = vsel %vm437_vm3, %v2728_v22, %v2732_v34  ;;  %v6847_v22 = vld [vmem:[%s6040_s23 + $0x70] sm:$0xff] }
 0x194   : > { %v2359_v46 = vld [vmem:[#allocation2 + $0x8] sm:$0xff]  ;;  %v2042_v55 = vpop.f32.mrf.mxu3  ;;  %v3442_v50 = vrot.slane %v3440_v16, 1  ;;  %v3445_v30 = vrot.slane %v3443_v36, 2  ;;  %v2980_v28 = vrot.slane %v6847_v22, 1 }
 0x195   : > { %2375 = vst.msk [vmem:[%s6728_s13] sm:$0xf] %vm2374_vm11, %v2372_v23  ;;  %v2364_v51 = vmul.f32 %v6679_v13, %v2359_v46  ;;  %v6792_v23 = vld [vmem:[%s6040_s23 + $0x68] sm:$0xff] }
 0x196   : > { %2342 = vst.msk [vmem:[#allocation2 + $0x10] sm:$0xff] %vm352_vm7, %v2324_v45  ;;  %v1747_v52 = vpop.f32.mrf.mxu2  ;;  %v6745_v62 = vpop.f32.mrf.mxu1  ;;  %v2978_v40 = vrot.slane %v6792_v23, 1 }
 0x197   : > { %v2369_v48 = vadd.f32 %v6686_v15, %v2364_v51  ;;  %2617 = vst.msk [vmem:[#allocation2 + $0x8] sm:$0xff] %vm352_vm7, %v6674_v6  ;;  %v1803_v58 = vadd.f32 %v1785_v53, %v1747_v52 }
 0x198   : > { %v2081_v59 = vld [vmem:[#allocation2 + $0x20] sm:$0xff]  ;;  %v2269_v27 = vpop.f32.mrf.mxu0  ;;  %v2979_v1 = vsel %vm712_vm4, %v2976_v38, %v2978_v40 }
 0x199   : > { %v2371_v2 = vmax.f32 %v2369_v48, 0.0  ;;  %v2099_v3 = vadd.f32 %v2081_v59, %v2042_v55  ;;  %1821 = vst.msk [vmem:[#allocation2 + $0x28] sm:$0xff] %vm352_vm7, %v1803_v58  ;;  %v6810_v48 = vld [vmem:[%s6040_s23 + $0x70] sm:$0xff] }
 0x19a   : > { %v2307_v6 = vld [vmem:[#allocation2 + $0x18] sm:$0xff] }
 0x19b   : > { %v2373_v4 = vpack.c.bf16 %v2371_v2, %v2371_v2  ;;  %v2325_v8 = vadd.f32 %v2307_v6, %v2266_v37  ;;  %2117 = vst.msk [vmem:[#allocation2 + $0x20] sm:$0xff] %vm352_vm7, %v2099_v3  ;;  %5305 = vmatmul.msk.bf16.gmra.mxu2 %vm263_vm2, %v2725_v60  ;;  %5396 = vmatmul.msk.bf16.gmra.mxu0 %vm263_vm2, %v3194_v5  ;;  %v1788_v60 = vld [vmem:[#allocation2 + $0x40] sm:$0xff]  ;;  %v2734_v2 = vshrl.u32 %v6758_v56, 16 }
 0x19c   : > { %v2044_v12 = vpop.f32.mrf.mxu3 }
 0x19d   : > { %2376 = vst.msk [vmem:[%s6728_s13 + $0x4] sm:$0xf] %vm2374_vm11, %v2373_v4 }
 0x19e   : > { %2343 = vst.msk [vmem:[#allocation2 + $0x18] sm:$0xff] %vm352_vm7, %v2325_v8  ;;  %v1750_v14 = vpop.f32.mrf.mxu2  ;;  %v6772_v25 = vpop.f32.mrf.mxu1  ;;  %v2738_v8 = vshll.u32 %v6810_v48, 16 }
 0x19f   : > { %v1804_v0 = vadd.f32 %v1786_v17, %v1750_v14  ;;  %v5776_v14 = vld [vmem:[%s6040_s23 + $0x70] sm:$0xff] }
 0x1a0   : > { %v2082_v19 = vld [vmem:[#allocation2 + $0x28] sm:$0xff]  ;;  %v2271_v24 = vpop.f32.mrf.mxu0  ;;  %v3449_v11 = vshrl.u32 %v5776_v14, 16 }
 0x1a1   : > { %v2100_v32 = vadd.f32 %v2082_v19, %v2044_v12  ;;  %1822 = vst.msk [vmem:[#allocation2 + $0x30] sm:$0xff] %vm352_vm7, %v1804_v0  ;;  %5351 = vmatmul.msk.bf16.gmra.mxu3 %vm263_vm2, %v2977_v7  ;;  %5442 = vmatmul.msk.bf16.gmra.mxu1 %vm263_vm2, %v3438_v26  ;;  %v6832_v12 = vld [vmem:[%s6040_s23 + $0x70] sm:$0xff]  ;;  %v2740_v7 = vrot.slane %v2738_v8, 1  ;;  %v3452_v19 = vshll.u32 %v5776_v14, 16 }
 0x1a2   : > { %v2308_v61 = vld [vmem:[#allocation2 + $0x20] sm:$0xff]  ;;  %v3197_v20 = vrot.slane %v6832_v12, 1 }
 0x1a3   : > { %v2326_v18 = vadd.f32 %v2308_v61, %v2269_v27  ;;  %2118 = vst.msk [vmem:[#allocation2 + $0x28] sm:$0xff] %vm352_vm7, %v2100_v32  ;;  %v1789_v32 = vld [vmem:[#allocation2 + $0x48] sm:$0xff]  ;;  %v6919_v12 = vld [vmem:[%s6040_s23 + $0x80] sm:$0xff] }
 0x1a4   : > { %v2047_v9 = vpop.f32.mrf.mxu3 }
 0x1a5   : > { %v2377_v37 = vld [vmem:[#allocation2 + $0x12] sm:$0xff]  ;;  %2344 = vst.msk [vmem:[#allocation2 + $0x20] sm:$0xff] %vm352_vm7, %v2326_v18 }
 0x1a6   : > { %v2379_v21 = vmul.f32 %v6679_v13, %v2377_v37  ;;  %2618 = vst.msk [vmem:[#allocation2 + $0x10] sm:$0xff] %vm352_vm7, %v6713_v33  ;;  %v1752_v41 = vpop.f32.mrf.mxu2  ;;  %v6795_v47 = vpop.f32.mrf.mxu1  ;;  %v3196_v33 = vsel %vm712_vm4, %v3193_v49, %v3195_v35  ;;  %v6807_v49 = vor.u32 %v3445_v30, %v3442_v50 }
 0x1a7   : > { %v1805_v39 = vadd.f32 %v1787_v31, %v1752_v41  ;;  %v3454_v41 = vrot.slane %v3452_v19, 2 }
 0x1a8   : > { %v2381_v45 = vadd.f32 %v6686_v15, %v2379_v21  ;;  %v2083_v43 = vld [vmem:[#allocation2 + $0x30] sm:$0xff]  ;;  %v2274_v46 = vpop.f32.mrf.mxu0  ;;  %v3447_v4 = vsel %vm1157_vm5, %v6760_v10, %v6807_v49  ;;  %v2736_v10 = vor.u32 %v2734_v2, %v2732_v34  ;;  %v3451_v21 = vrot.slane %v3449_v11, 1 }
 0x1a9   : > { %v2101_v51 = vadd.f32 %v2083_v43, %v2047_v9  ;;  %1823 = vst.msk [vmem:[#allocation2 + $0x38] sm:$0xff] %vm352_vm7, %v1805_v39  ;;  %v3198_v9 = vsel %vm712_vm4, %v3195_v35, %v3197_v20  ;;  %v6864_v35 = vld [vmem:[%s6040_s23 + $0x78] sm:$0xff] }
 0x1aa   : > { %v2383_v55 = vmax.f32 %v2381_v45, 0.0  ;;  %v2309_v57 = vld [vmem:[#allocation2 + $0x28] sm:$0xff]  ;;  %v2741_v36 = vsel %vm437_vm3, %v2736_v10, %v2740_v7  ;;  %v6866_v43 = vor.u32 %v3454_v41, %v3451_v21 }
 0x1ab   : > { %v2327_v52 = vadd.f32 %v2309_v57, %v2271_v24  ;;  %2119 = vst.msk [vmem:[#allocation2 + $0x30] sm:$0xff] %vm352_vm7, %v2101_v51  ;;  %5306 = vmatmul.msk.bf16.gmra.mxu2 %vm263_vm2, %v2733_v42  ;;  %5397 = vmatmul.msk.bf16.gmra.mxu0 %vm263_vm2, %v3196_v33 }
 0x1ac   : > { %v2385_v53 = vpack.c.bf16 %v2383_v55, %v2383_v55  ;;  %v2378_v44 = vld [vmem:[#allocation2 + $0x1a] sm:$0xff]  ;;  %v2049_v59 = vpop.f32.mrf.mxu3  ;;  %v1790_v55 = vld [vmem:[#allocation2 + $0x50] sm:$0xff] }
 0x1ad   : > { %v2380_v58 = vmul.f32 %v6679_v13, %v2378_v44  ;;  %2619 = vst.msk [vmem:[#allocation2 + $0x18] sm:$0xff] %vm352_vm7, %v6745_v62  ;;  %v2746_v44 = vshll.u32 %v6864_v35, 16 }
 0x1ae   : > { %5207 = vst.msk [vmem:[%s6728_s13 + $0x8] sm:$0xf] %vm2374_vm11, %v2385_v53  ;;  %v1755_v27 = vpop.f32.mrf.mxu2  ;;  %v6825_v6 = vpop.f32.mrf.mxu1  ;;  %v2742_v53 = vshrl.u32 %v6810_v48, 16 }
 0x1af   : > { %v2382_v5 = vadd.f32 %v6686_v15, %v2380_v58  ;;  %2345 = vst.msk [vmem:[#allocation2 + $0x28] sm:$0xff] %vm352_vm7, %v2327_v52  ;;  %v1806_v63 = vadd.f32 %v1788_v60, %v1755_v27  ;;  %v2981_v52 = vsel %vm712_vm4, %v2978_v40, %v2980_v28  ;;  %v3456_v60 = vsel %vm1157_vm5, %v6807_v49, %v6866_v43 }
 0x1b0   : > { %v2084_v62 = vld [vmem:[#allocation2 + $0x38] sm:$0xff]  ;;  %v2276_v3 = vpop.f32.mrf.mxu0  ;;  %v2744_v2 = vor.u32 %v2742_v53, %v2740_v7 }
 0x1b1   : > { %v2384_v17 = vmax.f32 %v2382_v5, 0.0  ;;  %v2102_v54 = vadd.f32 %v2084_v62, %v2049_v59  ;;  %1824 = vst.msk [vmem:[#allocation2 + $0x40] sm:$0xff] %vm352_vm7, %v1806_v63  ;;  %5352 = vmatmul.msk.bf16.gmra.mxu3 %vm263_vm2, %v2979_v1  ;;  %5443 = vmatmul.msk.bf16.gmra.mxu1 %vm263_vm2, %v3447_v4  ;;  %v6886_v5 = vld [vmem:[%s6040_s23 + $0x78] sm:$0xff]  ;;  %v6893_v62 = vrot.slane %v2746_v44, 1 }
 0x1b2   : > { %v2310_v38 = vld [vmem:[#allocation2 + $0x30] sm:$0xff]  ;;  %v5777_v63 = vld [vmem:[%s6040_s23 + $0x78] sm:$0xff]  ;;  %v3199_v4 = vrot.slane %v6886_v5, 1 }
 0x1b3   : > { %v2386_v56 = vpack.c.bf16 %v2384_v17, %v2384_v17  ;;  %v2328_v0 = vadd.f32 %v2310_v38, %v2274_v46  ;;  %2120 = vst.msk [vmem:[#allocation2 + $0x38] sm:$0xff] %vm352_vm7, %v2102_v54  ;;  %v3458_v8 = vshrl.u32 %v5777_v63, 16  ;;  %v3461_v14 = vshll.u32 %v5777_v63, 16 }
 0x1b4   : > { %v2052_v24 = vpop.f32.mrf.mxu3 }
 0x1b5   : > { %5208 = vst.msk [vmem:[%s6728_s13 + $0xc] sm:$0xf] %vm2374_vm11, %v2386_v56  ;;  %v1791_v56 = vld [vmem:[#allocation2 + $0x58] sm:$0xff] }
 0x1b6   : > { %v2390_v26 = vld [vmem:[#allocation2 + $0x24] sm:$0xff]  ;;  %2346 = vst.msk [vmem:[#allocation2 + $0x30] sm:$0xff] %vm352_vm7, %v2328_v0  ;;  %v1757_v29 = vpop.f32.mrf.mxu2  ;;  %v6850_v37 = vpop.f32.mrf.mxu1  ;;  %v6902_v0 = vld [vmem:[%s6040_s23 + $0x78] sm:$0xff] }
 0x1b7   : > { %v2392_v61 = vmul.f32 %v6679_v13, %v2390_v26  ;;  %2620 = vst.msk [vmem:[#allocation2 + $0x20] sm:$0xff] %vm352_vm7, %v6772_v25  ;;  %v1807_v18 = vadd.f32 %v1789_v32, %v1757_v29  ;;  %v3460_v29 = vrot.slane %v3458_v8, 1  ;;  %v3463_v32 = vrot.slane %v3461_v14, 2 }
 0x1b8   : > { %v2085_v34 = vld [vmem:[#allocation2 + $0x40] sm:$0xff]  ;;  %v2279_v16 = vpop.f32.mrf.mxu0 }
 0x1b9   : > { %v2394_v25 = vadd.f32 %v6686_v15, %v2392_v61  ;;  %v2103_v31 = vadd.f32 %v2085_v34, %v2052_v24  ;;  %1825 = vst.msk [vmem:[#allocation2 + $0x48] sm:$0xff] %vm352_vm7, %v1807_v18  ;;  %v2749_v24 = vsel %vm437_vm3, %v2744_v2, %v6893_v62 }
 0x1ba   : > { %v2311_v39 = vld [vmem:[#allocation2 + $0x38] sm:$0xff] }
 0x1bb   : > { %v2396_v42 = vmax.f32 %v2394_v25, 0.0  ;;  %v2329_v45 = vadd.f32 %v2311_v39, %v2276_v3  ;;  %2121 = vst.msk [vmem:[#allocation2 + $0x40] sm:$0xff] %vm352_vm7, %v2103_v31  ;;  %5307 = vmatmul.msk.bf16.gmra.mxu2 %vm263_vm2, %v2741_v36  ;;  %5398 = vmatmul.msk.bf16.gmra.mxu0 %vm263_vm2, %v3198_v9  ;;  %v1792_v31 = vld [vmem:[#allocation2 + $0x60] sm:$0xff] }
 0x1bc   : > { %v2054_v50 = vpop.f32.mrf.mxu3 }
 0x1bd   : > { %v2398_v46 = vpack.c.bf16 %v2396_v42, %v2396_v42  ;;  %v2391_v33 = vld [vmem:[#allocation2 + $0x2c] sm:$0xff]  ;;  %2347 = vst.msk [vmem:[#allocation2 + $0x38] sm:$0xff] %vm352_vm7, %v2329_v45 }
 0x1be   : > { %v2393_v30 = vmul.f32 %v6679_v13, %v2391_v33  ;;  %2621 = vst.msk [vmem:[#allocation2 + $0x28] sm:$0xff] %vm352_vm7, %v6795_v47  ;;  %v1760_v51 = vpop.f32.mrf.mxu2  ;;  %v2591_v47 = vpop.f32.mrf.mxu1  ;;  %v2754_v33 = vshll.u32 %v6919_v12, 16 }
 0x1bf   : > { %5209 = vst.msk [vmem:[%s6728_s13 + $0x10] sm:$0xf] %vm2374_vm11, %v2398_v46  ;;  %v1808_v57 = vadd.f32 %v1790_v55, %v1760_v51  ;;  %v2750_v46 = vshrl.u32 %v6864_v35, 16  ;;  %v5778_v55 = vld [vmem:[%s6040_s23 + $0x80] sm:$0xff] }
 0x1c0   : > { %v2395_v58 = vadd.f32 %v6686_v15, %v2393_v30  ;;  %v2086_v59 = vld [vmem:[#allocation2 + $0x48] sm:$0xff]  ;;  %v2281_v27 = vpop.f32.mrf.mxu0  ;;  %v6950_v44 = vrot.slane %v2754_v33, 1 }
 0x1c1   : > { %v2104_v1 = vadd.f32 %v2086_v59, %v2054_v50  ;;  %1826 = vst.msk [vmem:[#allocation2 + $0x50] sm:$0xff] %vm352_vm7, %v1808_v57  ;;  %5353 = vmatmul.msk.bf16.gmra.mxu3 %vm263_vm2, %v2981_v52  ;;  %5444 = vmatmul.msk.bf16.gmra.mxu1 %vm263_vm2, %v3456_v60  ;;  %v3467_v59 = vshrl.u32 %v5778_v55, 16 }
 0x1c2   : > { %v2397_v23 = vmax.f32 %v2395_v58, 0.0  ;;  %v2312_v40 = vld [vmem:[#allocation2 + $0x40] sm:$0xff] }
 0x1c3   : > { %v2330_v48 = vadd.f32 %v2312_v40, %v2279_v16  ;;  %2122 = vst.msk [vmem:[#allocation2 + $0x48] sm:$0xff] %vm352_vm7, %v2104_v1  ;;  %v2982_v16 = vrot.slane %v6902_v0, 1  ;;  %v1793_v40 = vld [vmem:[#allocation2 + $0x68] sm:$0xff] }
 0x1c4   : > { %v2399_v49 = vpack.c.bf16 %v2397_v23, %v2397_v23  ;;  %v2403_v3 = vld [vmem:[#allocation2 + $0x36] sm:$0xff]  ;;  %v2057_v54 = vpop.f32.mrf.mxu3 }
 0x1c5   : > { %v2405_v17 = vmul.f32 %v6679_v13, %v2403_v3  ;;  %2622 = vst.msk [vmem:[#allocation2 + $0x30] sm:$0xff] %vm352_vm7, %v6825_v6  ;;  %v3200_v6 = vsel %vm712_vm4, %v3197_v20, %v3199_v4  ;;  %v6921_v20 = vor.u32 %v3463_v32, %v3460_v29  ;;  %v2983_v39 = vsel %vm712_vm4, %v2980_v28, %v2982_v16  ;;  %v6941_v28 = vld [vmem:[%s6040_s23 + $0x80] sm:$0xff] }
 0x1c6   : > { %5210 = vst.msk [vmem:[%s6728_s13 + $0x14] sm:$0xf] %vm2374_vm11, %v2399_v49  ;;  %v1762_v38 = vpop.f32.mrf.mxu2  ;;  %v2593_v26 = vpop.f32.mrf.mxu1  ;;  %v3201_v58 = vrot.slane %v6941_v28, 1 }
 0x1c7   : > { %v2407_v10 = vadd.f32 %v6686_v15, %v2405_v17  ;;  %2348 = vst.msk [vmem:[#allocation2 + $0x40] sm:$0xff] %vm352_vm7, %v2330_v48  ;;  %v1809_v7 = vadd.f32 %v1791_v56, %v1762_v38  ;;  %v3465_v22 = vsel %vm1157_vm5, %v6866_v43, %v6921_v20  ;;  %v2752_v43 = vor.u32 %v2750_v46, %v6893_v62  ;;  %v6961_v62 = vld [vmem:[%s6040_s23 + $0x80] sm:$0xff] }
 0x1c8   : > { %v2087_v11 = vld [vmem:[#allocation2 + $0x50] sm:$0xff]  ;;  %v2284_v19 = vpop.f32.mrf.mxu0  ;;  %v3202_v17 = vsel %vm712_vm4, %v3199_v4, %v3201_v58  ;;  %v2984_v5 = vrot.slane %v6961_v62, 1 }
 0x1c9   : > { %v2409_v61 = vmax.f32 %v2407_v10, 0.0  ;;  %v2105_v18 = vadd.f32 %v2087_v11, %v2057_v54  ;;  %1827 = vst.msk [vmem:[#allocation2 + $0x58] sm:$0xff] %vm352_vm7, %v1809_v7  ;;  %v2757_v2 = vsel %vm437_vm3, %v2752_v43, %v6950_v44  ;;  %v3469_v54 = vrot.slane %v3467_v59, 1 }
 0x1ca   : > { %v2313_v34 = vld [vmem:[#allocation2 + $0x48] sm:$0xff] }
 0x1cb   : > { %v2411_v36 = vpack.c.bf16 %v2409_v61, %v2409_v61  ;;  %v2331_v9 = vadd.f32 %v2313_v34, %v2281_v27  ;;  %2123 = vst.msk [vmem:[#allocation2 + $0x50] sm:$0xff] %vm352_vm7, %v2105_v18  ;;  %5308 = vmatmul.msk.bf16.gmra.mxu2 %vm263_vm2, %v2749_v24  ;;  %5399 = vmatmul.msk.bf16.gmra.mxu0 %vm263_vm2, %v3200_v6  ;;  %v3470_v27 = vshll.u32 %v5778_v55, 16  ;;  %v1794_v61 = vld [vmem:[#allocation2 + $0x70] sm:$0xff] }
 0x1cc   : > { %v2059_v21 = vpop.f32.mrf.mxu3 }
 0x1cd   : > { %5211 = vst.msk [vmem:[%s6728_s13 + $0x18] sm:$0xf] %vm2374_vm11, %v2411_v36  ;;  %v3472_v38 = vrot.slane %v3470_v27, 2  ;;  %v2985_v36 = vsel %vm712_vm4, %v2982_v16, %v2984_v5 }
 0x1ce   : > { %v2404_v41 = vld [vmem:[#allocation2 + $0x3e] sm:$0xff]  ;;  %2349 = vst.msk [vmem:[#allocation2 + $0x48] sm:$0xff] %vm352_vm7, %v2331_v9  ;;  %v1765_v25 = vpop.f32.mrf.mxu2  ;;  %v2596_v51 = vpop.f32.mrf.mxu1  ;;  %v2758_v9 = vshrl.u32 %v6919_v12, 16 }
 0x1cf   : > { %v2406_v42 = vmul.f32 %v6679_v13, %v2404_v41  ;;  %2623 = vst.msk [vmem:[#allocation2 + $0x38] sm:$0xff] %vm352_vm7, %v6850_v37  ;;  %v1810_v45 = vadd.f32 %v1792_v31, %v1765_v25  ;;  %v6976_v4 = vor.u32 %v3472_v38, %v3469_v54 }
 0x1d0   : > { %2624 = vst.msk [vmem:[#allocation2 + $0x40] sm:$0xff] %vm352_vm7, %v2591_v47  ;;  %v2088_v50 = vld [vmem:[#allocation2 + $0x58] sm:$0xff]  ;;  %v2286_v30 = vpop.f32.mrf.mxu0 }
 0x1d1   : > { %v2408_v57 = vadd.f32 %v6686_v15, %v2406_v42  ;;  %v2106_v37 = vadd.f32 %v2088_v50, %v2059_v21  ;;  %1828 = vst.msk [vmem:[#allocation2 + $0x60] sm:$0xff] %vm352_vm7, %v1810_v45  ;;  %5354 = vmatmul.msk.bf16.gmra.mxu3 %vm263_vm2, %v2983_v39  ;;  %5445 = vmatmul.msk.bf16.gmra.mxu1 %vm263_vm2, %v3465_v22  ;;  %v7000_v42 = vld [vmem:[%s6040_s23 + $0x88] sm:$0xff] }
 0x1d2   : > { %v2314_v35 = vld [vmem:[#allocation2 + $0x50] sm:$0xff]  ;;  %v3474_v31 = vsel %vm1157_vm5, %v6921_v20, %v6976_v4  ;;  %v5779_v45 = vld [vmem:[%s6040_s23 + $0x88] sm:$0xff]  ;;  %v2760_v20 = vor.u32 %v2758_v9, %v6950_v44 }
 0x1d3   : > { %v2410_v52 = vmax.f32 %v2408_v57, 0.0  ;;  %v2332_v53 = vadd.f32 %v2314_v35, %v2284_v19  ;;  %2124 = vst.msk [vmem:[#allocation2 + $0x58] sm:$0xff] %vm352_vm7, %v2106_v37  ;;  %v3479_v22 = vshll.u32 %v5779_v45, 16  ;;  %v1795_v37 = vld [vmem:[#allocation2 + $0x78] sm:$0xff] }
 0x1d4   : > { %v2062_v63 = vpop.f32.mrf.mxu3 }
 0x1d5   : > { %v2412_v47 = vpack.c.bf16 %v2410_v52, %v2410_v52  ;;  %2350 = vst.msk [vmem:[#allocation2 + $0x50] sm:$0xff] %vm352_vm7, %v2332_v53  ;;  %v2416_v60 = vld [vmem:[#allocation2 + $0x48] sm:$0xff] }
 0x1d6   : > { %v2418_v1 = vmul.f32 %v6679_v13, %v2416_v60  ;;  %2625 = vst.msk [vmem:[#allocation2 + $0x48] sm:$0xff] %vm352_vm7, %v2593_v26  ;;  %v1767_v23 = vpop.f32.mrf.mxu2  ;;  %v6964_v14 = vpop.f32.mrf.mxu1  ;;  %v6979_v26 = vld [vmem:[%s6040_s23 + $0x88] sm:$0xff]  ;;  %v3481_v60 = vrot.slane %v3479_v22, 2 }
 0x1d7   : > { %5212 = vst.msk [vmem:[%s6728_s13 + $0x1c] sm:$0xf] %vm2374_vm11, %v2412_v47  ;;  %v1811_v48 = vadd.f32 %v1793_v40, %v1767_v23  ;;  %v2762_v39 = vshll.u32 %v6979_v26, 16  ;;  %v7015_v52 = vld [vmem:[%s6040_s23 + $0x88] sm:$0xff] }
 0x1d8   : > { %v2420_v49 = vadd.f32 %v6686_v15, %v2418_v1  ;;  %v2089_v3 = vld [vmem:[#allocation2 + $0x60] sm:$0xff]  ;;  %v2289_v8 = vpop.f32.mrf.mxu0  ;;  %v2986_v40 = vrot.slane %v7015_v52, 1 }
 0x1d9   : > { %v2107_v56 = vadd.f32 %v2089_v3, %v2062_v63  ;;  %1829 = vst.msk [vmem:[#allocation2 + $0x68] sm:$0xff] %vm352_vm7, %v1811_v48  ;;  %v7008_v50 = vrot.slane %v2762_v39, 1  ;;  %v1796_v3 = vld [vmem:[#allocation2 + $0x80] sm:$0xff] }
 0x1da   : > { %v2422_v10 = vmax.f32 %v2420_v49, 0.0  ;;  %v2315_v7 = vld [vmem:[#allocation2 + $0x58] sm:$0xff] }
 0x1db   : > { %v2333_v11 = vadd.f32 %v2315_v7, %v2286_v30  ;;  %2125 = vst.msk [vmem:[#allocation2 + $0x60] sm:$0xff] %vm352_vm7, %v2107_v56  ;;  %5309 = vmatmul.msk.bf16.gmra.mxu2 %vm263_vm2, %v2757_v2  ;;  %5400 = vmatmul.msk.bf16.gmra.mxu0 %vm263_vm2, %v3202_v17  ;;  %v3203_v30 = vrot.slane %v7000_v42, 1  ;;  %v2765_v44 = vsel %vm437_vm3, %v2760_v20, %v7008_v50 }
 0x1dc   : > { %v2424_v19 = vpack.c.bf16 %v2422_v10, %v2422_v10  ;;  %v2417_v24 = vld [vmem:[#allocation2 + $0x50] sm:$0xff]  ;;  %v2064_v29 = vpop.f32.mrf.mxu3  ;;  %v2987_v17 = vsel %vm712_vm4, %v2984_v5, %v2986_v40 }
 0x1dd   : > { %2351 = vst.msk [vmem:[#allocation2 + $0x58] sm:$0xff] %vm352_vm7, %v2333_v11  ;;  %v2419_v6 = vmul.f32 %v6679_v13, %v2417_v24  ;;  %v3204_v27 = vsel %vm712_vm4, %v3201_v58, %v3203_v30  ;;  %v5780_v11 = vld [vmem:[%s6040_s23 + $0x90] sm:$0xff] }
 0x1de   : > { %5213 = vst.msk [vmem:[%s6728_s13 + $0x20] sm:$0xf] %vm2374_vm11, %v2424_v19  ;;  %v1770_v32 = vpop.f32.mrf.mxu2  ;;  %v6993_v25 = vpop.f32.mrf.mxu1 }
 0x1df   : > { %v2421_v18 = vadd.f32 %v6686_v15, %v2419_v6  ;;  %2626 = vst.msk [vmem:[#allocation2 + $0x50] sm:$0xff] %vm352_vm7, %v2596_v51  ;;  %v1812_v34 = vadd.f32 %v1794_v61, %v1770_v32  ;;  %v3476_v51 = vshrl.u32 %v5779_v45, 16  ;;  %v2766_v6 = vshrl.u32 %v6979_v26, 16 }
 0x1e0   : > { %v2090_v21 = vld [vmem:[#allocation2 + $0x68] sm:$0xff]  ;;  %v2291_v41 = vpop.f32.mrf.mxu0  ;;  %v3485_v61 = vshrl.u32 %v5780_v11, 16 }
 0x1e1   : > { %v2423_v46 = vmax.f32 %v2421_v18, 0.0  ;;  %v2108_v0 = vadd.f32 %v2090_v21, %v2064_v29  ;;  %1830 = vst.msk [vmem:[#allocation2 + $0x70] sm:$0xff] %vm352_vm7, %v1812_v34  ;;  %5355 = vmatmul.msk.bf16.gmra.mxu3 %vm263_vm2, %v2985_v36  ;;  %5446 = vmatmul.msk.bf16.gmra.mxu1 %vm263_vm2, %v3474_v31  ;;  %v3478_v47 = vrot.slane %v3476_v51, 1  ;;  %v3488_v18 = vshll.u32 %v5780_v11, 16  ;;  %v1797_v21 = vld [vmem:[#allocation2 + $0x88] sm:$0x3f] }
 0x1e2   : > { %v2316_v16 = vld [vmem:[#allocation2 + $0x60] sm:$0xff]  ;;  %v2768_v31 = vor.u32 %v2766_v6, %v7008_v50 }
 0x1e3   : > { %v2425_v12 = vpack.c.bf16 %v2423_v46, %v2423_v46  ;;  %v2334_v33 = vadd.f32 %v2316_v16, %v2289_v8  ;;  %2126 = vst.msk [vmem:[#allocation2 + $0x68] sm:$0xff] %vm352_vm7, %v2108_v0  ;;  %v7031_v48 = vor.u32 %v3481_v60, %v3478_v47  ;;  %v3487_v0 = vrot.slane %v3485_v61, 1 }
 0x1e4   : > { %v2067_v55 = vpop.f32.mrf.mxu3  ;;  %v3490_v16 = vrot.slane %v3488_v18, 2 }
 0x1e5   : > { %5214 = vst.msk [vmem:[%s6728_s13 + $0x24] sm:$0xf] %vm2374_vm11, %v2425_v12  ;;  %v3483_v7 = vsel %vm1157_vm5, %v6976_v4, %v7031_v48 }
 0x1e6   : > { %2352 = vst.msk [vmem:[#allocation2 + $0x60] sm:$0xff] %vm352_vm7, %v2334_v33  ;;  %v1772_v57 = vpop.f32.mrf.mxu2  ;;  %v7019_v59 = vpop.f32.mrf.mxu1  ;;  %v7077_v42 = vor.u32 %v3490_v16, %v3487_v0 }
 0x1e7   : > { %v1813_v35 = vadd.f32 %v1795_v37, %v1772_v57  ;;  %v5781_v57 = vld [vmem:[%s6040_s23 + $0x50] sm:$0xf0] }
 0x1e8   : > { %v2091_v53 = vld [vmem:[#allocation2 + $0x70] sm:$0xff]  ;;  %v2294_v43 = vpop.f32.mrf.mxu0 }
 0x1e9   : > { %v2109_v63 = vadd.f32 %v2091_v53, %v2067_v55  ;;  %1831 = vst.msk [vmem:[#allocation2 + $0x78] sm:$0xff] %vm352_vm7, %v1813_v35  ;;  %v5453_v55 = vld [vmem:[%s6040_s23 + $0x50] sm:$0xc]  ;;  %v2853_v53 = vld [vmem:[#allocation2] sm:$0xff] }
 0x1ea   : > { %v2317_v1 = vld [vmem:[#allocation2 + $0x68] sm:$0xff] }
 0x1eb   : > { %v2335_v23 = vadd.f32 %v2317_v1, %v2291_v41  ;;  %2127 = vst.msk [vmem:[#allocation2 + $0x70] sm:$0xff] %vm352_vm7, %v2109_v63  ;;  %5310 = vmatmul.msk.bf16.gmra.mxu2 %vm263_vm2, %v2765_v44  ;;  %5401 = vmatmul.msk.bf16.gmra.mxu0 %vm263_vm2, %v3204_v27  ;;  %v3492_v1 = vsel %vm1157_vm5, %v7031_v48, %v7077_v42  ;;  %v5790_v48 = vld [vmem:[%s6040_s23 + $0x58] sm:$0xf0] }
 0x1ec   : > { %v2069_v58 = vpop.f32.mrf.mxu3 }
 0x1ed   : > { %v2429_v28 = vld [vmem:[#allocation2 + $0x5a] sm:$0xff]  ;;  %2353 = vst.msk [vmem:[#allocation2 + $0x68] sm:$0xff] %vm352_vm7, %v2335_v23 }
 0x1ee   : > { %v2431_v2 = vmul.f32 %v6679_v13, %v2429_v28  ;;  %2627 = vst.msk [vmem:[#allocation2 + $0x58] sm:$0xff] %vm352_vm7, %v6964_v14  ;;  %v1775_v49 = vpop.f32.mrf.mxu2  ;;  %v7043_v10 = vpop.f32.mrf.mxu1  ;;  %v7049_v14 = vld [vmem:[%s6040_s23 + $0x90] sm:$0xff]  ;;  %v7094_v23 = vld [vmem:[%s6040_s23 + $0x58] sm:$0xff]  ;;  %v5454_v28 = vor.u32 %v5781_v57, %v5453_v55 }
 0x1ef   : > { %v1814_v8 = vadd.f32 %v1796_v3, %v1775_v49  ;;  %v3205_v32 = vrot.slane %v7049_v14, 1  ;;  %v5499_v49 = vld [vmem:[%s6040_s23 + $0x58] sm:$0xc] }
 0x1f0   : > { %v2433_v54 = vadd.f32 %v6686_v15, %v2431_v2  ;;  %v2092_v38 = vld [vmem:[#allocation2 + $0x78] sm:$0xff]  ;;  %v2296_v56 = vpop.f32.mrf.mxu0 }
 0x1f1   : > { %v2110_v19 = vadd.f32 %v2092_v38, %v2069_v58  ;;  %1832 = vst.msk [vmem:[#allocation2 + $0x80] sm:$0xff] %vm352_vm7, %v1814_v8  ;;  %5356 = vmatmul.msk.bf16.gmra.mxu3 %vm263_vm2, %v2987_v17  ;;  %5447 = vmatmul.msk.bf16.gmra.mxu1 %vm263_vm2, %v3483_v7  ;;  %v3705_v38 = vrot.slane %v7094_v23, 2  ;;  %v5799_v7 = vld [vmem:[%s6040_s23 + $0x58] sm:$0xf0] }
 0x1f2   : > { %v2435_v62 = vmax.f32 %v2433_v54, 0.0  ;;  %v2318_v24 = vld [vmem:[#allocation2 + $0x70] sm:$0xff]  ;;  %v3704_v54 = vrot.slane %v5454_v28, 2 }
 0x1f3   : > { %v2336_v5 = vadd.f32 %v2318_v24, %v2294_v43  ;;  %2128 = vst.msk [vmem:[#allocation2 + $0x78] sm:$0xff] %vm352_vm7, %v2110_v19  ;;  %v2854_v24 = vld [vmem:[#allocation2 + $0x8] sm:$0xff] }
 0x1f4   : > { %v2437_v29 = vpack.c.bf16 %v2435_v62, %v2435_v62  ;;  %v2430_v4 = vld [vmem:[#allocation2 + $0x62] sm:$0xff]  ;;  %v2072_v36 = vpop.f32.mrf.mxu3 }
 0x1f5   : > { %v2432_v34 = vmul.f32 %v6679_v13, %v2430_v4  ;;  %2628 = vst.msk [vmem:[#allocation2 + $0x60] sm:$0xff] %vm352_vm7, %v6993_v25  ;;  %v3206_v25 = vsel %vm712_vm4, %v3203_v30, %v3205_v32  ;;  %v3363_v30 = vld [vmem:[%s6040_s23 + $0x98] sm:$0x1] }
 0x1f6   : > { %5215 = vst.msk [vmem:[%s6728_s13 + $0x28] sm:$0xf] %vm2374_vm11, %v2437_v29  ;;  %v1777_v9 = vpop.f32.mrf.mxu2  ;;  %v7066_v46 = vpop.f32.mrf.mxu1  ;;  %v3402_v27 = vunpack.c.l.b16 %v3363_v30  ;;  %v7115_v29 = vld [vmem:[%s6040_s23 + $0x60] sm:$0xff]  ;;  %v2855_v30 = vld [vmem:[#allocation2 + $0x10] sm:$0xff] }
 0x1f7   : > { %v2434_v41 = vadd.f32 %v6686_v15, %v2432_v34  ;;  %2354 = vst.msk [vmem:[#allocation2 + $0x70] sm:$0xff] %vm352_vm7, %v2336_v5  ;;  %v1815_v26 = vadd.f32 %v1797_v21, %v1777_v9  ;;  %v5500_v5 = vor.u32 %v5790_v48, %v5499_v49 }
 0x1f8   : > { %v2093_v39 = vld [vmem:[#allocation2 + $0x80] sm:$0xff]  ;;  %v2299_v45 = vpop.f32.mrf.mxu0  ;;  %v3412_v17 = vpack.c.b16 %v3402_v27, %v3402_v27 }
 0x1f9   : > { %v2436_v12 = vmax.f32 %v2434_v41, 0.0  ;;  %v2111_v33 = vadd.f32 %v2093_v39, %v2072_v36  ;;  %1833 = vst.msk [vmem:[#allocation2 + $0x88] sm:$0x3f] %vm370_vm8, %v1815_v26 }
 0x1fa   : > { %v2319_v20 = vld [vmem:[#allocation2 + $0x78] sm:$0xff]  ;;  %v3494_v4 = vshll.u32 %v3412_v17, 16 }
 0x1fb   : > { %v2438_v50 = vpack.c.bf16 %v2436_v12, %v2436_v12  ;;  %v2337_v51 = vadd.f32 %v2319_v20, %v2296_v56  ;;  %2129 = vst.msk [vmem:[#allocation2 + $0x80] sm:$0xff] %vm352_vm7, %v2111_v33  ;;  %5311 = vmatmul.msk.bf16.gmra.mxu2 %vm263_vm2, %v2768_v31  ;;  %5402 = vmatmul.msk.bf16.gmra.mxu0 %vm263_vm2, %v3206_v25  ;;  %v5545_v56 = vld [vmem:[%s6040_s23 + $0x58] sm:$0xc]  ;;  %v3929_v31 = vrot.slane %v5500_v5, 2 }
 0x1fc   : > { %v2074_v22 = vpop.f32.mrf.mxu3  ;;  %v5546_v61 = vor.u32 %v5799_v7, %v5545_v56  ;;  %v5591_v17 = vld [vmem:[%s6040_s23 + $0x58] sm:$0x8] }
 0x1fd   : > { %5216 = vst.msk [vmem:[%s6728_s13 + $0x2c] sm:$0xf] %vm2374_vm11, %v2438_v50  ;;  %v5865_v50 = vld [vmem:[%s7697_s2] ss:$0 sm:$0xff] }
 0x1fe   : > { %v2442_v37 = vld [vmem:[#allocation2 + $0x6c] sm:$0xff]  ;;  %2355 = vst.msk [vmem:[#allocation2 + $0x78] sm:$0xff] %vm352_vm7, %v2337_v51  ;;  %v2808_v35 = vpop.f32.mrf.mxu2  ;;  %v7088_v63 = vpop.f32.mrf.mxu1  ;;  %v4155_v25 = vshrl.u32 %v5546_v61, 16  ;;  %v4158_v12 = vshll.u32 %v5546_v61, 16  ;;  %v7177_v61 = vld [vmem:[%s6040_s23 + $0x60] sm:$0xff] }
 0x1ff   : > { %v2444_v43 = vmul.f32 %v6679_v13, %v2442_v37  ;;  %2629 = vst.msk [vmem:[#allocation2 + $0x68] sm:$0xff] %vm352_vm7, %v7019_v59  ;;  %v2871_v44 = vadd.f32 %v2853_v53, %v2808_v35 }
 0x200   : > { %v2094_v47 = vld [vmem:[#allocation2 + $0x88] sm:$0x3f]  ;;  %v2301_v60 = vpop.f32.mrf.mxu0  ;;  %v4157_v27 = vrot.slane %v4155_v25, 2 }
 0x201   : > { %v2446_v58 = vadd.f32 %v6686_v15, %v2444_v43  ;;  %v2112_v2 = vadd.f32 %v2094_v47, %v2074_v22  ;;  %2889 = vst.msk [vmem:[#allocation2] sm:$0xff] %vm352_vm7, %v2871_v44  ;;  %5357 = vmatmul.msk.bf16.gmra.mxu3 %vm263_vm2, %v2986_v40  ;;  %5448 = vmatmul.msk.bf16.gmra.mxu1 %vm263_vm2, %v3492_v1  ;;  %v5866_v22 = vld [vmem:[%s7698_s3] ss:$0 sm:$0xff]  ;;  %v4160_v47 = vrot.slane %v4158_v12, 3 }
 0x202   : > { %v2320_v59 = vld [vmem:[#allocation2 + $0x80] sm:$0xff] }
 0x203   : > { %v2448_v3 = vmax.f32 %v2446_v58, 0.0  ;;  %v2338_v8 = vadd.f32 %v2320_v59, %v2299_v45  ;;  %2130 = vst.msk [vmem:[#allocation2 + $0x88] sm:$0x3f] %vm370_vm8, %v2112_v2  ;;  %v3496_v45 = vrot.slane %v3494_v4, 2  ;;  %v7148_v44 = vld [vmem:[%s6040_s23 + $0x60] sm:$0xff] }
 0x204   : > { %v3027_v40 = vpop.f32.mrf.mxu3  ;;  %v3707_v49 = vrot.slane %v7148_v44, 2 }
 0x205   : > { %v2450_v11 = vpack.c.bf16 %v2448_v3, %v2448_v3  ;;  %v2443_v52 = vld [vmem:[#allocation2 + $0x74] sm:$0xff]  ;;  %2356 = vst.msk [vmem:[#allocation2 + $0x80] sm:$0xff] %vm352_vm7, %v2338_v8  ;;  %v4161_v3 = vor.u32 %v4160_v47, %v4157_v27  ;;  %v2858_v27 = vld [vmem:[#allocation2 + $0x28] sm:$0xff] }
 0x206   : > { %v2445_v19 = vmul.f32 %v6679_v13, %v2443_v52  ;;  %2630 = vst.msk [vmem:[#allocation2 + $0x70] sm:$0xff] %vm352_vm7, %v7043_v10  ;;  %v2810_v62 = vpop.f32.mrf.mxu2  ;;  %v3706_v13 = vsel %vm1450_vm6, %v3704_v54, %v3705_v38  ;;  %v7121_v9 = vpop.f32.mrf.mxu1  ;;  %v5800_v10 = vld [vmem:[%s6040_s23 + $0x60] sm:$0xff]  ;;  %v5808_v54 = vld [vmem:[%s6040_s23 + $0x58] sm:$0xf0]  ;;  %v3708_v5 = vsel %vm1450_vm6, %v3705_v38, %v3707_v49 }
 0x207   : > { %5217 = vst.msk [vmem:[%s6728_s13 + $0x30] sm:$0xf] %vm2374_vm11, %v2450_v11  ;;  %v2872_v6 = vadd.f32 %v2854_v24, %v2810_v62  ;;  %v4163_v33 = vshrl.u32 %v5800_v10, 16  ;;  %v4166_v20 = vshll.u32 %v5800_v10, 16  ;;  %v2856_v11 = vld [vmem:[#allocation2 + $0x18] sm:$0xff] }
 0x208   : > { %v2447_v18 = vadd.f32 %v6686_v15, %v2445_v19  ;;  %v3072_v34 = vld [vmem:[#allocation2] sm:$0xff]  ;;  %v3246_v36 = vpop.f32.mrf.mxu0  ;;  %v3930_v15 = vrot.slane %v7115_v29, 2  ;;  %v7165_v19 = vld [vmem:[%s6040_s23 + $0x68] sm:$0xff] }
 0x209   : > { %v3090_v21 = vadd.f32 %v3072_v34, %v3027_v40  ;;  %2890 = vst.msk [vmem:[#allocation2 + $0x8] sm:$0xff] %vm352_vm7, %v2872_v6  ;;  %v4168_v1 = vrot.slane %v4166_v20, 3  ;;  %v3932_v23 = vrot.slane %v7165_v19, 2 }
 0x20a   : > { %v2449_v41 = vmax.f32 %v2447_v18, 0.0  ;;  %v2321_v26 = vld [vmem:[#allocation2 + $0x88] sm:$0x3f]  ;;  %v3931_v37 = vsel %vm1450_vm6, %v3929_v31, %v3930_v15 }
 0x20b   : > { %v2339_v39 = vadd.f32 %v2321_v26, %v2301_v60  ;;  %3108 = vst.msk [vmem:[#allocation2] sm:$0xff] %vm352_vm7, %v3090_v21  ;;  %5487 = vmatmul.msk.bf16.vlgmr.msra.gmra.mxu2 %vm263_vm2, %v3706_v13  ;;  %5403 = vmatmul.msk.bf16.gmra.mxu0 %vm263_vm2, %v3205_v32  ;;  %v4165_v60 = vrot.slane %v4163_v33, 2  ;;  %v5801_v18 = vld [vmem:[%s6040_s23 + $0x68] sm:$0xff]  ;;  %v4450_v21 = vrot.slane %v7177_v61, 3  ;;  %v3933_v33 = vsel %vm1450_vm6, %v3930_v15, %v3932_v23 }
 0x20c   : > { %v2451_v0 = vpack.c.bf16 %v2449_v41, %v2449_v41  ;;  %v2455_v16 = vld [vmem:[#allocation2 + $0x7e] sm:$0xff]  ;;  %v3029_v14 = vpop.f32.mrf.mxu3  ;;  %v4172_v41 = vshrl.u32 %v5801_v18, 16  ;;  %v4175_v26 = vshll.u32 %v5801_v18, 16 }
 0x20d   : > { %v2457_v51 = vmul.f32 %v5865_v50, %v2455_v16  ;;  %2631 = vst.msk [vmem:[#allocation2 + $0x78] sm:$0xff] %vm352_vm7, %v7066_v46  ;;  %v3497_v46 = vsel %vm1157_vm5, %v7077_v42, %v3496_v45  ;;  %v7155_v8 = vor.u32 %v4168_v1, %v4165_v60  ;;  %v2857_v16 = vld [vmem:[#allocation2 + $0x20] sm:$0xff]  ;;  %v7211_v60 = vld [vmem:[%s6040_s23 + $0x70] sm:$0xff] }
 0x20e   : > { %5218 = vst.msk [vmem:[%s6728_s13 + $0x34] sm:$0xf] %vm2374_vm11, %v2451_v0  ;;  %v2813_v32 = vpop.f32.mrf.mxu2  ;;  %v3537_v43 = vpop.f32.mrf.mxu1  ;;  %v3934_v44 = vrot.slane %v7211_v60, 2 }
 0x20f   : > { %v2459_v55 = vadd.f32 %v5866_v22, %v2457_v51  ;;  %2357 = vst.msk [vmem:[#allocation2 + $0x88] sm:$0x3f] %vm370_vm8, %v2339_v39  ;;  %v2873_v57 = vadd.f32 %v2855_v30, %v2813_v32  ;;  %v4170_v4 = vsel %vm1903_vm9, %v4161_v3, %v7155_v8  ;;  %v7199_v32 = vld [vmem:[%s6040_s23 + $0x68] sm:$0xff]  ;;  %v4174_v30 = vrot.slane %v4172_v41, 2  ;;  %v5802_v3 = vld [vmem:[%s6040_s23 + $0x70] sm:$0xff] }
 0x210   : > { %v3073_v35 = vld [vmem:[#allocation2 + $0x8] sm:$0xff]  ;;  %v3248_v53 = vpop.f32.mrf.mxu0 }
 0x211   : > { %v2461_v28 = vmax.f32 %v2459_v55, 0.0  ;;  %v3091_v58 = vadd.f32 %v3073_v35, %v3029_v14  ;;  %2891 = vst.msk [vmem:[#allocation2 + $0x10] sm:$0xff] %vm352_vm7, %v2873_v57  ;;  %5533 = vmatmul.msk.bf16.vlgmr.msra.gmra.mxu3 %vm263_vm2, %v3931_v37  ;;  %5449 = vmatmul.msk.bf16.gmra.mxu1 %vm263_vm2, %v3497_v46  ;;  %v3709_v37 = vrot.slane %v7199_v32, 2 }
 0x212   : > { %v3291_v2 = vld [vmem:[#allocation2] sm:$0xff] }
 0x213   : > { %v2463_v42 = vpack.c.bf16 %v2461_v28, %v2461_v28  ;;  %v3309_v59 = vadd.f32 %v3291_v2, %v3246_v36  ;;  %3109 = vst.msk [vmem:[#allocation2 + $0x8] sm:$0xff] %vm352_vm7, %v3091_v58  ;;  %v3710_v58 = vsel %vm1450_vm6, %v3707_v49, %v3709_v37 }
 0x214   : > { %v3032_v48 = vpop.f32.mrf.mxu3 }
 0x215   : > { %5219 = vst.msk [vmem:[%s6728_s13 + $0x38] sm:$0xf] %vm2374_vm11, %v2463_v42 }
 0x216   : > { %v2456_v56 = vld [vmem:[#allocation2 + $0x86] sm:$0xff]  ;;  %3327 = vst.msk [vmem:[#allocation2] sm:$0xff] %vm352_vm7, %v3309_v59  ;;  %v2815_v7 = vpop.f32.mrf.mxu2  ;;  %v3539_v6 = vpop.f32.mrf.mxu1 }
 0x217   : > { %v2458_v52 = vmul.f32 %v5865_v50, %v2456_v56  ;;  %2632 = vst.msk [vmem:[#allocation2 + $0x80] sm:$0xff] %vm352_vm7, %v7088_v63  ;;  %v2874_v40 = vadd.f32 %v2856_v11, %v2815_v7  ;;  %v5592_v63 = vor.u32 %v5808_v54, %v5591_v17  ;;  %v7222_v59 = vld [vmem:[%s6040_s23 + $0x68] sm:$0xff]  ;;  %v4181_v56 = vshrl.u32 %v5802_v3, 16 }
 0x218   : > { %2633 = vst.msk [vmem:[#allocation2 + $0x88] sm:$0x3f] %vm370_vm8, %v7121_v9  ;;  %v3074_v62 = vld [vmem:[#allocation2 + $0x10] sm:$0xff]  ;;  %v3251_v24 = vpop.f32.mrf.mxu0  ;;  %v4184_v7 = vshll.u32 %v5802_v3, 16 }
 0x219   : > { %v2460_v34 = vadd.f32 %v5866_v22, %v2458_v52  ;;  %v3092_v36 = vadd.f32 %v3074_v62, %v3032_v48  ;;  %2892 = vst.msk [vmem:[#allocation2 + $0x18] sm:$0xff] %vm352_vm7, %v2874_v40  ;;  %v4449_v38 = vrot.slane %v5592_v63, 3  ;;  %v4177_v22 = vrot.slane %v4175_v26, 3  ;;  %v2859_v62 = vld [vmem:[#allocation2 + $0x30] sm:$0xff] }
 0x21a   : > { %v3292_v13 = vld [vmem:[#allocation2 + $0x8] sm:$0xff] }
 0x21b   : > { %v2462_v9 = vmax.f32 %v2460_v34, 0.0  ;;  %v3310_v10 = vadd.f32 %v3292_v13, %v3248_v53  ;;  %3110 = vst.msk [vmem:[#allocation2 + $0x10] sm:$0xff] %vm352_vm7, %v3092_v36  ;;  %5488 = vmatmul.msk.bf16.gmra.mxu2 %vm263_vm2, %v3708_v5  ;;  %5579 = vmatmul.msk.bf16.vlgmr.msra.gmra.mxu0 %vm263_vm2, %v4170_v4  ;;  %v4451_v14 = vsel %vm2200_vm10, %v4449_v38, %v4450_v21  ;;  %v7244_v34 = vld [vmem:[%s6040_s23 + $0x70] sm:$0xff]  ;;  %v4183_v36 = vrot.slane %v4181_v56, 2  ;;  %v2862_v56 = vld [vmem:[#allocation2 + $0x48] sm:$0xff] }
 0x21c   : > { %v3034_v45 = vpop.f32.mrf.mxu3  ;;  %v7206_v46 = vor.u32 %v4177_v22, %v4174_v30  ;;  %v3935_v5 = vsel %vm1450_vm6, %v3932_v23, %v3934_v44  ;;  %v4186_v13 = vrot.slane %v4184_v7, 3  ;;  %v3711_v61 = vrot.slane %v7244_v34, 2 }
 0x21d   : > { %v2464_v31 = vpack.c.bf16 %v2462_v9, %v2462_v9  ;;  %3328 = vst.msk [vmem:[#allocation2 + $0x8] sm:$0xff] %vm352_vm7, %v3310_v10  ;;  %v3582_v39 = vld [vmem:[#allocation2] sm:$0xff] }
 0x21e   : > { %v3600_v25 = vadd.f32 %v3582_v39, %v3537_v43  ;;  %v2818_v0 = vpop.f32.mrf.mxu2  ;;  %v3542_v51 = vpop.f32.mrf.mxu1  ;;  %v4179_v42 = vsel %vm1903_vm9, %v7155_v8, %v7206_v46  ;;  %v4452_v8 = vrot.slane %v7222_v59, 3  ;;  %v7251_v38 = vor.u32 %v4186_v13, %v4183_v36 }
 0x21f   : > { %5220 = vst.msk [vmem:[%s6728_s13 + $0x3c] sm:$0xf] %vm2374_vm11, %v2464_v31  ;;  %v2875_v12 = vadd.f32 %v2857_v16, %v2818_v0  ;;  %v2860_v31 = vld [vmem:[#allocation2 + $0x38] sm:$0xff]  ;;  %v3712_v16 = vsel %vm1450_vm6, %v3709_v37, %v3711_v61 }
 0x220   : > { %3618 = vst.msk [vmem:[#allocation2] sm:$0xff] %vm352_vm7, %v3600_v25  ;;  %v3075_v20 = vld [vmem:[#allocation2 + $0x18] sm:$0xff]  ;;  %v3253_v50 = vpop.f32.mrf.mxu0  ;;  %v4453_v18 = vsel %vm2200_vm10, %v4450_v21, %v4452_v8 }
 0x221   : > { %v3093_v55 = vadd.f32 %v3075_v20, %v3034_v45  ;;  %2893 = vst.msk [vmem:[#allocation2 + $0x20] sm:$0xff] %vm352_vm7, %v2875_v12  ;;  %5534 = vmatmul.msk.bf16.gmra.mxu3 %vm263_vm2, %v3933_v33  ;;  %5625 = vmatmul.msk.bf16.vlgmr.msra.gmra.mxu1 %vm263_vm2, %v4451_v14  ;;  %v7256_v45 = vld [vmem:[%s6040_s23 + $0x78] sm:$0xff]  ;;  %v4188_v33 = vsel %vm1903_vm9, %v7206_v46, %v7251_v38  ;;  %v7267_v20 = vld [vmem:[%s6040_s23 + $0x70] sm:$0xff] }
 0x222   : > { %v3293_v29 = vld [vmem:[#allocation2 + $0x10] sm:$0xff]  ;;  %v3936_v32 = vrot.slane %v7256_v45, 2 }
 0x223   : > { %v3311_v15 = vadd.f32 %v3293_v29, %v3251_v24  ;;  %3111 = vst.msk [vmem:[#allocation2 + $0x18] sm:$0xff] %vm352_vm7, %v3093_v55  ;;  %v4454_v55 = vrot.slane %v7267_v20, 3 }
 0x224   : > { %v3583_v57 = vld [vmem:[#allocation2 + $0x8] sm:$0xff]  ;;  %v3037_v53 = vpop.f32.mrf.mxu3 }
 0x225   : > { %3329 = vst.msk [vmem:[#allocation2 + $0x10] sm:$0xff] %vm352_vm7, %v3311_v15  ;;  %v3601_v35 = vadd.f32 %v3583_v57, %v3539_v6 }
 0x226   : > { %v2820_v43 = vpop.f32.mrf.mxu2  ;;  %v3544_v2 = vpop.f32.mrf.mxu1 }
 0x227   : > { %3619 = vst.msk [vmem:[#allocation2 + $0x8] sm:$0xff] %vm352_vm7, %v3601_v35  ;;  %v2876_v47 = vadd.f32 %v2858_v27, %v2820_v43  ;;  %v2861_v35 = vld [vmem:[#allocation2 + $0x40] sm:$0xff]  ;;  %v3937_v43 = vsel %vm1450_vm6, %v3934_v44, %v3936_v32 }
 0x228   : > { %v3076_v1 = vld [vmem:[#allocation2 + $0x20] sm:$0xff]  ;;  %v3256_v28 = vpop.f32.mrf.mxu0 }
 0x229   : > { %v3094_v48 = vadd.f32 %v3076_v1, %v3037_v53  ;;  %2894 = vst.msk [vmem:[#allocation2 + $0x28] sm:$0xff] %vm352_vm7, %v2876_v47 }
 0x22a   : > { %v3294_v17 = vld [vmem:[#allocation2 + $0x18] sm:$0xff] }
 0x22b   : > { %v3312_v54 = vadd.f32 %v3294_v17, %v3253_v50  ;;  %3112 = vst.msk [vmem:[#allocation2 + $0x20] sm:$0xff] %vm352_vm7, %v3094_v48  ;;  %5489 = vmatmul.msk.bf16.gmra.mxu2 %vm263_vm2, %v3710_v58  ;;  %5580 = vmatmul.msk.bf16.gmra.mxu0 %vm263_vm2, %v4179_v42  ;;  %v5803_v50 = vld [vmem:[%s6040_s23 + $0x78] sm:$0xff] }
 0x22c   : > { %v3584_v49 = vld [vmem:[#allocation2 + $0x10] sm:$0xff]  ;;  %v3039_v52 = vpop.f32.mrf.mxu3  ;;  %v4190_v29 = vshrl.u32 %v5803_v50, 16  ;;  %v4193_v15 = vshll.u32 %v5803_v50, 16  ;;  %v7289_v58 = vld [vmem:[%s6040_s23 + $0x78] sm:$0xff] }
 0x22d   : > { %3330 = vst.msk [vmem:[#allocation2 + $0x18] sm:$0xff] %vm352_vm7, %v3312_v54  ;;  %v3602_v11 = vadd.f32 %v3584_v49, %v3542_v51  ;;  %v3713_v59 = vrot.slane %v7289_v58, 2 }
 0x22e   : > { %v2823_v40 = vpop.f32.mrf.mxu2  ;;  %v3547_v63 = vpop.f32.mrf.mxu1  ;;  %v4195_v42 = vrot.slane %v4193_v15, 3 }
 0x22f   : > { %3620 = vst.msk [vmem:[#allocation2 + $0x10] sm:$0xff] %vm352_vm7, %v3602_v11  ;;  %v2877_v24 = vadd.f32 %v2859_v62, %v2823_v40  ;;  %v7301_v11 = vld [vmem:[%s6040_s23 + $0x80] sm:$0xff]  ;;  %v3714_v62 = vsel %vm1450_vm6, %v3711_v61, %v3713_v59 }
 0x230   : > { %v3077_v6 = vld [vmem:[#allocation2 + $0x28] sm:$0xff]  ;;  %v3258_v4 = vpop.f32.mrf.mxu0  ;;  %v3938_v34 = vrot.slane %v7301_v11, 2 }
 0x231   : > { %v3095_v9 = vadd.f32 %v3077_v6, %v3039_v52  ;;  %2895 = vst.msk [vmem:[#allocation2 + $0x30] sm:$0xff] %vm352_vm7, %v2877_v24  ;;  %5535 = vmatmul.msk.bf16.gmra.mxu3 %vm263_vm2, %v3935_v5  ;;  %5626 = vmatmul.msk.bf16.gmra.mxu1 %vm263_vm2, %v4453_v18  ;;  %v7312_v6 = vld [vmem:[%s6040_s23 + $0x78] sm:$0xff] }
 0x232   : > { %v3295_v19 = vld [vmem:[#allocation2 + $0x20] sm:$0xff] }
 0x233   : > { %v3313_v10 = vadd.f32 %v3295_v19, %v3256_v28  ;;  %3113 = vst.msk [vmem:[#allocation2 + $0x28] sm:$0xff] %vm352_vm7, %v3095_v9  ;;  %v4455_v28 = vsel %vm2200_vm10, %v4452_v8, %v4454_v55  ;;  %v4456_v9 = vrot.slane %v7312_v6, 3 }
 0x234   : > { %v3585_v23 = vld [vmem:[#allocation2 + $0x18] sm:$0xff]  ;;  %v3042_v41 = vpop.f32.mrf.mxu3 }
 0x235   : > { %3331 = vst.msk [vmem:[#allocation2 + $0x20] sm:$0xff] %vm352_vm7, %v3313_v10  ;;  %v3603_v21 = vadd.f32 %v3585_v23, %v3544_v2  ;;  %v4192_v2 = vrot.slane %v4190_v29, 2  ;;  %v2864_v29 = vld [vmem:[#allocation2 + $0x58] sm:$0xff] }
 0x236   : > { %v2825_v26 = vpop.f32.mrf.mxu2  ;;  %v3549_v12 = vpop.f32.mrf.mxu1 }
 0x237   : > { %3621 = vst.msk [vmem:[#allocation2 + $0x18] sm:$0xff] %vm352_vm7, %v3603_v21  ;;  %v2878_v39 = vadd.f32 %v2860_v31, %v2825_v26  ;;  %v7296_v54 = vor.u32 %v4195_v42, %v4192_v2  ;;  %v2863_v21 = vld [vmem:[#allocation2 + $0x50] sm:$0xff]  ;;  %v3939_v26 = vsel %vm1450_vm6, %v3936_v32, %v3938_v34 }
 0x238   : > { %v3078_v25 = vld [vmem:[#allocation2 + $0x30] sm:$0xff]  ;;  %v3261_v0 = vpop.f32.mrf.mxu0 }
 0x239   : > { %v3096_v51 = vadd.f32 %v3078_v25, %v3042_v41  ;;  %2896 = vst.msk [vmem:[#allocation2 + $0x38] sm:$0xff] %vm352_vm7, %v2878_v39  ;;  %v4197_v5 = vsel %vm1903_vm9, %v7251_v38, %v7296_v54 }
 0x23a   : > { %v3296_v14 = vld [vmem:[#allocation2 + $0x28] sm:$0xff] }
 0x23b   : > { %v3314_v30 = vadd.f32 %v3296_v14, %v3258_v4  ;;  %3114 = vst.msk [vmem:[#allocation2 + $0x30] sm:$0xff] %vm352_vm7, %v3096_v51  ;;  %5490 = vmatmul.msk.bf16.gmra.mxu2 %vm263_vm2, %v3712_v16  ;;  %5581 = vmatmul.msk.bf16.gmra.mxu0 %vm263_vm2, %v4188_v33  ;;  %v5804_v4 = vld [vmem:[%s6040_s23 + $0x80] sm:$0xff] }
 0x23c   : > { %v3586_v22 = vld [vmem:[#allocation2 + $0x20] sm:$0xff]  ;;  %v3044_v37 = vpop.f32.mrf.mxu3  ;;  %v4199_v19 = vshrl.u32 %v5804_v4, 16  ;;  %v4202_v10 = vshll.u32 %v5804_v4, 16 }
 0x23d   : > { %3332 = vst.msk [vmem:[#allocation2 + $0x28] sm:$0xff] %vm352_vm7, %v3314_v30  ;;  %v3604_v57 = vadd.f32 %v3586_v22, %v3547_v63  ;;  %v7334_v16 = vld [vmem:[%s6040_s23 + $0x80] sm:$0xff] }
 0x23e   : > { %v2828_v46 = vpop.f32.mrf.mxu2  ;;  %v3552_v1 = vpop.f32.mrf.mxu1  ;;  %v4204_v33 = vrot.slane %v4202_v10, 3  ;;  %v3715_v20 = vrot.slane %v7334_v16, 2 }
 0x23f   : > { %3622 = vst.msk [vmem:[#allocation2 + $0x20] sm:$0xff] %vm352_vm7, %v3604_v57  ;;  %v2879_v53 = vadd.f32 %v2861_v35, %v2828_v46  ;;  %v7346_v57 = vld [vmem:[%s6040_s23 + $0x88] sm:$0xff] }
 0x240   : > { %v3079_v27 = vld [vmem:[#allocation2 + $0x38] sm:$0xff]  ;;  %v3263_v47 = vpop.f32.mrf.mxu0  ;;  %v3716_v35 = vsel %vm1450_vm6, %v3713_v59, %v3715_v20  ;;  %v3940_v58 = vrot.slane %v7346_v57, 2 }
 0x241   : > { %v3097_v3 = vadd.f32 %v3079_v27, %v3044_v37  ;;  %2897 = vst.msk [vmem:[#allocation2 + $0x40] sm:$0xff] %vm352_vm7, %v2879_v53  ;;  %5536 = vmatmul.msk.bf16.gmra.mxu3 %vm263_vm2, %v3937_v43  ;;  %5627 = vmatmul.msk.bf16.gmra.mxu1 %vm263_vm2, %v4455_v28  ;;  %v7357_v27 = vld [vmem:[%s6040_s23 + $0x80] sm:$0xff] }
 0x242   : > { %v3297_v60 = vld [vmem:[#allocation2 + $0x30] sm:$0xff] }
 0x243   : > { %v3315_v48 = vadd.f32 %v3297_v60, %v3261_v0  ;;  %3115 = vst.msk [vmem:[#allocation2 + $0x38] sm:$0xff] %vm352_vm7, %v3097_v3  ;;  %v4457_v0 = vsel %vm2200_vm10, %v4454_v55, %v4456_v9  ;;  %v4458_v3 = vrot.slane %v7357_v27, 3 }
 0x244   : > { %v3587_v17 = vld [vmem:[#allocation2 + $0x28] sm:$0xff]  ;;  %v3047_v49 = vpop.f32.mrf.mxu3 }
 0x245   : > { %3333 = vst.msk [vmem:[#allocation2 + $0x30] sm:$0xff] %vm352_vm7, %v3315_v48  ;;  %v3605_v44 = vadd.f32 %v3587_v17, %v3549_v12  ;;  %v4201_v12 = vrot.slane %v4199_v19, 2  ;;  %v2866_v19 = vld [vmem:[#allocation2 + $0x68] sm:$0xff] }
 0x246   : > { %v2830_v8 = vpop.f32.mrf.mxu2  ;;  %v3554_v24 = vpop.f32.mrf.mxu1 }
 0x247   : > { %3623 = vst.msk [vmem:[#allocation2 + $0x28] sm:$0xff] %vm352_vm7, %v3605_v44  ;;  %v2880_v7 = vadd.f32 %v2862_v56, %v2830_v8  ;;  %v7341_v30 = vor.u32 %v4204_v33, %v4201_v12  ;;  %v2865_v44 = vld [vmem:[#allocation2 + $0x60] sm:$0xff]  ;;  %v3941_v8 = vsel %vm1450_vm6, %v3938_v34, %v3940_v58 }
 0x248   : > { %v3080_v52 = vld [vmem:[#allocation2 + $0x40] sm:$0xff]  ;;  %v3266_v40 = vpop.f32.mrf.mxu0 }
 0x249   : > { %v3098_v63 = vadd.f32 %v3080_v52, %v3047_v49  ;;  %2898 = vst.msk [vmem:[#allocation2 + $0x48] sm:$0xff] %vm352_vm7, %v2880_v7  ;;  %v4206_v43 = vsel %vm1903_vm9, %v7296_v54, %v7341_v30 }
 0x24a   : > { %v3298_v18 = vld [vmem:[#allocation2 + $0x38] sm:$0xff] }
 0x24b   : > { %v3316_v36 = vadd.f32 %v3298_v18, %v3263_v47  ;;  %3116 = vst.msk [vmem:[#allocation2 + $0x40] sm:$0xff] %vm352_vm7, %v3098_v63  ;;  %5491 = vmatmul.msk.bf16.gmra.mxu2 %vm263_vm2, %v3714_v62  ;;  %5582 = vmatmul.msk.bf16.gmra.mxu0 %vm263_vm2, %v4197_v5  ;;  %v5805_v47 = vld [vmem:[%s6040_s23 + $0x88] sm:$0xff] }
 0x24c   : > { %v3588_v13 = vld [vmem:[#allocation2 + $0x30] sm:$0xff]  ;;  %v3049_v61 = vpop.f32.mrf.mxu3  ;;  %v4208_v60 = vshrl.u32 %v5805_v47, 16  ;;  %v4211_v48 = vshll.u32 %v5805_v47, 16  ;;  %v7379_v62 = vld [vmem:[%s6040_s23 + $0x88] sm:$0xff] }
 0x24d   : > { %3334 = vst.msk [vmem:[#allocation2 + $0x38] sm:$0xff] %vm352_vm7, %v3316_v36  ;;  %v3606_v23 = vadd.f32 %v3588_v13, %v3552_v1  ;;  %v3717_v6 = vrot.slane %v7379_v62, 2 }
 0x24e   : > { %v2833_v38 = vpop.f32.mrf.mxu2  ;;  %v3557_v25 = vpop.f32.mrf.mxu1  ;;  %v4213_v5 = vrot.slane %v4211_v48, 3 }
 0x24f   : > { %3624 = vst.msk [vmem:[#allocation2 + $0x30] sm:$0xff] %vm352_vm7, %v3606_v23  ;;  %v2881_v41 = vadd.f32 %v2863_v21, %v2833_v38  ;;  %v7391_v23 = vld [vmem:[%s6040_s23 + $0x90] sm:$0xff]  ;;  %v3718_v21 = vsel %vm1450_vm6, %v3715_v20, %v3717_v6 }
 0x250   : > { %v3081_v31 = vld [vmem:[#allocation2 + $0x48] sm:$0xff]  ;;  %v3268_v39 = vpop.f32.mrf.mxu0  ;;  %v3942_v16 = vrot.slane %v7391_v23, 2 }
 0x251   : > { %v3099_v50 = vadd.f32 %v3081_v31, %v3049_v61  ;;  %2899 = vst.msk [vmem:[#allocation2 + $0x50] sm:$0xff] %vm352_vm7, %v2881_v41  ;;  %5537 = vmatmul.msk.bf16.gmra.mxu3 %vm263_vm2, %v3939_v26  ;;  %5628 = vmatmul.msk.bf16.gmra.mxu1 %vm263_vm2, %v4457_v0  ;;  %v7402_v31 = vld [vmem:[%s6040_s23 + $0x88] sm:$0xff] }
 0x252   : > { %v3299_v45 = vld [vmem:[#allocation2 + $0x40] sm:$0xff] }
 0x253   : > { %v3317_v51 = vadd.f32 %v3299_v45, %v3266_v40  ;;  %3117 = vst.msk [vmem:[#allocation2 + $0x48] sm:$0xff] %vm352_vm7, %v3099_v50  ;;  %v4459_v40 = vsel %vm2200_vm10, %v4456_v9, %v4458_v3  ;;  %v4460_v50 = vrot.slane %v7402_v31, 3 }
 0x254   : > { %v3589_v14 = vld [vmem:[#allocation2 + $0x38] sm:$0xff]  ;;  %v3052_v22 = vpop.f32.mrf.mxu3 }
 0x255   : > { %3335 = vst.msk [vmem:[#allocation2 + $0x40] sm:$0xff] %vm352_vm7, %v3317_v51  ;;  %v3607_v32 = vadd.f32 %v3589_v14, %v3554_v24  ;;  %v4210_v24 = vrot.slane %v4208_v60, 2  ;;  %v2868_v60 = vld [vmem:[#allocation2 + $0x78] sm:$0xff] }
 0x256   : > { %v2835_v55 = vpop.f32.mrf.mxu2  ;;  %v3559_v53 = vpop.f32.mrf.mxu1 }
 0x257   : > { %3625 = vst.msk [vmem:[#allocation2 + $0x38] sm:$0xff] %vm352_vm7, %v3607_v32  ;;  %v2882_v15 = vadd.f32 %v2864_v29, %v2835_v55  ;;  %v7386_v36 = vor.u32 %v4213_v5, %v4210_v24  ;;  %v2867_v32 = vld [vmem:[#allocation2 + $0x70] sm:$0xff]  ;;  %v3943_v55 = vsel %vm1450_vm6, %v3940_v58, %v3942_v16 }
 0x258   : > { %v3082_v37 = vld [vmem:[#allocation2 + $0x50] sm:$0xff]  ;;  %v3271_v46 = vpop.f32.mrf.mxu0 }
 0x259   : > { %v3100_v1 = vadd.f32 %v3082_v37, %v3052_v22  ;;  %2900 = vst.msk [vmem:[#allocation2 + $0x58] sm:$0xff] %vm352_vm7, %v2882_v15  ;;  %v4215_v26 = vsel %vm1903_vm9, %v7341_v30, %v7386_v36 }
 0x25a   : > { %v3300_v28 = vld [vmem:[#allocation2 + $0x48] sm:$0xff] }
 0x25b   : > { %v3318_v2 = vadd.f32 %v3300_v28, %v3268_v39  ;;  %3118 = vst.msk [vmem:[#allocation2 + $0x50] sm:$0xff] %vm352_vm7, %v3100_v1  ;;  %5492 = vmatmul.msk.bf16.gmra.mxu2 %vm263_vm2, %v3716_v35  ;;  %5583 = vmatmul.msk.bf16.gmra.mxu0 %vm263_vm2, %v4206_v43  ;;  %v5806_v39 = vld [vmem:[%s6040_s23 + $0x90] sm:$0xff] }
 0x25c   : > { %v3590_v42 = vld [vmem:[#allocation2 + $0x40] sm:$0xff]  ;;  %v3054_v59 = vpop.f32.mrf.mxu3  ;;  %v4217_v45 = vshrl.u32 %v5806_v39, 16  ;;  %v4220_v51 = vshll.u32 %v5806_v39, 16  ;;  %v7424_v35 = vld [vmem:[%s6040_s23 + $0x90] sm:$0xff] }
 0x25d   : > { %3336 = vst.msk [vmem:[#allocation2 + $0x48] sm:$0xff] %vm352_vm7, %v3318_v2  ;;  %v3608_v17 = vadd.f32 %v3590_v42, %v3557_v25  ;;  %v3719_v27 = vrot.slane %v7424_v35, 2 }
 0x25e   : > { %v2838_v54 = vpop.f32.mrf.mxu2  ;;  %v3562_v52 = vpop.f32.mrf.mxu1  ;;  %v4222_v43 = vrot.slane %v4220_v51, 3 }
 0x25f   : > { %3626 = vst.msk [vmem:[#allocation2 + $0x40] sm:$0xff] %vm352_vm7, %v3608_v17  ;;  %v2883_v49 = vadd.f32 %v2865_v44, %v2838_v54  ;;  %v7436_v17 = vld [vmem:[%s6040_s23 + $0x98] sm:$0xff]  ;;  %v3720_v44 = vsel %vm1450_vm6, %v3717_v6, %v3719_v27 }
 0x260   : > { %v3083_v56 = vld [vmem:[#allocation2 + $0x58] sm:$0xff]  ;;  %v3273_v7 = vpop.f32.mrf.mxu0  ;;  %v3944_v62 = vrot.slane %v7436_v17, 2 }
 0x261   : > { %v3101_v4 = vadd.f32 %v3083_v56, %v3054_v59  ;;  %2901 = vst.msk [vmem:[#allocation2 + $0x60] sm:$0xff] %vm352_vm7, %v2883_v49  ;;  %5538 = vmatmul.msk.bf16.gmra.mxu3 %vm263_vm2, %v3941_v8  ;;  %5629 = vmatmul.msk.bf16.gmra.mxu1 %vm263_vm2, %v4459_v40  ;;  %v7447_v56 = vld [vmem:[%s6040_s23 + $0x90] sm:$0xff]  ;;  %v3654_v40 = vld [vmem:[%s6040_s23 + $0x98] sm:$0x1] }
 0x262   : > { %v3301_v11 = vld [vmem:[#allocation2 + $0x50] sm:$0xff] }
 0x263   : > { %v3319_v63 = vadd.f32 %v3301_v11, %v3271_v46  ;;  %3119 = vst.msk [vmem:[#allocation2 + $0x58] sm:$0xff] %vm352_vm7, %v3101_v4  ;;  %v4461_v46 = vsel %vm2200_vm10, %v4458_v3, %v4460_v50  ;;  %v4462_v11 = vrot.slane %v7447_v56, 3 }
 0x264   : > { %v3591_v18 = vld [vmem:[#allocation2 + $0x48] sm:$0xff]  ;;  %v3057_v13 = vpop.f32.mrf.mxu3 }
 0x265   : > { %3337 = vst.msk [vmem:[#allocation2 + $0x50] sm:$0xff] %vm352_vm7, %v3319_v63  ;;  %v3609_v34 = vadd.f32 %v3591_v18, %v3559_v53  ;;  %v4219_v53 = vrot.slane %v4217_v45, 2  ;;  %v3693_v63 = vunpack.c.l.b16 %v3654_v40 }
 0x266   : > { %v2840_v9 = vpop.f32.mrf.mxu2  ;;  %v3564_v41 = vpop.f32.mrf.mxu1 }
 0x267   : > { %3627 = vst.msk [vmem:[#allocation2 + $0x48] sm:$0xff] %vm352_vm7, %v3609_v34  ;;  %v2884_v10 = vadd.f32 %v2866_v19, %v2840_v9  ;;  %v7431_v2 = vor.u32 %v4222_v43, %v4219_v53  ;;  %v2869_v9 = vld [vmem:[#allocation2 + $0x80] sm:$0xff] }
 0x268   : > { %v3084_v61 = vld [vmem:[#allocation2 + $0x60] sm:$0xff]  ;;  %v3276_v38 = vpop.f32.mrf.mxu0 }
 0x269   : > { %v3102_v25 = vadd.f32 %v3084_v61, %v3057_v13  ;;  %2902 = vst.msk [vmem:[#allocation2 + $0x68] sm:$0xff] %vm352_vm7, %v2884_v10  ;;  %v4224_v8 = vsel %vm1903_vm9, %v7386_v36, %v7431_v2  ;;  %v3945_v10 = vsel %vm1450_vm6, %v3942_v16, %v3944_v62 }
 0x26a   : > { %v3302_v0 = vld [vmem:[#allocation2 + $0x58] sm:$0xff] }
 0x26b   : > { %v3320_v12 = vadd.f32 %v3302_v0, %v3273_v7  ;;  %3120 = vst.msk [vmem:[#allocation2 + $0x60] sm:$0xff] %vm352_vm7, %v3102_v25  ;;  %5493 = vmatmul.msk.bf16.gmra.mxu2 %vm263_vm2, %v3718_v21  ;;  %5584 = vmatmul.msk.bf16.gmra.mxu0 %vm263_vm2, %v4215_v26  ;;  %v5807_v7 = vld [vmem:[%s6040_s23 + $0x98] sm:$0xff]  ;;  %v3703_v26 = vpack.c.b16 %v3693_v63, %v3693_v63  ;;  %v3879_v0 = vld [vmem:[%s6040_s23 + $0xa0] sm:$0x1] }
 0x26c   : > { %v3592_v33 = vld [vmem:[#allocation2 + $0x50] sm:$0xff]  ;;  %v3059_v20 = vpop.f32.mrf.mxu3  ;;  %v4226_v18 = vshrl.u32 %v5807_v7, 16  ;;  %v4229_v6 = vshll.u32 %v5807_v7, 16  ;;  %v3918_v45 = vunpack.c.l.b16 %v3879_v0  ;;  %v4399_v63 = vld [vmem:[%s6040_s23 + $0xa0] sm:$0x3] }
 0x26d   : > { %3338 = vst.msk [vmem:[#allocation2 + $0x58] sm:$0xff] %vm352_vm7, %v3320_v12  ;;  %v3610_v14 = vadd.f32 %v3592_v33, %v3562_v52  ;;  %v4104_v33 = vld [vmem:[%s6040_s23 + $0xa0] sm:$0x3]  ;;  %v3721_v51 = vrot.slane %v3703_v26, 2 }
 0x26e   : > { %v2843_v30 = vpop.f32.mrf.mxu2  ;;  %v3567_v37 = vpop.f32.mrf.mxu1  ;;  %v4228_v39 = vrot.slane %v4226_v18, 2  ;;  %v4231_v25 = vrot.slane %v4229_v6, 3 }
 0x26f   : > { %3628 = vst.msk [vmem:[#allocation2 + $0x50] sm:$0xff] %vm352_vm7, %v3610_v14  ;;  %v2885_v22 = vadd.f32 %v2867_v32, %v2843_v30  ;;  %v4143_v14 = vunpack.c.l.b16 %v4104_v33 }
 0x270   : > { %v3085_v29 = vld [vmem:[#allocation2 + $0x68] sm:$0xff]  ;;  %v3278_v15 = vpop.f32.mrf.mxu0 }
 0x271   : > { %v3103_v47 = vadd.f32 %v3085_v29, %v3059_v20  ;;  %2903 = vst.msk [vmem:[#allocation2 + $0x70] sm:$0xff] %vm352_vm7, %v2885_v22  ;;  %5539 = vmatmul.msk.bf16.gmra.mxu3 %vm263_vm2, %v3943_v55  ;;  %5630 = vmatmul.msk.bf16.gmra.mxu1 %vm263_vm2, %v4461_v46  ;;  %v2870_v22 = vld [vmem:[#allocation2 + $0x88] sm:$0x3f]  ;;  %v3928_v29 = vpack.c.b16 %v3918_v45, %v3918_v45 }
 0x272   : > { %v3303_v57 = vld [vmem:[#allocation2 + $0x60] sm:$0xff]  ;;  %v3722_v46 = vsel %vm1450_vm6, %v3719_v27, %v3721_v51 }
 0x273   : > { %v3321_v1 = vadd.f32 %v3303_v57, %v3276_v38  ;;  %3121 = vst.msk [vmem:[#allocation2 + $0x68] sm:$0xff] %vm352_vm7, %v3103_v47  ;;  %v7486_v47 = vld [vmem:[%s6040_s23 + $0x98] sm:$0xff]  ;;  %v4153_v57 = vpack.c.b16 %v4143_v14, %v4143_v14  ;;  %v3946_v35 = vrot.slane %v3928_v29, 2 }
 0x274   : > { %v3593_v28 = vld [vmem:[#allocation2 + $0x58] sm:$0xff]  ;;  %v3062_v42 = vpop.f32.mrf.mxu3 }
 0x275   : > { %3339 = vst.msk [vmem:[#allocation2 + $0x60] sm:$0xff] %vm352_vm7, %v3321_v1  ;;  %v3611_v58 = vadd.f32 %v3593_v28, %v3564_v41  ;;  %v4463_v41 = vsel %vm2200_vm10, %v4460_v50, %v4462_v11  ;;  %v7475_v50 = vor.u32 %v4231_v25, %v4228_v39 }
 0x276   : > { %v2845_v3 = vpop.f32.mrf.mxu2  ;;  %v3569_v49 = vpop.f32.mrf.mxu1 }
 0x277   : > { %3629 = vst.msk [vmem:[#allocation2 + $0x58] sm:$0xff] %vm352_vm7, %v3611_v58  ;;  %v2886_v48 = vadd.f32 %v2868_v60, %v2845_v3  ;;  %v4233_v43 = vsel %vm1903_vm9, %v7431_v2, %v7475_v50  ;;  %v4235_v3 = vshrl.u32 %v4153_v57, 16  ;;  %v4238_v2 = vshll.u32 %v4153_v57, 16 }
 0x278   : > { %v3086_v59 = vld [vmem:[#allocation2 + $0x70] sm:$0xff]  ;;  %v3281_v54 = vpop.f32.mrf.mxu0 }
 0x279   : > { %v3104_v52 = vadd.f32 %v3086_v59, %v3062_v42  ;;  %2904 = vst.msk [vmem:[#allocation2 + $0x78] sm:$0xff] %vm352_vm7, %v2886_v48  ;;  %v4464_v42 = vrot.slane %v7486_v47, 3 }
 0x27a   : > { %v3304_v24 = vld [vmem:[#allocation2 + $0x68] sm:$0xff] }
 0x27b   : > { %v3322_v5 = vadd.f32 %v3304_v24, %v3278_v15  ;;  %3122 = vst.msk [vmem:[#allocation2 + $0x70] sm:$0xff] %vm352_vm7, %v3104_v52  ;;  %5494 = vmatmul.msk.bf16.gmra.mxu2 %vm263_vm2, %v3720_v44  ;;  %5585 = vmatmul.msk.bf16.gmra.mxu0 %vm263_vm2, %v4224_v8  ;;  %v4465_v40 = vsel %vm2200_vm10, %v4462_v11, %v4464_v42  ;;  %v4237_v24 = vrot.slane %v4235_v3, 2  ;;  %v3811_v3 = vld [vmem:[#allocation2 + $0x20] sm:$0xff] }
 0x27c   : > { %v3594_v4 = vld [vmem:[#allocation2 + $0x60] sm:$0xff]  ;;  %v3064_v34 = vpop.f32.mrf.mxu3 }
 0x27d   : > { %3340 = vst.msk [vmem:[#allocation2 + $0x68] sm:$0xff] %vm352_vm7, %v3322_v5  ;;  %v3612_v36 = vadd.f32 %v3594_v4, %v3567_v37  ;;  %v4240_v5 = vrot.slane %v4238_v2, 3 }
 0x27e   : > { %v2848_v13 = vpop.f32.mrf.mxu2  ;;  %v3572_v21 = vpop.f32.mrf.mxu1 }
 0x27f   : > { %3630 = vst.msk [vmem:[#allocation2 + $0x60] sm:$0xff] %vm352_vm7, %v3612_v36  ;;  %v2887_v19 = vadd.f32 %v2869_v9, %v2848_v13  ;;  %v4438_v36 = vunpack.c.l.b16 %v4399_v63  ;;  %v3808_v13 = vld [vmem:[#allocation2 + $0x8] sm:$0xff] }
 0x280   : > { %v3087_v61 = vld [vmem:[#allocation2 + $0x78] sm:$0xff]  ;;  %v3283_v38 = vpop.f32.mrf.mxu0 }
 0x281   : > { %v3105_v12 = vadd.f32 %v3087_v61, %v3064_v34  ;;  %2905 = vst.msk [vmem:[#allocation2 + $0x80] sm:$0xff] %vm352_vm7, %v2887_v19  ;;  %5540 = vmatmul.msk.bf16.gmra.mxu3 %vm263_vm2, %v3945_v10  ;;  %5631 = vmatmul.msk.bf16.gmra.mxu1 %vm263_vm2, %v4463_v41 }
 0x282   : > { %v3305_v23 = vld [vmem:[#allocation2 + $0x70] sm:$0xff] }
 0x283   : > { %v3323_v16 = vadd.f32 %v3305_v23, %v3281_v54  ;;  %3123 = vst.msk [vmem:[#allocation2 + $0x78] sm:$0xff] %vm352_vm7, %v3105_v12  ;;  %v3807_v54 = vld [vmem:[#allocation2] sm:$0xff] }
 0x284   : > { %v3595_v31 = vld [vmem:[#allocation2 + $0x68] sm:$0xff]  ;;  %v3067_v30 = vpop.f32.mrf.mxu3 }
 0x285   : > { %3341 = vst.msk [vmem:[#allocation2 + $0x70] sm:$0xff] %vm352_vm7, %v3323_v16  ;;  %v3613_v20 = vadd.f32 %v3595_v31, %v3569_v49  ;;  %v3947_v49 = vsel %vm1450_vm6, %v3944_v62, %v3946_v35  ;;  %v4241_v62 = vor.u32 %v4240_v5, %v4237_v24  ;;  %v3809_v16 = vld [vmem:[#allocation2 + $0x10] sm:$0xff]  ;;  %v3812_v5 = vld [vmem:[#allocation2 + $0x28] sm:$0xff] }
 0x286   : > { %v2850_v32 = vpop.f32.mrf.mxu2  ;;  %v3574_v53 = vpop.f32.mrf.mxu1 }
 0x287   : > { %3631 = vst.msk [vmem:[#allocation2 + $0x68] sm:$0xff] %vm352_vm7, %v3613_v20  ;;  %v2888_v55 = vadd.f32 %v2870_v22, %v2850_v32 }
 0x288   : > { %v3088_v15 = vld [vmem:[#allocation2 + $0x80] sm:$0xff]  ;;  %v3286_v37 = vpop.f32.mrf.mxu0 }
 0x289   : > { %v3106_v1 = vadd.f32 %v3088_v15, %v3067_v30  ;;  %2906 = vst.msk [vmem:[#allocation2 + $0x88] sm:$0x3f] %vm370_vm8, %v2888_v55 }
 0x28a   : > { %v3306_v28 = vld [vmem:[#allocation2 + $0x78] sm:$0xff] }
 0x28b   : > { %v3324_v58 = vadd.f32 %v3306_v28, %v3283_v38  ;;  %3124 = vst.msk [vmem:[#allocation2 + $0x80] sm:$0xff] %vm352_vm7, %v3106_v1  ;;  %5495 = vmatmul.msk.bf16.gmra.mxu2 %vm263_vm2, %v3722_v46  ;;  %5586 = vmatmul.msk.bf16.gmra.mxu0 %vm263_vm2, %v4233_v43  ;;  %v4242_v38 = vsel %vm1903_vm9, %v7475_v50, %v4241_v62 }
 0x28c   : > { %v3596_v27 = vld [vmem:[#allocation2 + $0x70] sm:$0xff]  ;;  %v3069_v48 = vpop.f32.mrf.mxu3 }
 0x28d   : > { %3342 = vst.msk [vmem:[#allocation2 + $0x78] sm:$0xff] %vm352_vm7, %v3324_v58  ;;  %v3614_v60 = vadd.f32 %v3596_v27, %v3572_v21  ;;  %v4448_v21 = vpack.c.b16 %v4438_v36, %v4438_v36  ;;  %v7538_v36 = vld [vmem:[%s7698_s3] ss:$0 sm:$0xff] }
 0x28e   : > { %v3762_v59 = vpop.f32.mrf.mxu2  ;;  %v3577_v52 = vpop.f32.mrf.mxu1 }
 0x28f   : > { %3632 = vst.msk [vmem:[#allocation2 + $0x70] sm:$0xff] %vm352_vm7, %v3614_v60  ;;  %v3825_v44 = vadd.f32 %v3807_v54, %v3762_v59  ;;  %v4466_v0 = vrot.slane %v4448_v21, 3 }
 0x290   : > { %v3089_v8 = vld [vmem:[#allocation2 + $0x88] sm:$0x3f]  ;;  %v3288_v7 = vpop.f32.mrf.mxu0 }
 0x291   : > { %v3107_v4 = vadd.f32 %v3089_v8, %v3069_v48  ;;  %3843 = vst.msk [vmem:[#allocation2] sm:$0xff] %vm352_vm7, %v3825_v44  ;;  %5541 = vmatmul.msk.bf16.gmra.mxu3 %vm263_vm2, %v3947_v49  ;;  %5632 = vmatmul.msk.bf16.gmra.mxu1 %vm263_vm2, %v4465_v40  ;;  %v4467_v14 = vsel %vm2200_vm10, %v4464_v42, %v4466_v0 }
 0x292   : > { %v3307_v18 = vld [vmem:[#allocation2 + $0x80] sm:$0xff] }
 0x293   : > { %v3325_v6 = vadd.f32 %v3307_v18, %v3286_v37  ;;  %3125 = vst.msk [vmem:[#allocation2 + $0x88] sm:$0x3f] %vm370_vm8, %v3107_v4  ;;  %v3810_v37 = vld [vmem:[#allocation2 + $0x18] sm:$0xff]  ;;  %v7531_v4 = vld [vmem:[%s7697_s2] ss:$0 sm:$0xff] }
 0x294   : > { %v3597_v17 = vld [vmem:[#allocation2 + $0x78] sm:$0xff]  ;;  %v3987_v11 = vpop.f32.mrf.mxu3 }
 0x295   : > { %3343 = vst.msk [vmem:[#allocation2 + $0x80] sm:$0xff] %vm352_vm7, %v3325_v6  ;;  %v3615_v56 = vadd.f32 %v3597_v17, %v3574_v53 }
 0x296   : > { %v3764_v34 = vpop.f32.mrf.mxu2  ;;  %v3579_v61 = vpop.f32.mrf.mxu1 }
 0x297   : > { %3633 = vst.msk [vmem:[#allocation2 + $0x78] sm:$0xff] %vm352_vm7, %v3615_v56  ;;  %v3826_v9 = vadd.f32 %v3808_v13, %v3764_v34 }
 0x298   : > { %v4032_v19 = vld [vmem:[#allocation2] sm:$0xff]  ;;  %v4282_v10 = vpop.f32.mrf.mxu0 }
 0x299   : > { %v4050_v41 = vadd.f32 %v4032_v19, %v3987_v11  ;;  %3844 = vst.msk [vmem:[#allocation2 + $0x8] sm:$0xff] %vm352_vm7, %v3826_v9 }
 0x29a   : > { %v3308_v26 = vld [vmem:[#allocation2 + $0x88] sm:$0x3f] }
 0x29b   : > { %v3326_v39 = vadd.f32 %v3308_v26, %v3288_v7  ;;  %4068 = vst.msk [vmem:[#allocation2] sm:$0xff] %vm352_vm7, %v4050_v41  ;;  %5587 = vmatmul.msk.bf16.gmra.mxu0 %vm263_vm2, %v4242_v38  ;;  %v3813_v26 = vld [vmem:[#allocation2 + $0x30] sm:$0xff] }
 0x29c   : > { %v3598_v25 = vld [vmem:[#allocation2 + $0x80] sm:$0xff]  ;;  %v3989_v33 = vpop.f32.mrf.mxu3 }
 0x29d   : > { %3344 = vst.msk [vmem:[#allocation2 + $0x88] sm:$0x3f] %vm370_vm8, %v3326_v39  ;;  %v3616_v12 = vadd.f32 %v3598_v25, %v3577_v52 }
 0x29e   : > { %v3767_v23 = vpop.f32.mrf.mxu2  ;;  %v4507_v50 = vpop.f32.mrf.mxu1 }
 0x29f   : > { %3634 = vst.msk [vmem:[#allocation2 + $0x80] sm:$0xff] %vm352_vm7, %v3616_v12  ;;  %v3827_v45 = vadd.f32 %v3809_v16, %v3767_v23 }
 0x2a0   : > { %v4033_v31 = vld [vmem:[#allocation2 + $0x8] sm:$0xff]  ;;  %v4284_v51 = vpop.f32.mrf.mxu0 }
 0x2a1   : > { %v4051_v20 = vadd.f32 %v4033_v31, %v3989_v33  ;;  %3845 = vst.msk [vmem:[#allocation2 + $0x10] sm:$0xff] %vm352_vm7, %v3827_v45  ;;  %5633 = vmatmul.msk.bf16.gmra.mxu1 %vm263_vm2, %v4467_v14 }
 0x2a2   : > { %v4327_v30 = vld [vmem:[#allocation2] sm:$0xff] }
 0x2a3   : > { %v4345_v32 = vadd.f32 %v4327_v30, %v4282_v10  ;;  %4069 = vst.msk [vmem:[#allocation2 + $0x8] sm:$0xff] %vm352_vm7, %v4051_v20 }
 0x2a4   : > { %v3599_v22 = vld [vmem:[#allocation2 + $0x88] sm:$0x3f]  ;;  %v3992_v29 = vpop.f32.mrf.mxu3 }
 0x2a5   : > { %4363 = vst.msk [vmem:[#allocation2] sm:$0xff] %vm352_vm7, %v4345_v32  ;;  %v3617_v55 = vadd.f32 %v3599_v22, %v3579_v61  ;;  %v3814_v22 = vld [vmem:[#allocation2 + $0x38] sm:$0xff] }
 0x2a6   : > { %v3769_v15 = vpop.f32.mrf.mxu2  ;;  %v4509_v47 = vpop.f32.mrf.mxu1 }
 0x2a7   : > { %3635 = vst.msk [vmem:[#allocation2 + $0x88] sm:$0x3f] %vm370_vm8, %v3617_v55  ;;  %v3828_v46 = vadd.f32 %v3810_v37, %v3769_v15 }
 0x2a8   : > { %v4034_v53 = vld [vmem:[#allocation2 + $0x10] sm:$0xff]  ;;  %v4287_v43 = vpop.f32.mrf.mxu0 }
 0x2a9   : > { %v4052_v57 = vadd.f32 %v4034_v53, %v3992_v29  ;;  %3846 = vst.msk [vmem:[#allocation2 + $0x18] sm:$0xff] %vm352_vm7, %v3828_v46 }
 0x2aa   : > { %v4328_v1 = vld [vmem:[#allocation2 + $0x8] sm:$0xff] }
 0x2ab   : > { %v4346_v28 = vadd.f32 %v4328_v1, %v4284_v51  ;;  %4070 = vst.msk [vmem:[#allocation2 + $0x10] sm:$0xff] %vm352_vm7, %v4052_v57 }
 0x2ac   : > { %v4552_v58 = vld [vmem:[#allocation2] sm:$0xff]  ;;  %v3994_v27 = vpop.f32.mrf.mxu3 }
 0x2ad   : > { %4364 = vst.msk [vmem:[#allocation2 + $0x8] sm:$0xff] %vm352_vm7, %v4346_v28  ;;  %v4570_v35 = vadd.f32 %v4552_v58, %v4507_v50  ;;  %v3815_v58 = vld [vmem:[#allocation2 + $0x40] sm:$0xff] }
 0x2ae   : > { %v3772_v42 = vpop.f32.mrf.mxu2  ;;  %v4512_v59 = vpop.f32.mrf.mxu1 }
 0x2af   : > { %4588 = vst.msk [vmem:[#allocation2] sm:$0xff] %vm352_vm7, %v4570_v35  ;;  %v3829_v2 = vadd.f32 %v3811_v3, %v3772_v42 }
 0x2b0   : > { %v4035_v60 = vld [vmem:[#allocation2 + $0x18] sm:$0xff]  ;;  %v4289_v48 = vpop.f32.mrf.mxu0 }
 0x2b1   : > { %v4053_v54 = vadd.f32 %v4035_v60, %v3994_v27  ;;  %3847 = vst.msk [vmem:[#allocation2 + $0x20] sm:$0xff] %vm352_vm7, %v3829_v2 }
 0x2b2   : > { %v4329_v44 = vld [vmem:[#allocation2 + $0x10] sm:$0xff] }
 0x2b3   : > { %v4347_v49 = vadd.f32 %v4329_v44, %v4287_v43  ;;  %4071 = vst.msk [vmem:[#allocation2 + $0x18] sm:$0xff] %vm352_vm7, %v4053_v54 }
 0x2b4   : > { %v4553_v8 = vld [vmem:[#allocation2 + $0x8] sm:$0xff]  ;;  %v3997_v52 = vpop.f32.mrf.mxu3 }
 0x2b5   : > { %4365 = vst.msk [vmem:[#allocation2 + $0x10] sm:$0xff] %vm352_vm7, %v4347_v49  ;;  %v4571_v7 = vadd.f32 %v4553_v8, %v4509_v47 }
 0x2b6   : > { %v4606_v40 = vld [vmem:[#allocation2] sm:$0xff]  ;;  %v3774_v24 = vpop.f32.mrf.mxu2  ;;  %v4514_v62 = vpop.f32.mrf.mxu1 }
 0x2b7   : > { %v4608_v63 = vmul.f32 %v7531_v4, %v4606_v40  ;;  %4589 = vst.msk [vmem:[#allocation2 + $0x8] sm:$0xff] %vm352_vm7, %v4571_v7  ;;  %v3830_v18 = vadd.f32 %v3812_v5, %v3774_v24 }
 0x2b8   : > { %v4036_v6 = vld [vmem:[#allocation2 + $0x20] sm:$0xff]  ;;  %v4292_v17 = vpop.f32.mrf.mxu0 }
 0x2b9   : > { %v4610_v56 = vadd.f32 %v7538_v36, %v4608_v63  ;;  %v4054_v11 = vadd.f32 %v4036_v6, %v3997_v52  ;;  %3848 = vst.msk [vmem:[#allocation2 + $0x28] sm:$0xff] %vm352_vm7, %v3830_v18  ;;  %v3816_v63 = vld [vmem:[#allocation2 + $0x48] sm:$0xff] }
 0x2ba   : > { %v4330_v34 = vld [vmem:[#allocation2 + $0x18] sm:$0xff] }
 0x2bb   : > { %v4612_v13 = vmax.f32 %v4610_v56, 0.0  ;;  %v4348_v9 = vadd.f32 %v4330_v34, %v4289_v48  ;;  %4072 = vst.msk [vmem:[#allocation2 + $0x20] sm:$0xff] %vm352_vm7, %v4054_v11 }
 0x2bc   : > { %v4554_v19 = vld [vmem:[#allocation2 + $0x10] sm:$0xff]  ;;  %v3999_v38 = vpop.f32.mrf.mxu3 }
 0x2bd   : > { %v4614_v10 = vpack.c.bf16 %v4612_v13, %v4612_v13  ;;  %4366 = vst.msk [vmem:[#allocation2 + $0x18] sm:$0xff] %vm352_vm7, %v4348_v9  ;;  %v4572_v61 = vadd.f32 %v4554_v19, %v4512_v59 }
 0x2be   : > { %v4607_v21 = vld [vmem:[#allocation2 + $0x8] sm:$0xff]  ;;  %v3777_v41 = vpop.f32.mrf.mxu2  ;;  %v4517_v33 = vpop.f32.mrf.mxu1 }
 0x2bf   : > { %5634 = vst.msk [vmem:[%s6728_s13 + $0x40] sm:$0xf] %vm2374_vm11, %v4614_v10  ;;  %v4609_v39 = vmul.f32 %v7531_v4, %v4607_v21  ;;  %v3831_v25 = vadd.f32 %v3813_v26, %v3777_v41 }
 0x2c0   : > { %4590 = vst.msk [vmem:[#allocation2 + $0x10] sm:$0xff] %vm352_vm7, %v4572_v61  ;;  %v4037_v0 = vld [vmem:[#allocation2 + $0x28] sm:$0xff]  ;;  %v4294_v12 = vpop.f32.mrf.mxu0 }
 0x2c1   : > { %v4611_v23 = vadd.f32 %v7538_v36, %v4609_v39  ;;  %v4055_v16 = vadd.f32 %v4037_v0, %v3999_v38  ;;  %3849 = vst.msk [vmem:[#allocation2 + $0x30] sm:$0xff] %vm352_vm7, %v3831_v25  ;;  %v3817_v39 = vld [vmem:[#allocation2 + $0x50] sm:$0xff] }
 0x2c2   : > { %v4331_v45 = vld [vmem:[#allocation2 + $0x20] sm:$0xff] }
 0x2c3   : > { %v4613_v31 = vmax.f32 %v4611_v23, 0.0  ;;  %v4349_v51 = vadd.f32 %v4331_v45, %v4292_v17  ;;  %4073 = vst.msk [vmem:[#allocation2 + $0x28] sm:$0xff] %vm352_vm7, %v4055_v16 }
 0x2c4   : > { %v4555_v50 = vld [vmem:[#allocation2 + $0x18] sm:$0xff]  ;;  %v4002_v30 = vpop.f32.mrf.mxu3 }
 0x2c5   : > { %v4615_v14 = vpack.c.bf16 %v4613_v31, %v4613_v31  ;;  %4367 = vst.msk [vmem:[#allocation2 + $0x20] sm:$0xff] %vm352_vm7, %v4349_v51  ;;  %v4573_v20 = vadd.f32 %v4555_v50, %v4514_v62 }
 0x2c6   : > { %v3779_v32 = vpop.f32.mrf.mxu2  ;;  %v4519_v37 = vpop.f32.mrf.mxu1 }
 0x2c7   : > { %5635 = vst.msk [vmem:[%s6728_s13 + $0x44] sm:$0xf] %vm2374_vm11, %v4615_v14  ;;  %v3832_v55 = vadd.f32 %v3814_v22, %v3779_v32 }
 0x2c8   : > { %4591 = vst.msk [vmem:[#allocation2 + $0x18] sm:$0xff] %vm352_vm7, %v4573_v20  ;;  %v4038_v29 = vld [vmem:[#allocation2 + $0x30] sm:$0xff]  ;;  %v4297_v15 = vpop.f32.mrf.mxu0 }
 0x2c9   : > { %v4056_v46 = vadd.f32 %v4038_v29, %v4002_v30  ;;  %3850 = vst.msk [vmem:[#allocation2 + $0x38] sm:$0xff] %vm352_vm7, %v3832_v55  ;;  %v3818_v55 = vld [vmem:[#allocation2 + $0x58] sm:$0xff] }
 0x2ca   : > { %v4332_v53 = vld [vmem:[#allocation2 + $0x28] sm:$0xff] }
 0x2cb   : > { %v4350_v43 = vadd.f32 %v4332_v53, %v4294_v12  ;;  %4074 = vst.msk [vmem:[#allocation2 + $0x30] sm:$0xff] %vm352_vm7, %v4056_v46 }
 0x2cc   : > { %v4556_v47 = vld [vmem:[#allocation2 + $0x20] sm:$0xff]  ;;  %v4004_v1 = vpop.f32.mrf.mxu3 }
 0x2cd   : > { %4368 = vst.msk [vmem:[#allocation2 + $0x28] sm:$0xff] %vm352_vm7, %v4350_v43  ;;  %v4574_v57 = vadd.f32 %v4556_v47, %v4517_v33 }
 0x2ce   : > { %v3782_v28 = vpop.f32.mrf.mxu2  ;;  %v4522_v60 = vpop.f32.mrf.mxu1 }
 0x2cf   : > { %v4619_v35 = vld [vmem:[#allocation2 + $0x12] sm:$0xff]  ;;  %4592 = vst.msk [vmem:[#allocation2 + $0x20] sm:$0xff] %vm352_vm7, %v4574_v57  ;;  %v3833_v27 = vadd.f32 %v3815_v58, %v3782_v28 }
 0x2d0   : > { %v4621_v42 = vmul.f32 %v7531_v4, %v4619_v35  ;;  %v4039_v3 = vld [vmem:[#allocation2 + $0x38] sm:$0xff]  ;;  %v4299_v2 = vpop.f32.mrf.mxu0 }
 0x2d1   : > { %v4057_v48 = vadd.f32 %v4039_v3, %v4004_v1  ;;  %3851 = vst.msk [vmem:[#allocation2 + $0x40] sm:$0xff] %vm352_vm7, %v3833_v27 }
 0x2d2   : > { %v4623_v59 = vadd.f32 %v7538_v36, %v4621_v42  ;;  %v4333_v54 = vld [vmem:[#allocation2 + $0x30] sm:$0xff] }
 0x2d3   : > { %v4351_v44 = vadd.f32 %v4333_v54, %v4297_v15  ;;  %4075 = vst.msk [vmem:[#allocation2 + $0x38] sm:$0xff] %vm352_vm7, %v4057_v48 }
 0x2d4   : > { %v4625_v49 = vmax.f32 %v4623_v59, 0.0  ;;  %v4557_v8 = vld [vmem:[#allocation2 + $0x28] sm:$0xff]  ;;  %v4007_v52 = vpop.f32.mrf.mxu3 }
 0x2d5   : > { %4369 = vst.msk [vmem:[#allocation2 + $0x30] sm:$0xff] %vm352_vm7, %v4351_v44  ;;  %v4575_v7 = vadd.f32 %v4557_v8, %v4519_v37 }
 0x2d6   : > { %v4627_v40 = vpack.c.bf16 %v4625_v49, %v4625_v49  ;;  %v4620_v24 = vld [vmem:[#allocation2 + $0x1a] sm:$0xff]  ;;  %v3784_v5 = vpop.f32.mrf.mxu2  ;;  %v4524_v56 = vpop.f32.mrf.mxu1 }
 0x2d7   : > { %v4622_v18 = vmul.f32 %v7531_v4, %v4620_v24  ;;  %4593 = vst.msk [vmem:[#allocation2 + $0x28] sm:$0xff] %vm352_vm7, %v4575_v7  ;;  %v3834_v6 = vadd.f32 %v3816_v63, %v3784_v5 }
 0x2d8   : > { %5636 = vst.msk [vmem:[%s6728_s13 + $0x48] sm:$0xf] %vm2374_vm11, %v4627_v40  ;;  %v4040_v17 = vld [vmem:[#allocation2 + $0x40] sm:$0xff]  ;;  %v4302_v62 = vpop.f32.mrf.mxu0 }
 0x2d9   : > { %v4624_v11 = vadd.f32 %v7538_v36, %v4622_v18  ;;  %v4058_v34 = vadd.f32 %v4040_v17, %v4007_v52  ;;  %3852 = vst.msk [vmem:[#allocation2 + $0x48] sm:$0xff] %vm352_vm7, %v3834_v6 }
 0x2da   : > { %v4334_v13 = vld [vmem:[#allocation2 + $0x38] sm:$0xff] }
 0x2db   : > { %v4626_v9 = vmax.f32 %v4624_v11, 0.0  ;;  %v4352_v19 = vadd.f32 %v4334_v13, %v4299_v2  ;;  %4076 = vst.msk [vmem:[#allocation2 + $0x40] sm:$0xff] %vm352_vm7, %v4058_v34  ;;  %v3820_v11 = vld [vmem:[#allocation2 + $0x68] sm:$0xff] }
 0x2dc   : > { %v4558_v10 = vld [vmem:[#allocation2 + $0x30] sm:$0xff]  ;;  %v4009_v21 = vpop.f32.mrf.mxu3 }
 0x2dd   : > { %v4628_v61 = vpack.c.bf16 %v4626_v9, %v4626_v9  ;;  %4370 = vst.msk [vmem:[#allocation2 + $0x38] sm:$0xff] %vm352_vm7, %v4352_v19  ;;  %v4576_v38 = vadd.f32 %v4558_v10, %v4522_v60  ;;  %v3819_v60 = vld [vmem:[#allocation2 + $0x60] sm:$0xff] }
 0x2de   : > { %v4632_v41 = vld [vmem:[#allocation2 + $0x24] sm:$0xff]  ;;  %v3787_v26 = vpop.f32.mrf.mxu2  ;;  %v4527_v23 = vpop.f32.mrf.mxu1 }
 0x2df   : > { %5637 = vst.msk [vmem:[%s6728_s13 + $0x4c] sm:$0xf] %vm2374_vm11, %v4628_v61  ;;  %v4634_v25 = vmul.f32 %v7531_v4, %v4632_v41  ;;  %v3835_v0 = vadd.f32 %v3817_v39, %v3787_v26 }
 0x2e0   : > { %4594 = vst.msk [vmem:[#allocation2 + $0x30] sm:$0xff] %vm352_vm7, %v4576_v38  ;;  %v4041_v12 = vld [vmem:[#allocation2 + $0x48] sm:$0xff]  ;;  %v4304_v33 = vpop.f32.mrf.mxu0 }
 0x2e1   : > { %v4636_v16 = vadd.f32 %v7538_v36, %v4634_v25  ;;  %v4059_v45 = vadd.f32 %v4041_v12, %v4009_v21  ;;  %3853 = vst.msk [vmem:[#allocation2 + $0x50] sm:$0xff] %vm352_vm7, %v3835_v0 }
 0x2e2   : > { %v4335_v31 = vld [vmem:[#allocation2 + $0x40] sm:$0xff] }
 0x2e3   : > { %v4638_v51 = vmax.f32 %v4636_v16, 0.0  ;;  %v4353_v50 = vadd.f32 %v4335_v31, %v4302_v62  ;;  %4077 = vst.msk [vmem:[#allocation2 + $0x48] sm:$0xff] %vm352_vm7, %v4059_v45  ;;  %v3821_v16 = vld [vmem:[#allocation2 + $0x70] sm:$0xff] }
 0x2e4   : > { %v4559_v14 = vld [vmem:[#allocation2 + $0x38] sm:$0xff]  ;;  %v4012_v32 = vpop.f32.mrf.mxu3 }
 0x2e5   : > { %v4640_v20 = vpack.c.bf16 %v4638_v51, %v4638_v51  ;;  %4371 = vst.msk [vmem:[#allocation2 + $0x40] sm:$0xff] %vm352_vm7, %v4353_v50  ;;  %v4577_v30 = vadd.f32 %v4559_v14, %v4524_v56 }
 0x2e6   : > { %v3789_v22 = vpop.f32.mrf.mxu2  ;;  %v4529_v43 = vpop.f32.mrf.mxu1 }
 0x2e7   : > { %5638 = vst.msk [vmem:[%s6728_s13 + $0x50] sm:$0xf] %vm2374_vm11, %v4640_v20  ;;  %v4633_v29 = vld [vmem:[#allocation2 + $0x2c] sm:$0xff]  ;;  %v3836_v15 = vadd.f32 %v3818_v55, %v3789_v22 }
 0x2e8   : > { %v4635_v37 = vmul.f32 %v7531_v4, %v4633_v29  ;;  %4595 = vst.msk [vmem:[#allocation2 + $0x38] sm:$0xff] %vm352_vm7, %v4577_v30  ;;  %v4042_v46 = vld [vmem:[#allocation2 + $0x50] sm:$0xff]  ;;  %v4307_v53 = vpop.f32.mrf.mxu0 }
 0x2e9   : > { %v4060_v47 = vadd.f32 %v4042_v46, %v4012_v32  ;;  %3854 = vst.msk [vmem:[#allocation2 + $0x58] sm:$0xff] %vm352_vm7, %v3836_v15 }
 0x2ea   : > { %v4637_v57 = vadd.f32 %v7538_v36, %v4635_v37  ;;  %v4336_v1 = vld [vmem:[#allocation2 + $0x48] sm:$0xff] }
 0x2eb   : > { %v4354_v28 = vadd.f32 %v4336_v1, %v4304_v33  ;;  %4078 = vst.msk [vmem:[#allocation2 + $0x50] sm:$0xff] %vm352_vm7, %v4060_v47 }
 0x2ec   : > { %v4639_v58 = vmax.f32 %v4637_v57, 0.0  ;;  %v4560_v35 = vld [vmem:[#allocation2 + $0x40] sm:$0xff]  ;;  %v4014_v42 = vpop.f32.mrf.mxu3 }
 0x2ed   : > { %4372 = vst.msk [vmem:[#allocation2 + $0x48] sm:$0xff] %vm352_vm7, %v4354_v28  ;;  %v4578_v27 = vadd.f32 %v4560_v35, %v4527_v23 }
 0x2ee   : > { %v4641_v3 = vpack.c.bf16 %v4639_v58, %v4639_v58  ;;  %v3792_v2 = vpop.f32.mrf.mxu2  ;;  %v4532_v8 = vpop.f32.mrf.mxu1 }
 0x2ef   : > { %v4645_v48 = vld [vmem:[#allocation2 + $0x36] sm:$0xff]  ;;  %4596 = vst.msk [vmem:[#allocation2 + $0x40] sm:$0xff] %vm352_vm7, %v4578_v27  ;;  %v3837_v59 = vadd.f32 %v3819_v60, %v3792_v2 }
 0x2f0   : > { %5639 = vst.msk [vmem:[%s6728_s13 + $0x54] sm:$0xf] %vm2374_vm11, %v4641_v3  ;;  %v4647_v54 = vmul.f32 %v7531_v4, %v4645_v48  ;;  %v4043_v44 = vld [vmem:[#allocation2 + $0x58] sm:$0xff]  ;;  %v4309_v49 = vpop.f32.mrf.mxu0 }
 0x2f1   : > { %v4061_v7 = vadd.f32 %v4043_v44, %v4014_v42  ;;  %3855 = vst.msk [vmem:[#allocation2 + $0x60] sm:$0xff] %vm352_vm7, %v3837_v59 }
 0x2f2   : > { %v4649_v52 = vadd.f32 %v7538_v36, %v4647_v54  ;;  %v4337_v40 = vld [vmem:[#allocation2 + $0x50] sm:$0xff] }
 0x2f3   : > { %v4355_v24 = vadd.f32 %v4337_v40, %v4307_v53  ;;  %4079 = vst.msk [vmem:[#allocation2 + $0x58] sm:$0xff] %vm352_vm7, %v4061_v7 }
 0x2f4   : > { %v4651_v5 = vmax.f32 %v4649_v52, 0.0  ;;  %v4561_v63 = vld [vmem:[#allocation2 + $0x48] sm:$0xff]  ;;  %v4017_v6 = vpop.f32.mrf.mxu3 }
 0x2f5   : > { %4373 = vst.msk [vmem:[#allocation2 + $0x50] sm:$0xff] %vm352_vm7, %v4355_v24  ;;  %v4579_v18 = vadd.f32 %v4561_v63, %v4529_v43  ;;  %v3822_v43 = vld [vmem:[#allocation2 + $0x78] sm:$0xff] }
 0x2f6   : > { %v4653_v17 = vpack.c.bf16 %v4651_v5, %v4651_v5  ;;  %v4646_v62 = vld [vmem:[#allocation2 + $0x3e] sm:$0xff]  ;;  %v3794_v56 = vpop.f32.mrf.mxu2  ;;  %v4534_v10 = vpop.f32.mrf.mxu1 }
 0x2f7   : > { %v4648_v34 = vmul.f32 %v7531_v4, %v4646_v62  ;;  %4597 = vst.msk [vmem:[#allocation2 + $0x48] sm:$0xff] %vm352_vm7, %v4579_v18  ;;  %v3838_v13 = vadd.f32 %v3820_v11, %v3794_v56 }
 0x2f8   : > { %5640 = vst.msk [vmem:[%s6728_s13 + $0x58] sm:$0xf] %vm2374_vm11, %v4653_v17  ;;  %v4044_v9 = vld [vmem:[#allocation2 + $0x60] sm:$0xff]  ;;  %v4312_v19 = vpop.f32.mrf.mxu0 }
 0x2f9   : > { %v4650_v61 = vadd.f32 %v7538_v36, %v4648_v34  ;;  %v4062_v38 = vadd.f32 %v4044_v9, %v4017_v6  ;;  %3856 = vst.msk [vmem:[#allocation2 + $0x68] sm:$0xff] %vm352_vm7, %v3838_v13  ;;  %v3824_v34 = vld [vmem:[#allocation2 + $0x88] sm:$0x3f] }
 0x2fa   : > { %v4338_v21 = vld [vmem:[#allocation2 + $0x58] sm:$0xff] }
 0x2fb   : > { %v4652_v41 = vmax.f32 %v4650_v61, 0.0  ;;  %v4356_v26 = vadd.f32 %v4338_v21, %v4309_v49  ;;  %4080 = vst.msk [vmem:[#allocation2 + $0x60] sm:$0xff] %vm352_vm7, %v4062_v38 }
 0x2fc   : > { %v4562_v39 = vld [vmem:[#allocation2 + $0x50] sm:$0xff]  ;;  %v4019_v12 = vpop.f32.mrf.mxu3 }
 0x2fd   : > { %v4654_v25 = vpack.c.bf16 %v4652_v41, %v4652_v41  ;;  %4374 = vst.msk [vmem:[#allocation2 + $0x58] sm:$0xff] %vm352_vm7, %v4356_v26  ;;  %v4580_v0 = vadd.f32 %v4562_v39, %v4532_v8  ;;  %v3823_v8 = vld [vmem:[#allocation2 + $0x80] sm:$0xff] }
 0x2fe   : > { %v4658_v33 = vld [vmem:[#allocation2 + $0x48] sm:$0xff]  ;;  %v3797_v23 = vpop.f32.mrf.mxu2  ;;  %v4537_v30 = vpop.f32.mrf.mxu1 }
 0x2ff   : > { %5641 = vst.msk [vmem:[%s6728_s13 + $0x5c] sm:$0xf] %vm2374_vm11, %v4654_v25  ;;  %v4660_v45 = vmul.f32 %v7531_v4, %v4658_v33  ;;  %v3839_v31 = vadd.f32 %v3821_v16, %v3797_v23 }
 0x300   : > { %4598 = vst.msk [vmem:[#allocation2 + $0x50] sm:$0xff] %vm352_vm7, %v4580_v0  ;;  %v4045_v51 = vld [vmem:[#allocation2 + $0x68] sm:$0xff]  ;;  %v4314_v20 = vpop.f32.mrf.mxu0 }
 0x301   : > { %v4662_v50 = vadd.f32 %v7538_v36, %v4660_v45  ;;  %v4063_v14 = vadd.f32 %v4045_v51, %v4019_v12  ;;  %3857 = vst.msk [vmem:[#allocation2 + $0x70] sm:$0xff] %vm352_vm7, %v3839_v31 }
 0x302   : > { %v4339_v32 = vld [vmem:[#allocation2 + $0x60] sm:$0xff] }
 0x303   : > { %v4664_v22 = vmax.f32 %v4662_v50, 0.0  ;;  %v4357_v55 = vadd.f32 %v4339_v32, %v4312_v19  ;;  %4081 = vst.msk [vmem:[#allocation2 + $0x68] sm:$0xff] %vm352_vm7, %v4063_v14 }
 0x304   : > { %v4563_v29 = vld [vmem:[#allocation2 + $0x58] sm:$0xff]  ;;  %v4022_v46 = vpop.f32.mrf.mxu3 }
 0x305   : > { %v4666_v15 = vpack.c.bf16 %v4664_v22, %v4664_v22  ;;  %4375 = vst.msk [vmem:[#allocation2 + $0x60] sm:$0xff] %vm352_vm7, %v4357_v55  ;;  %v4581_v37 = vadd.f32 %v4563_v29, %v4534_v10 }
 0x306   : > { %v3799_v53 = vpop.f32.mrf.mxu2  ;;  %v4539_v2 = vpop.f32.mrf.mxu1 }
 0x307   : > { %5642 = vst.msk [vmem:[%s6728_s13 + $0x60] sm:$0xf] %vm2374_vm11, %v4666_v15  ;;  %v4659_v47 = vld [vmem:[#allocation2 + $0x50] sm:$0xff]  ;;  %v3840_v57 = vadd.f32 %v3822_v43, %v3799_v53 }
 0x308   : > { %v4661_v1 = vmul.f32 %v7531_v4, %v4659_v47  ;;  %4599 = vst.msk [vmem:[#allocation2 + $0x58] sm:$0xff] %vm352_vm7, %v4581_v37  ;;  %v4046_v28 = vld [vmem:[#allocation2 + $0x70] sm:$0xff]  ;;  %v4317_v3 = vpop.f32.mrf.mxu0 }
 0x309   : > { %v4064_v58 = vadd.f32 %v4046_v28, %v4022_v46  ;;  %3858 = vst.msk [vmem:[#allocation2 + $0x78] sm:$0xff] %vm352_vm7, %v3840_v57 }
 0x30a   : > { %v4663_v35 = vadd.f32 %v7538_v36, %v4661_v1  ;;  %v4340_v27 = vld [vmem:[#allocation2 + $0x68] sm:$0xff] }
 0x30b   : > { %v4358_v42 = vadd.f32 %v4340_v27, %v4314_v20  ;;  %4082 = vst.msk [vmem:[#allocation2 + $0x70] sm:$0xff] %vm352_vm7, %v4064_v58 }
 0x30c   : > { %v4665_v60 = vmax.f32 %v4663_v35, 0.0  ;;  %v4564_v48 = vld [vmem:[#allocation2 + $0x60] sm:$0xff]  ;;  %v4024_v54 = vpop.f32.mrf.mxu3 }
 0x30d   : > { %4376 = vst.msk [vmem:[#allocation2 + $0x68] sm:$0xff] %vm352_vm7, %v4358_v42  ;;  %v4582_v59 = vadd.f32 %v4564_v48, %v4537_v30 }
 0x30e   : > { %v4667_v44 = vpack.c.bf16 %v4665_v60, %v4665_v60  ;;  %v3802_v49 = vpop.f32.mrf.mxu2  ;;  %v4542_v17 = vpop.f32.mrf.mxu1 }
 0x30f   : > { %4600 = vst.msk [vmem:[#allocation2 + $0x60] sm:$0xff] %vm352_vm7, %v4582_v59  ;;  %v3841_v7 = vadd.f32 %v3823_v8, %v3802_v49 }
 0x310   : > { %5643 = vst.msk [vmem:[%s6728_s13 + $0x64] sm:$0xf] %vm2374_vm11, %v4667_v44  ;;  %v4047_v52 = vld [vmem:[#allocation2 + $0x78] sm:$0xff]  ;;  %v4319_v6 = vpop.f32.mrf.mxu0 }
 0x311   : > { %v4065_v40 = vadd.f32 %v4047_v52, %v4024_v54  ;;  %3859 = vst.msk [vmem:[#allocation2 + $0x80] sm:$0xff] %vm352_vm7, %v3841_v7 }
 0x312   : > { %v4341_v24 = vld [vmem:[#allocation2 + $0x70] sm:$0xff] }
 0x313   : > { %v4359_v5 = vadd.f32 %v4341_v24, %v4317_v3  ;;  %4083 = vst.msk [vmem:[#allocation2 + $0x78] sm:$0xff] %vm352_vm7, %v4065_v40 }
 0x314   : > { %v4565_v63 = vld [vmem:[#allocation2 + $0x68] sm:$0xff]  ;;  %v4027_v56 = vpop.f32.mrf.mxu3 }
 0x315   : > { %4377 = vst.msk [vmem:[#allocation2 + $0x70] sm:$0xff] %vm352_vm7, %v4359_v5  ;;  %v4583_v18 = vadd.f32 %v4565_v63, %v4539_v2 }
 0x316   : > { %v4671_v62 = vld [vmem:[#allocation2 + $0x5a] sm:$0xff]  ;;  %v3804_v11 = vpop.f32.mrf.mxu2  ;;  %v4544_v23 = vpop.f32.mrf.mxu1 }
 0x317   : > { %v4673_v13 = vmul.f32 %v7531_v4, %v4671_v62  ;;  %4601 = vst.msk [vmem:[#allocation2 + $0x68] sm:$0xff] %vm352_vm7, %v4583_v18  ;;  %v3842_v9 = vadd.f32 %v3824_v34, %v3804_v11 }
 0x318   : > { %v4048_v19 = vld [vmem:[#allocation2 + $0x80] sm:$0xff]  ;;  %v4322_v33 = vpop.f32.mrf.mxu0 }
 0x319   : > { %v4675_v10 = vadd.f32 %v7538_v36, %v4673_v13  ;;  %v4066_v61 = vadd.f32 %v4048_v19, %v4027_v56  ;;  %3860 = vst.msk [vmem:[#allocation2 + $0x88] sm:$0x3f] %vm370_vm8, %v3842_v9 }
 0x31a   : > { %v4342_v38 = vld [vmem:[#allocation2 + $0x78] sm:$0xff] }
 0x31b   : > { %v4677_v21 = vmax.f32 %v4675_v10, 0.0  ;;  %v4360_v41 = vadd.f32 %v4342_v38, %v4319_v6  ;;  %4084 = vst.msk [vmem:[#allocation2 + $0x80] sm:$0xff] %vm352_vm7, %v4066_v61 }
 0x31c   : > { %v4566_v26 = vld [vmem:[#allocation2 + $0x70] sm:$0xff]  ;;  %v4029_v16 = vpop.f32.mrf.mxu3 }
 0x31d   : > { %v4679_v39 = vpack.c.bf16 %v4677_v21, %v4677_v21  ;;  %4378 = vst.msk [vmem:[#allocation2 + $0x78] sm:$0xff] %vm352_vm7, %v4360_v41  ;;  %v4584_v25 = vadd.f32 %v4566_v26, %v4542_v17 }
 0x31e   : > { %v4672_v0 = vld [vmem:[#allocation2 + $0x62] sm:$0xff]  ;;  %v4547_v53 = vpop.f32.mrf.mxu1 }
 0x31f   : > { %5644 = vst.msk [vmem:[%s6728_s13 + $0x68] sm:$0xf] %vm2374_vm11, %v4679_v39  ;;  %v4674_v12 = vmul.f32 %v7531_v4, %v4672_v0 }
 0x320   : > { %4602 = vst.msk [vmem:[#allocation2 + $0x70] sm:$0xff] %vm352_vm7, %v4584_v25  ;;  %v4049_v45 = vld [vmem:[#allocation2 + $0x88] sm:$0x3f]  ;;  %v4324_v37 = vpop.f32.mrf.mxu0 }
 0x321   : > { %v4676_v31 = vadd.f32 %v7538_v36, %v4674_v12  ;;  %v4067_v51 = vadd.f32 %v4049_v45, %v4029_v16 }
 0x322   : > { %v4343_v50 = vld [vmem:[#allocation2 + $0x80] sm:$0xff] }
 0x323   : > { %v4678_v14 = vmax.f32 %v4676_v31, 0.0  ;;  %v4361_v20 = vadd.f32 %v4343_v50, %v4322_v33  ;;  %4085 = vst.msk [vmem:[#allocation2 + $0x88] sm:$0x3f] %vm370_vm8, %v4067_v51 }
 0x324   : > { %v4567_v30 = vld [vmem:[#allocation2 + $0x78] sm:$0xff] }
 0x325   : > { %v4680_v32 = vpack.c.bf16 %v4678_v14, %v4678_v14  ;;  %4379 = vst.msk [vmem:[#allocation2 + $0x80] sm:$0xff] %vm352_vm7, %v4361_v20  ;;  %v4585_v22 = vadd.f32 %v4567_v30, %v4544_v23 }
 0x326   : > { %v4549_v3 = vpop.f32.mrf.mxu1 }
 0x327   : > { %5645 = vst.msk [vmem:[%s6728_s13 + $0x6c] sm:$0xf] %vm2374_vm11, %v4680_v32  ;;  %v4684_v55 = vld [vmem:[#allocation2 + $0x6c] sm:$0xff] }
 0x328   : > { %v4686_v29 = vmul.f32 %v7531_v4, %v4684_v55  ;;  %4603 = vst.msk [vmem:[#allocation2 + $0x78] sm:$0xff] %vm352_vm7, %v4585_v22 }
 0x32a   : > { %v4688_v15 = vadd.f32 %v7538_v36, %v4686_v29  ;;  %v4344_v46 = vld [vmem:[#allocation2 + $0x88] sm:$0x3f] }
 0x32b   : > { %v4362_v43 = vadd.f32 %v4344_v46, %v4324_v37 }
 0x32c   : > { %v4690_v47 = vmax.f32 %v4688_v15, 0.0  ;;  %v4568_v57 = vld [vmem:[#allocation2 + $0x80] sm:$0xff] }
 0x32d   : > { %4380 = vst.msk [vmem:[#allocation2 + $0x88] sm:$0x3f] %vm370_vm8, %v4362_v43  ;;  %v4586_v1 = vadd.f32 %v4568_v57, %v4547_v53 }
 0x32e   : > { %v4692_v28 = vpack.c.bf16 %v4690_v47, %v4690_v47 }
 0x32f   : > { %v4685_v58 = vld [vmem:[#allocation2 + $0x74] sm:$0xff]  ;;  %4604 = vst.msk [vmem:[#allocation2 + $0x80] sm:$0xff] %vm352_vm7, %v4586_v1 }
 0x330   : > { %5646 = vst.msk [vmem:[%s6728_s13 + $0x70] sm:$0xf] %vm2374_vm11, %v4692_v28  ;;  %v4687_v35 = vmul.f32 %v7531_v4, %v4685_v58 }
 0x332   : > { %v4689_v27 = vadd.f32 %v7538_v36, %v4687_v35 }
 0x334   : > { %v4691_v42 = vmax.f32 %v4689_v27, 0.0  ;;  %v4569_v2 = vld [vmem:[#allocation2 + $0x88] sm:$0x3f] }
 0x335   : > { %v4587_v60 = vadd.f32 %v4569_v2, %v4549_v3 }
 0x336   : > { %v4693_v48 = vpack.c.bf16 %v4691_v42, %v4691_v42  ;;  %v4697_v59 = vld [vmem:[#allocation2 + $0x7e] sm:$0xff] }
 0x337   : > { %v4699_v54 = vmul.f32 %v7531_v4, %v4697_v59  ;;  %4605 = vst.msk [vmem:[#allocation2 + $0x88] sm:$0x3f] %vm370_vm8, %v4587_v60 }
 0x338   : > { %5647 = vst.msk [vmem:[%s6728_s13 + $0x74] sm:$0xf] %vm2374_vm11, %v4693_v48 }
 0x339   : > { %v4701_v44 = vadd.f32 %v7538_v36, %v4699_v54 }
 0x33b   : > { %v4703_v49 = vmax.f32 %v4701_v44, 0.0 }
 0x33d   : > { %v4705_v8 = vpack.c.bf16 %v4703_v49, %v4703_v49 }
 0x33e   : > { %v4698_v7 = vld [vmem:[#allocation2 + $0x86] sm:$0xff] }
 0x33f   : > { %5648 = vst.msk [vmem:[%s6728_s13 + $0x78] sm:$0xf] %vm2374_vm11, %v4705_v8  ;;  %v4700_v52 = vmul.f32 %v7531_v4, %v4698_v7 }
 0x341   : > { %v4702_v40 = vadd.f32 %v7538_v36, %v4700_v52 }
 0x343   : > { %v4704_v24 = vmax.f32 %v4702_v40, 0.0 }
 0x345   : > { %v4706_v5 = vpack.c.bf16 %v4704_v24, %v4704_v24 }
 0x347   : > { %5649 = vst.msk [vmem:[%s6728_s13 + $0x7c] sm:$0xf] %vm2374_vm11, %v4706_v5 }
 0x348   : > { %5896 = shalt.err (!%p5893_p3)
}
 0x349   : > { %s5934_s9 = smov 64   ;;  %s5935_s13 = smov 4  }
 0x34a   : > { %5821 = dma.vmem_to_hbm [thread:$0]  (%p5999_p5), %s4724_s12, 2048, %s4726_s14, %s4711_s19, %s5934_s9, %s5934_s9, %s5935_s13  }
 0x34b PF: > { %p5827_p4 = scmp.ge.s32.totalorder %s5931_s18, 2  ;;  %s4740_s5 = sand.u32 1, %s5919_s15  }
 0x34c   : > { %s4741_s6 = scalar_lea.sflag [#allocation4], %s4740_s5 }
 0x34d   : > { %p5824_p7 = pnand %p5827_p4, %p6003_p6 }
 0x34f   : > { %p5825_p8 = pneg %p5824_p7 }
 0x351   : > { %5914 = dma.done.wait (%p5825_p8), %s4741_s6, 2048  }
 0x352   : > { %5916 = vsyncadd (%p5825_p8), %s4741_s6, 4294965248  ;;  %p14_p9 = scmp.ge.s32.totalorder %s5986_s21, 4   ;;  %s7702_s15 = smov %s5923_s16 }
 0x353   : > { %s7703_s16 = smov %s5927_s17  ;;  %s7704_s17 = smov %s5997_s24 }
 0x354   : > { %s7705_s18 = smov %s5986_s21  ;;  %16 = sbr.rel (!%p14_p9) target bundleno = 3 (0x3), region = 94 }
 0x359   :  { %4747 = vsyncpa [#allocation4], 1 }
 0x35a   :  { %4749 = vsyncpa [#allocation4 + $0x1], 1 }

</bundles_post_ra>
